<compile_context>
chip_gen: v7x
topology: tpu7x:2x2x1
jax: 0.10.0
libtpu: 0.0.40
codegen_flags: <defaults>
</compile_context>

<pallas_src>
import math

import numpy as np

import jax
import jax.numpy as jnp
from jax.experimental import pallas as pl
from jax.experimental.pallas import tpu as pltpu


# ----------------------------------------------------------------------------
# Static network plan
# ----------------------------------------------------------------------------
def _round8(n):
    return -(-n // 8) * 8


def _layer_plan(n_colors, n_feats, n_depth):
    """(name, cin, cout, spatial_level) for every conv, in kernel call order."""
    plan = [("head", n_colors, n_feats, 0)]
    cin, cout = n_feats, n_feats
    for d in range(n_depth):
        plan.append((f"enc{d}_conv", cin, cout, d))
        plan.append((f"enc{d}_pool", cout, cout, d))
        cin, cout = cout, 2 * cout
    plan.append(("body_exp", cin, cout, n_depth))
    cin, cout = cout, cin
    for d in range(n_depth):
        plan.append((f"dec{d}_up", cin, 4 * cout, n_depth - d))          # Upsampler conv
        plan.append((f"dec{d}_conv", 2 * cout, cout, n_depth - d - 1))   # conv(cat(sc, up))
        cin, cout = cout, cout // 2
    plan.append(("tail", n_feats, n_colors, 0))
    return plan


def _weight_offsets(plan):
    """Row offsets (multiples of 8) into the packed weight/bias arrays."""
    offs, total, max_k = {}, 0, 0
    for name, cin, cout, _ in plan:
        offs[name] = total
        total += _round8(cout)
        max_k = max(max_k, 9 * _round8(cin))
    return offs, total, max_k


def _padded_size(h, w):
    # zero-bordered padded-flat layout: (h+2)*(w+2) plus 2 slack lanes so every
    # 3x3 tap slice [s : s + h*(w+2)] stays in range.
    return (h + 2) * (w + 2) + 2


def _scratch_plan(n_feats, n_depth):
    """(name, channels, level) of every per-level VMEM activation buffer."""
    bufs = [("feats", n_feats, 0), ("sc0", n_feats, 0),
            ("up0", n_feats, 0), ("dout0", n_feats, 0)]
    for l in range(1, n_depth):
        bufs += [(f"pin{l}", n_feats << (l - 1), l), (f"sc{l}", n_feats << l, l),
                 (f"up{l}", n_feats << l, l), (f"dout{l}", n_feats << l, l)]
    bufs += [(f"pin{n_depth}", n_feats << (n_depth - 1), n_depth),
             ("body", n_feats << n_depth, n_depth)]
    return bufs


# ----------------------------------------------------------------------------
# Exact 0/1 matrices (bf16, built once on host) for the two true re-layouts:
# stride-2 pooling selection and PixelShuffle(2).
# ----------------------------------------------------------------------------
def _pool_matrix(h, w):
    """stride-2 conv-output selection: column q = r*(w+2)+c (r, c even) of the
    level-l conv output -> zero-bordered padded-flat layout of level l+1."""
    wp = w + 2
    ho, wo = h // 2, w // 2
    e = np.zeros((h * wp, _padded_size(ho, wo)), np.float32)
    for r in range(0, h, 2):
        for c in range(0, w, 2):
            e[r * wp + c, (r // 2 + 1) * (wo + 2) + (c // 2 + 1)] = 1.0
    return e


def _pixel_shuffle_matrices(h, w):
    """PixelShuffle(2): group g = 2*i + j of the (permuted) up-conv output at
    low-res (h, w) -> padded-flat layout of the (2h, 2w) level."""
    wp = w + 2
    wph = 2 * w + 2
    e = np.zeros((4, h * wp, _padded_size(2 * h, 2 * w)), np.float32)
    for i in range(2):
        for j in range(2):
            g = 2 * i + j
            for r in range(h):
                for c in range(w):
                    e[g, r * wp + c, (2 * r + i + 1) * wph + (2 * c + j + 1)] = 1.0
    return e


# ----------------------------------------------------------------------------
# Parameters (torch Conv2d layout) and kernel-ready preprocessing
# ----------------------------------------------------------------------------
def init_params(key, n_colors=3, n_feats=8, n_depth=2):
    plan = _layer_plan(n_colors, n_feats, n_depth)
    keys = jax.random.split(key, 2 * len(plan))
    params = {}
    for i, (name, cin, cout, _) in enumerate(plan):
        bound = 1.0 / math.sqrt(cin * 9)
        w = jax.random.uniform(keys[2 * i], (cout, cin, 3, 3), jnp.float32, -bound, bound)
        b = jax.random.uniform(keys[2 * i + 1], (cout,), jnp.float32, -bound, bound)
        params[name] = (w, b)
    return params


def _permute_upsampler(w, b):
    """Reorder the Upsampler conv output channels group-major (g = 2*i + j first)
    so each PixelShuffle sub-plane is a contiguous channel slice in the kernel.
    torch PixelShuffle: input channel c*4 + 2*i + j -> output channel c at (2h+i, 2w+j)."""
    co = w.shape[0] // 4
    perm = np.array([c * 4 + g for g in range(4) for c in range(co)], np.int32)
    return w[perm], b[perm]


def prepare_inputs(params, n_colors=3, n_feats=8, n_depth=2, H=16, W=16):
    """One-time preprocessing: ONE packed bf16 im2col weight matrix, ONE packed
    f32 bias column, and the bf16 pool / pixel-shuffle 0/1 matrices."""
    plan = _layer_plan(n_colors, n_feats, n_depth)
    offs, total, max_k = _weight_offsets(plan)
    w_pack = np.zeros((total, max_k), np.float32)
    b_pack = np.zeros((total, 1), np.float32)
    for name, cin, cout, _ in plan:
        w, b = params[name]
        w, b = np.asarray(w), np.asarray(b)
        if name.endswith("_up"):
            w, b = _permute_upsampler(w, b)
        cpad = _round8(cin)
        wt = np.transpose(w, (0, 2, 3, 1)).reshape(cout, 9, cin)   # tap-major rows
        if cpad != cin:
            wt = np.pad(wt, ((0, 0), (0, 0), (0, cpad - cin)))
        off = offs[name]
        w_pack[off:off + cout, :9 * cpad] = wt.reshape(cout, 9 * cpad)
        b_pack[off:off + cout, 0] = b
    consts = [jnp.asarray(w_pack, jnp.bfloat16), jnp.asarray(b_pack, jnp.float32)]
    for d in range(n_depth):
        consts.append(jnp.asarray(_pool_matrix(H >> d, W >> d), jnp.bfloat16))
    for d in range(n_depth):
        h, w = H >> (n_depth - d), W >> (n_depth - d)
        consts.append(jnp.asarray(_pixel_shuffle_matrices(h, w), jnp.bfloat16))
    return consts


# ----------------------------------------------------------------------------
# The fused Pallas kernel
# ----------------------------------------------------------------------------
def _make_kernel(n_colors, n_feats, n_depth, H, W):
    plan = _layer_plan(n_colors, n_feats, n_depth)
    layer = {name: (cin, cout, lvl) for name, cin, cout, lvl in plan}
    offs, _, _ = _weight_offsets(plan)
    buf_plan = _scratch_plan(n_feats, n_depth)
    n_consts = 2 + 2 * n_depth

    def hw(lvl):
        return H >> lvl, W >> lvl

    # Buffers that receive mask+offset stores rely on pre-zeroed borders.
    mask_targets = (["feats", "body"]
                    + [f"sc{l}" for l in range(n_depth)]
                    + [f"dout{l}" for l in range(n_depth)])

    def kernel(*args):
        x_ref = args[0]
        w_ref, b_ref = args[1], args[2]
        e_pool = args[3:3 + n_depth]
        e_ps = args[3 + n_depth:3 + 2 * n_depth]
        o_ref = args[1 + n_consts]
        col_ref = args[2 + n_consts]
        buf_refs = args[3 + n_consts:]
        buf = {name: r for (name, _, _), r in zip(buf_plan, buf_refs)}
        buf_ch = {name: c for (name, c, _) in buf_plan}
        buf_lvl = {name: l for (name, _, l) in buf_plan}

        # Refresh the tiny zero borders of every mask-store target (a few KB of
        # bf16 stores per step; replaces the old 330 KB f32 scratch zero-fill).
        # Done unconditionally -> safe with megacore "parallel" grid splitting.
        for name in mask_targets:
            ref, C, lvl = buf[name], buf_ch[name], buf_lvl[name]
            h, w = hw(lvl)
            wp = w + 2
            L = h * wp
            P = _padded_size(h, w)
            ref[0:C, 0:wp + 1] = jnp.zeros((C, wp + 1), jnp.bfloat16)
            ref[0:C, wp + 1 + L:P] = jnp.zeros((C, P - (wp + 1 + L)), jnp.bfloat16)

        def src(ref, ch):
            # tap reader straight from a VMEM activation ref (bf16)
            return (lambda s, L, _r=ref, _c=ch: _r[0:_c, s:s + L], ch)

        x_branch = (lambda s, L: x_ref[0, :, s:s + L], _round8(n_colors))

        def conv(name, branches, relu):
            """3x3 'same' conv over channel-concatenated `branches` at the layer's
            spatial level: 9 bf16 tap copies (ref->scratch) -> one MXU matmul."""
            cin, cout, lvl = layer[name]
            cpad = _round8(cin)
            assert sum(c for _, c in branches) == cpad
            woff = offs[name]
            h, w = hw(lvl)
            wp = w + 2
            L = h * wp
            K = 9 * cpad
            for t in range(9):
                dy, dx = t // 3, t % 3
                s = dy * wp + dx
                row = t * cpad
                for read_tap, bch in branches:
                    col_ref[row:row + bch, :L] = read_tap(s, L)
                    row += bch
            y = jnp.dot(w_ref[woff:woff + cout, :K], col_ref[:K, :L],
                        preferred_element_type=jnp.float32)
            y = y + b_ref[woff:woff + cout]          # (cout, 1) f32, lane broadcast
            if relu:
                y = jnp.maximum(y, 0.0)
            return y                                 # (cout, L) f32, lane-dense

        def store_same(y, name):
            # Same-resolution relayout: VPU validity mask (halo-wrap columns -> 0)
            # plus a store at static lane offset wp+1.  Replaces the old f32 0/1
            # scatter matmul on the MXU.
            ref, lvl = buf[name], buf_lvl[name]
            h, w = hw(lvl)
            wp = w + 2
            L = h * wp
            q = jax.lax.broadcasted_iota(jnp.int32, (1, L), 1)
            ym = jnp.where((q % wp) < w, y, 0.0).astype(jnp.bfloat16)
            ref[0:y.shape[0], wp + 1:wp + 1 + L] = ym

        def store_pool(y, d, name):
            # Stride-2 selection + embed into the next level's padded-flat layout:
            # exact 0/1 matrix, bf16 on the MXU, writes the full buffer (borders=0).
            r = jnp.dot(y.astype(jnp.bfloat16), e_pool[d][...],
                        preferred_element_type=jnp.float32)
            buf[name][0:y.shape[0], :] = r.astype(jnp.bfloat16)

        def store_pixel_shuffle(yup, d, name):
            # PixelShuffle(2): 4 group scatters as one f32 accumulation chain
            # (MRB-friendly on v7x); writes the full buffer incl. zero borders.
            C = yup.shape[0] // 4
            acc = jnp.dot(yup[0:C].astype(jnp.bfloat16), e_ps[d][0],
                          preferred_element_type=jnp.float32)
            for g in range(1, 4):
                acc = acc + jnp.dot(yup[g * C:(g + 1) * C].astype(jnp.bfloat16),
                                    e_ps[d][g], preferred_element_type=jnp.float32)
            buf[name][0:C, :] = acc.astype(jnp.bfloat16)

        # ---- head (input already channel-padded + halo-padded by the wrapper) ----
        store_same(conv("head", [x_branch], relu=False), "feats")

        # ---- encoder: (conv + ReLU) -> skip, then stride-2 'pool' conv ----
        for d in range(n_depth):
            src_name = "feats" if d == 0 else f"pin{d}"
            store_same(conv(f"enc{d}_conv",
                            [src(buf[src_name], layer[f"enc{d}_conv"][0])], relu=True),
                       f"sc{d}")
            store_pool(conv(f"enc{d}_pool",
                            [src(buf[f"sc{d}"], layer[f"enc{d}_pool"][0])], relu=False),
                       d, f"pin{d + 1}")

        # ---- body_exp (bottleneck channel expansion) ----
        store_same(conv("body_exp",
                        [src(buf[f"pin{n_depth}"], layer["body_exp"][0])], relu=False),
                   "body")

        # ---- decoder: DecBlock = Upsampler(conv + PixelShuffle(2)),
        #      torch.cat((sc, up), dim=1) -> conv + ReLU -> base_block ----
        cur = "body"
        for d in range(n_depth):
            lvl_hi = n_depth - d - 1
            yup = conv(f"dec{d}_up", [src(buf[cur], layer[f"dec{d}_up"][0])], relu=False)
            store_pixel_shuffle(yup, d, f"up{lvl_hi}")
            ch = layer[f"dec{d}_conv"][1]
            # cat((sc, up), dim=1): both branches packed into the same im2col
            # columns, sc channels first (matches the torch cat argument order).
            y = conv(f"dec{d}_conv",
                     [src(buf[f"sc{lvl_hi}"], ch), src(buf[f"up{lvl_hi}"], ch)],
                     relu=True)
            store_same(y, f"dout{lvl_hi}")
            cur = f"dout{lvl_hi}"
            # TODO(synk): DecBlock's trailing base_block(...) (e.g. common.WABBlock)
            # is an external, unspecified module; treated as identity here.

        # ---- global skip (fused residual add) + tail ----
        buf["up0"][...] = buf["dout0"][...] + buf["feats"][...]   # up0 is dead: reuse
        o_ref[0] = conv("tail", [src(buf["up0"], n_feats)], relu=False)

    return kernel


# ----------------------------------------------------------------------------
# Public forward: NCHW in, NCHW out, single pallas_call
# ----------------------------------------------------------------------------
def make_forward(n_colors=3, n_feats=8, n_depth=2, H=16, W=16):
    assert H % (1 << n_depth) == 0 and W % (1 << n_depth) == 0
    kernel = _make_kernel(n_colors, n_feats, n_depth, H, W)
    plan = _layer_plan(n_colors, n_feats, n_depth)
    rows = max(9 * _round8(cin) for _, cin, _, _ in plan)
    cols = max((H >> lvl) * ((W >> lvl) + 2) for _, _, _, lvl in plan)
    bufs = _scratch_plan(n_feats, n_depth)
    scratch = [pltpu.VMEM((rows, cols), jnp.bfloat16)]                 # bf16 im2col
    scratch += [pltpu.VMEM((c, _padded_size(H >> l, W >> l)), jnp.bfloat16)
                for _, c, l in bufs]                                   # activations
    cpad_in = _round8(n_colors)
    P0 = _padded_size(H, W)
    L0 = H * (W + 2)

    @jax.jit
    def forward(consts, x_nchw):
        n = x_nchw.shape[0]
        # Tiny one-time XLA prep: pad channels to a multiple of 8 (no im2col pad
        # rows -> no scratch zero-fill), add the 1-pixel zero halo, flatten to the
        # padded-flat lane layout (+2 slack lanes), cast to bf16.
        xp = jnp.pad(x_nchw, ((0, 0), (0, cpad_in - n_colors), (1, 1), (1, 1)))
        xp = xp.reshape(n, cpad_in, (H + 2) * (W + 2))
        xp = jnp.pad(xp, ((0, 0), (0, 0), (0, 2))).astype(jnp.bfloat16)

        in_specs = [pl.BlockSpec((1, cpad_in, P0), lambda i: (i, 0, 0))]
        in_specs += [pl.BlockSpec(a.shape, (lambda i, _d=a.ndim: (0,) * _d))
                     for a in consts]
        out = pl.pallas_call(
            kernel,
            out_shape=jax.ShapeDtypeStruct((n, n_colors, L0), jnp.float32),
            grid=(n,),
            in_specs=in_specs,
            out_specs=pl.BlockSpec((1, n_colors, L0), lambda i: (i, 0, 0)),
            scratch_shapes=scratch,
            compiler_params=pltpu.CompilerParams(
                dimension_semantics=("parallel",),           # 1 image / TC on v7x
                vmem_limit_bytes=32 * 1024 * 1024),
        )(xp, *consts)
        # Lane-dense (288-wide) kernel output -> drop the 2 halo columns -> NCHW.
        return out.reshape(n, n_colors, H, W + 2)[:, :, :, :W]

    return forward


# ----------------------------------------------------------------------------
if __name__ == "__main__":
    key = jax.random.PRNGKey(0)
    pk, xk = jax.random.split(key)

    N, N_COLORS, N_FEATS, N_DEPTH, H, W = 2, 3, 8, 2, 16, 16

    params = init_params(pk, N_COLORS, N_FEATS, N_DEPTH)
    consts = prepare_inputs(params, N_COLORS, N_FEATS, N_DEPTH, H, W)   # one-time prep

    x = jax.random.normal(xk, (N, N_COLORS, H, W), jnp.float32)

    forward = make_forward(N_COLORS, N_FEATS, N_DEPTH, H, W)
    y = forward(consts, x)
    jax.block_until_ready(y)

    assert y.shape == (N, N_COLORS, H, W), y.shape
    assert y.dtype == jnp.float32
    assert bool(jnp.isfinite(y).all())
    print("KERNEL_OK")
</pallas_src>

<mosaic_0001>
module attributes {stable_mosaic.version = 11 : i64} {
  func.func @kernel(%arg0: i32, %arg1: memref<1x8x326xbf16, #tpu.memory_space<vmem>>, %arg2: memref<216x288xbf16, #tpu.memory_space<vmem>>, %arg3: memref<216x1xf32, #tpu.memory_space<vmem>>, %arg4: memref<288x102xbf16, #tpu.memory_space<vmem>>, %arg5: memref<80x38xbf16, #tpu.memory_space<vmem>>, %arg6: memref<4x24x102xbf16, #tpu.memory_space<vmem>>, %arg7: memref<4x80x326xbf16, #tpu.memory_space<vmem>>, %arg8: memref<1x3x288xf32, #tpu.memory_space<vmem>>, %arg9: memref<288x288xbf16, #tpu.memory_space<vmem>>, %arg10: memref<8x326xbf16, #tpu.memory_space<vmem>>, %arg11: memref<8x326xbf16, #tpu.memory_space<vmem>>, %arg12: memref<8x326xbf16, #tpu.memory_space<vmem>>, %arg13: memref<8x326xbf16, #tpu.memory_space<vmem>>, %arg14: memref<8x102xbf16, #tpu.memory_space<vmem>>, %arg15: memref<16x102xbf16, #tpu.memory_space<vmem>>, %arg16: memref<16x102xbf16, #tpu.memory_space<vmem>>, %arg17: memref<16x102xbf16, #tpu.memory_space<vmem>>, %arg18: memref<16x38xbf16, #tpu.memory_space<vmem>>, %arg19: memref<32x38xbf16, #tpu.memory_space<vmem>>) attributes {dimension_semantics = [#tpu.dimension_semantics<parallel>], iteration_bounds = array<i64: 2>, scalar_prefetch = 0 : i64, scratch_operands = 11 : i64, tpu.core_type = #tpu.core_type<tc>, window_params = [{transform_indices = @transform_0, window_bounds = array<i64: 1, 8, 326>}, {pipeline_mode = #tpu.pipeline_mode<synchronous>, transform_indices = @transform_1, window_bounds = array<i64: 216, 288>}, {pipeline_mode = #tpu.pipeline_mode<synchronous>, transform_indices = @transform_2, window_bounds = array<i64: 216, 1>}, {pipeline_mode = #tpu.pipeline_mode<synchronous>, transform_indices = @transform_3, window_bounds = array<i64: 288, 102>}, {pipeline_mode = #tpu.pipeline_mode<synchronous>, transform_indices = @transform_4, window_bounds = array<i64: 80, 38>}, {pipeline_mode = #tpu.pipeline_mode<synchronous>, transform_indices = @transform_5, window_bounds = array<i64: 4, 24, 102>}, {pipeline_mode = #tpu.pipeline_mode<synchronous>, transform_indices = @transform_6, window_bounds = array<i64: 4, 80, 326>}, {transform_indices = @transform_7, window_bounds = array<i64: 1, 3, 288>}]} {
    %cst = arith.constant 0.000000e+00 : bf16
    %0 = vector.broadcast %cst : bf16 to vector<8x19xbf16>
    %c0 = arith.constant 0 : index
    %c0_0 = arith.constant 0 : index
    %1 = vector.load %arg10[%c0, %c0_0] : memref<8x326xbf16, #tpu.memory_space<vmem>>, vector<8x19xbf16>
    tpu.vector_store %arg10[%c0, %c0_0], %0 {strides = array<i32>} : memref<8x326xbf16, #tpu.memory_space<vmem>>, vector<8x19xbf16>,
    %cst_1 = arith.constant 0.000000e+00 : bf16
    %2 = vector.broadcast %cst_1 : bf16 to vector<8x19xbf16>
    %c0_2 = arith.constant 0 : index
    %c307 = arith.constant 307 : index
    %3 = vector.load %arg10[%c0_2, %c307] : memref<8x326xbf16, #tpu.memory_space<vmem>>, vector<8x19xbf16>
    tpu.vector_store %arg10[%c0_2, %c307], %2 {strides = array<i32>} : memref<8x326xbf16, #tpu.memory_space<vmem>>, vector<8x19xbf16>,
    %cst_3 = arith.constant 0.000000e+00 : bf16
    %4 = vector.broadcast %cst_3 : bf16 to vector<32x7xbf16>
    %c0_4 = arith.constant 0 : index
    %c0_5 = arith.constant 0 : index
    %5 = vector.load %arg19[%c0_4, %c0_5] : memref<32x38xbf16, #tpu.memory_space<vmem>>, vector<32x7xbf16>
    tpu.vector_store %arg19[%c0_4, %c0_5], %4 {strides = array<i32>} : memref<32x38xbf16, #tpu.memory_space<vmem>>, vector<32x7xbf16>,
    %cst_6 = arith.constant 0.000000e+00 : bf16
    %6 = vector.broadcast %cst_6 : bf16 to vector<32x7xbf16>
    %c0_7 = arith.constant 0 : index
    %c31 = arith.constant 31 : index
    %7 = vector.load %arg19[%c0_7, %c31] : memref<32x38xbf16, #tpu.memory_space<vmem>>, vector<32x7xbf16>
    tpu.vector_store %arg19[%c0_7, %c31], %6 {strides = array<i32>} : memref<32x38xbf16, #tpu.memory_space<vmem>>, vector<32x7xbf16>,
    %cst_8 = arith.constant 0.000000e+00 : bf16
    %8 = vector.broadcast %cst_8 : bf16 to vector<8x19xbf16>
    %c0_9 = arith.constant 0 : index
    %c0_10 = arith.constant 0 : index
    %9 = vector.load %arg11[%c0_9, %c0_10] : memref<8x326xbf16, #tpu.memory_space<vmem>>, vector<8x19xbf16>
    tpu.vector_store %arg11[%c0_9, %c0_10], %8 {strides = array<i32>} : memref<8x326xbf16, #tpu.memory_space<vmem>>, vector<8x19xbf16>,
    %cst_11 = arith.constant 0.000000e+00 : bf16
    %10 = vector.broadcast %cst_11 : bf16 to vector<8x19xbf16>
    %c0_12 = arith.constant 0 : index
    %c307_13 = arith.constant 307 : index
    %11 = vector.load %arg11[%c0_12, %c307_13] : memref<8x326xbf16, #tpu.memory_space<vmem>>, vector<8x19xbf16>
    tpu.vector_store %arg11[%c0_12, %c307_13], %10 {strides = array<i32>} : memref<8x326xbf16, #tpu.memory_space<vmem>>, vector<8x19xbf16>,
    %cst_14 = arith.constant 0.000000e+00 : bf16
    %12 = vector.broadcast %cst_14 : bf16 to vector<16x11xbf16>
    %c0_15 = arith.constant 0 : index
    %c0_16 = arith.constant 0 : index
    %13 = vector.load %arg15[%c0_15, %c0_16] : memref<16x102xbf16, #tpu.memory_space<vmem>>, vector<16x11xbf16>
    tpu.vector_store %arg15[%c0_15, %c0_16], %12 {strides = array<i32>} : memref<16x102xbf16, #tpu.memory_space<vmem>>, vector<16x11xbf16>,
    %cst_17 = arith.constant 0.000000e+00 : bf16
    %14 = vector.broadcast %cst_17 : bf16 to vector<16x11xbf16>
    %c0_18 = arith.constant 0 : index
    %c91 = arith.constant 91 : index
    %15 = vector.load %arg15[%c0_18, %c91] : memref<16x102xbf16, #tpu.memory_space<vmem>>, vector<16x11xbf16>
    tpu.vector_store %arg15[%c0_18, %c91], %14 {strides = array<i32>} : memref<16x102xbf16, #tpu.memory_space<vmem>>, vector<16x11xbf16>,
    %cst_19 = arith.constant 0.000000e+00 : bf16
    %16 = vector.broadcast %cst_19 : bf16 to vector<8x19xbf16>
    %c0_20 = arith.constant 0 : index
    %c0_21 = arith.constant 0 : index
    %17 = vector.load %arg13[%c0_20, %c0_21] : memref<8x326xbf16, #tpu.memory_space<vmem>>, vector<8x19xbf16>
    tpu.vector_store %arg13[%c0_20, %c0_21], %16 {strides = array<i32>} : memref<8x326xbf16, #tpu.memory_space<vmem>>, vector<8x19xbf16>,
    %cst_22 = arith.constant 0.000000e+00 : bf16
    %18 = vector.broadcast %cst_22 : bf16 to vector<8x19xbf16>
    %c0_23 = arith.constant 0 : index
    %c307_24 = arith.constant 307 : index
    %19 = vector.load %arg13[%c0_23, %c307_24] : memref<8x326xbf16, #tpu.memory_space<vmem>>, vector<8x19xbf16>
    tpu.vector_store %arg13[%c0_23, %c307_24], %18 {strides = array<i32>} : memref<8x326xbf16, #tpu.memory_space<vmem>>, vector<8x19xbf16>,
    %cst_25 = arith.constant 0.000000e+00 : bf16
    %20 = vector.broadcast %cst_25 : bf16 to vector<16x11xbf16>
    %c0_26 = arith.constant 0 : index
    %c0_27 = arith.constant 0 : index
    %21 = vector.load %arg17[%c0_26, %c0_27] : memref<16x102xbf16, #tpu.memory_space<vmem>>, vector<16x11xbf16>
    tpu.vector_store %arg17[%c0_26, %c0_27], %20 {strides = array<i32>} : memref<16x102xbf16, #tpu.memory_space<vmem>>, vector<16x11xbf16>,
    %cst_28 = arith.constant 0.000000e+00 : bf16
    %22 = vector.broadcast %cst_28 : bf16 to vector<16x11xbf16>
    %c0_29 = arith.constant 0 : index
    %c91_30 = arith.constant 91 : index
    %23 = vector.load %arg17[%c0_29, %c91_30] : memref<16x102xbf16, #tpu.memory_space<vmem>>, vector<16x11xbf16>
    tpu.vector_store %arg17[%c0_29, %c91_30], %22 {strides = array<i32>} : memref<16x102xbf16, #tpu.memory_space<vmem>>, vector<16x11xbf16>,
    %c0_31 = arith.constant 0 : index
    %c0_32 = arith.constant 0 : index
    %c0_33 = arith.constant 0 : index
    %24 = vector.load %arg1[%c0_31, %c0_32, %c0_33] : memref<1x8x326xbf16, #tpu.memory_space<vmem>>, vector<1x8x288xbf16>
    %25 = vector.shape_cast %24 : vector<1x8x288xbf16> to vector<8x288xbf16>
    %c0_34 = arith.constant 0 : index
    %c0_35 = arith.constant 0 : index
    %26 = vector.load %arg9[%c0_34, %c0_35] : memref<288x288xbf16, #tpu.memory_space<vmem>>, vector<8x288xbf16>
    tpu.vector_store %arg9[%c0_34, %c0_35], %25 {strides = array<i32>} : memref<288x288xbf16, #tpu.memory_space<vmem>>, vector<8x288xbf16>,
    %c0_36 = arith.constant 0 : index
    %c0_37 = arith.constant 0 : index
    %c1 = arith.constant 1 : index
    %27 = vector.load %arg1[%c0_36, %c0_37, %c1] : memref<1x8x326xbf16, #tpu.memory_space<vmem>>, vector<1x8x288xbf16>
    %28 = vector.shape_cast %27 : vector<1x8x288xbf16> to vector<8x288xbf16>
    %c8 = arith.constant 8 : index
    %c0_38 = arith.constant 0 : index
    %29 = vector.load %arg9[%c8, %c0_38] : memref<288x288xbf16, #tpu.memory_space<vmem>>, vector<8x288xbf16>
    tpu.vector_store %arg9[%c8, %c0_38], %28 {strides = array<i32>} : memref<288x288xbf16, #tpu.memory_space<vmem>>, vector<8x288xbf16>,
    %c0_39 = arith.constant 0 : index
    %c0_40 = arith.constant 0 : index
    %c2 = arith.constant 2 : index
    %30 = vector.load %arg1[%c0_39, %c0_40, %c2] : memref<1x8x326xbf16, #tpu.memory_space<vmem>>, vector<1x8x288xbf16>
    %31 = vector.shape_cast %30 : vector<1x8x288xbf16> to vector<8x288xbf16>
    %c16 = arith.constant 16 : index
    %c0_41 = arith.constant 0 : index
    %32 = vector.load %arg9[%c16, %c0_41] : memref<288x288xbf16, #tpu.memory_space<vmem>>, vector<8x288xbf16>
    tpu.vector_store %arg9[%c16, %c0_41], %31 {strides = array<i32>} : memref<288x288xbf16, #tpu.memory_space<vmem>>, vector<8x288xbf16>,
    %c0_42 = arith.constant 0 : index
    %c0_43 = arith.constant 0 : index
    %c18 = arith.constant 18 : index
    %33 = vector.load %arg1[%c0_42, %c0_43, %c18] : memref<1x8x326xbf16, #tpu.memory_space<vmem>>, vector<1x8x288xbf16>
    %34 = vector.shape_cast %33 : vector<1x8x288xbf16> to vector<8x288xbf16>
    %c24 = arith.constant 24 : index
    %c0_44 = arith.constant 0 : index
    %35 = vector.load %arg9[%c24, %c0_44] : memref<288x288xbf16, #tpu.memory_space<vmem>>, vector<8x288xbf16>
    tpu.vector_store %arg9[%c24, %c0_44], %34 {strides = array<i32>} : memref<288x288xbf16, #tpu.memory_space<vmem>>, vector<8x288xbf16>,
    %c0_45 = arith.constant 0 : index
    %c0_46 = arith.constant 0 : index
    %c19 = arith.constant 19 : index
    %36 = vector.load %arg1[%c0_45, %c0_46, %c19] : memref<1x8x326xbf16, #tpu.memory_space<vmem>>, vector<1x8x288xbf16>
    %37 = vector.shape_cast %36 : vector<1x8x288xbf16> to vector<8x288xbf16>
    %c32 = arith.constant 32 : index
    %c0_47 = arith.constant 0 : index
    %38 = vector.load %arg9[%c32, %c0_47] : memref<288x288xbf16, #tpu.memory_space<vmem>>, vector<8x288xbf16>
    tpu.vector_store %arg9[%c32, %c0_47], %37 {strides = array<i32>} : memref<288x288xbf16, #tpu.memory_space<vmem>>, vector<8x288xbf16>,
    %c0_48 = arith.constant 0 : index
    %c0_49 = arith.constant 0 : index
    %c20 = arith.constant 20 : index
    %39 = vector.load %arg1[%c0_48, %c0_49, %c20] : memref<1x8x326xbf16, #tpu.memory_space<vmem>>, vector<1x8x288xbf16>
    %40 = vector.shape_cast %39 : vector<1x8x288xbf16> to vector<8x288xbf16>
    %c40 = arith.constant 40 : index
    %c0_50 = arith.constant 0 : index
    %41 = vector.load %arg9[%c40, %c0_50] : memref<288x288xbf16, #tpu.memory_space<vmem>>, vector<8x288xbf16>
    tpu.vector_store %arg9[%c40, %c0_50], %40 {strides = array<i32>} : memref<288x288xbf16, #tpu.memory_space<vmem>>, vector<8x288xbf16>,
    %c0_51 = arith.constant 0 : index
    %c0_52 = arith.constant 0 : index
    %c36 = arith.constant 36 : index
    %42 = vector.load %arg1[%c0_51, %c0_52, %c36] : memref<1x8x326xbf16, #tpu.memory_space<vmem>>, vector<1x8x288xbf16>
    %43 = vector.shape_cast %42 : vector<1x8x288xbf16> to vector<8x288xbf16>
    %c48 = arith.constant 48 : index
    %c0_53 = arith.constant 0 : index
    %44 = vector.load %arg9[%c48, %c0_53] : memref<288x288xbf16, #tpu.memory_space<vmem>>, vector<8x288xbf16>
    tpu.vector_store %arg9[%c48, %c0_53], %43 {strides = array<i32>} : memref<288x288xbf16, #tpu.memory_space<vmem>>, vector<8x288xbf16>,
    %c0_54 = arith.constant 0 : index
    %c0_55 = arith.constant 0 : index
    %c37 = arith.constant 37 : index
    %45 = vector.load %arg1[%c0_54, %c0_55, %c37] : memref<1x8x326xbf16, #tpu.memory_space<vmem>>, vector<1x8x288xbf16>
    %46 = vector.shape_cast %45 : vector<1x8x288xbf16> to vector<8x288xbf16>
    %c56 = arith.constant 56 : index
    %c0_56 = arith.constant 0 : index
    %47 = vector.load %arg9[%c56, %c0_56] : memref<288x288xbf16, #tpu.memory_space<vmem>>, vector<8x288xbf16>
    tpu.vector_store %arg9[%c56, %c0_56], %46 {strides = array<i32>} : memref<288x288xbf16, #tpu.memory_space<vmem>>, vector<8x288xbf16>,
    %c0_57 = arith.constant 0 : index
    %c0_58 = arith.constant 0 : index
    %c38 = arith.constant 38 : index
    %48 = vector.load %arg1[%c0_57, %c0_58, %c38] : memref<1x8x326xbf16, #tpu.memory_space<vmem>>, vector<1x8x288xbf16>
    %49 = vector.shape_cast %48 : vector<1x8x288xbf16> to vector<8x288xbf16>
    %c64 = arith.constant 64 : index
    %c0_59 = arith.constant 0 : index
    %50 = vector.load %arg9[%c64, %c0_59] : memref<288x288xbf16, #tpu.memory_space<vmem>>, vector<8x288xbf16>
    tpu.vector_store %arg9[%c64, %c0_59], %49 {strides = array<i32>} : memref<288x288xbf16, #tpu.memory_space<vmem>>, vector<8x288xbf16>,
    %c0_60 = arith.constant 0 : index
    %c0_61 = arith.constant 0 : index
    %51 = vector.load %arg2[%c0_60, %c0_61] : memref<216x288xbf16, #tpu.memory_space<vmem>>, vector<8x72xbf16>
    %c0_62 = arith.constant 0 : index
    %c0_63 = arith.constant 0 : index
    %52 = vector.load %arg9[%c0_62, %c0_63] : memref<288x288xbf16, #tpu.memory_space<vmem>>, vector<72x288xbf16>
    %cst_64 = arith.constant dense<0.000000e+00> : vector<8x288xf32>
    %53 = tpu.matmul %51, %52, %cst_64 {dimension_numbers = #tpu.dot_dimension_numbers<[1], [0], [0], [1], [0, 0, 1, 1], [], []>} : vector<8x72xbf16>, vector<72x288xbf16>, vector<8x288xf32> -> vector<8x288xf32>
    %c0_65 = arith.constant 0 : index
    %c0_66 = arith.constant 0 : index
    %54 = vector.load %arg3[%c0_65, %c0_66] : memref<216x1xf32, #tpu.memory_space<vmem>>, vector<8x1xf32>
    %55 = vector.broadcast %54 : vector<8x1xf32> to vector<8x288xf32>
    %56 = arith.addf %53, %55 : vector<8x288xf32>
    %57 = tpu.iota {dimensions = array<i32: 1>} : vector<1x288xi32>
    %c18_i32 = arith.constant 18 : i32
    %c0_i32 = arith.constant 0 : i32
    %58 = arith.cmpi eq, %c18_i32, %c0_i32 : i32
    %c1_i32 = arith.constant 1 : i32
    %59 = arith.select %58, %c1_i32, %c18_i32 : i32
    %60 = vector.broadcast %59 : i32 to vector<1x288xi32>
    %61 = arith.remsi %57, %60 : vector<1x288xi32>
    %c0_i32_67 = arith.constant 0 : i32
    %62 = vector.broadcast %c0_i32_67 : i32 to vector<1x288xi32>
    %63 = arith.cmpi ne, %61, %62 : vector<1x288xi32>
    %c0_i32_68 = arith.constant 0 : i32
    %64 = vector.broadcast %c0_i32_68 : i32 to vector<1x288xi32>
    %65 = arith.cmpi slt, %61, %64 : vector<1x288xi32>
    %c0_i32_69 = arith.constant 0 : i32
    %66 = arith.cmpi slt, %59, %c0_i32_69 : i32
    %67 = vector.broadcast %66 : i1 to vector<1x288xi1>
    %68 = vector.broadcast %67 : vector<1x288xi1> to vector<1x288xi1>
    %69 = arith.xori %65, %68 : vector<1x288xi1>
    %70 = arith.andi %69, %63 : vector<1x288xi1>
    %71 = vector.broadcast %59 : i32 to vector<1x288xi32>
    %72 = arith.addi %61, %71 : vector<1x288xi32>
    %73 = arith.select %70, %72, %61 : vector<1x288xi1>, vector<1x288xi32>
    %c16_i32 = arith.constant 16 : i32
    %74 = vector.broadcast %c16_i32 : i32 to vector<1x288xi32>
    %75 = arith.cmpi slt, %73, %74 : vector<1x288xi32>
    %cst_70 = arith.constant 0.000000e+00 : f32
    %76 = vector.shape_cast %75 : vector<1x288xi1> to vector<1x288xi1>
    %77 = vector.broadcast %76 : vector<1x288xi1> to vector<8x288xi1>
    %78 = vector.broadcast %cst_70 : f32 to vector<8x288xf32>
    %79 = arith.select %77, %56, %78 : vector<8x288xi1>, vector<8x288xf32>
    %80 = arith.truncf %79 : vector<8x288xf32> to vector<8x288xbf16>
    %c0_71 = arith.constant 0 : index
    %c19_72 = arith.constant 19 : index
    %81 = vector.load %arg10[%c0_71, %c19_72] : memref<8x326xbf16, #tpu.memory_space<vmem>>, vector<8x288xbf16>
    tpu.vector_store %arg10[%c0_71, %c19_72], %80 {strides = array<i32>} : memref<8x326xbf16, #tpu.memory_space<vmem>>, vector<8x288xbf16>,
    %c0_73 = arith.constant 0 : index
    %c0_74 = arith.constant 0 : index
    %82 = vector.load %arg10[%c0_73, %c0_74] : memref<8x326xbf16, #tpu.memory_space<vmem>>, vector<8x288xbf16>
    %c0_75 = arith.constant 0 : index
    %c0_76 = arith.constant 0 : index
    %83 = vector.load %arg9[%c0_75, %c0_76] : memref<288x288xbf16, #tpu.memory_space<vmem>>, vector<8x288xbf16>
    tpu.vector_store %arg9[%c0_75, %c0_76], %82 {strides = array<i32>} : memref<288x288xbf16, #tpu.memory_space<vmem>>, vector<8x288xbf16>,
    %c0_77 = arith.constant 0 : index
    %c1_78 = arith.constant 1 : index
    %84 = vector.load %arg10[%c0_77, %c1_78] : memref<8x326xbf16, #tpu.memory_space<vmem>>, vector<8x288xbf16>
    %c8_79 = arith.constant 8 : index
    %c0_80 = arith.constant 0 : index
    %85 = vector.load %arg9[%c8_79, %c0_80] : memref<288x288xbf16, #tpu.memory_space<vmem>>, vector<8x288xbf16>
    tpu.vector_store %arg9[%c8_79, %c0_80], %84 {strides = array<i32>} : memref<288x288xbf16, #tpu.memory_space<vmem>>, vector<8x288xbf16>,
    %c0_81 = arith.constant 0 : index
    %c2_82 = arith.constant 2 : index
    %86 = vector.load %arg10[%c0_81, %c2_82] : memref<8x326xbf16, #tpu.memory_space<vmem>>, vector<8x288xbf16>
    %c16_83 = arith.constant 16 : index
    %c0_84 = arith.constant 0 : index
    %87 = vector.load %arg9[%c16_83, %c0_84] : memref<288x288xbf16, #tpu.memory_space<vmem>>, vector<8x288xbf16>
    tpu.vector_store %arg9[%c16_83, %c0_84], %86 {strides = array<i32>} : memref<288x288xbf16, #tpu.memory_space<vmem>>, vector<8x288xbf16>,
    %c0_85 = arith.constant 0 : index
    %c18_86 = arith.constant 18 : index
    %88 = vector.load %arg10[%c0_85, %c18_86] : memref<8x326xbf16, #tpu.memory_space<vmem>>, vector<8x288xbf16>
    %c24_87 = arith.constant 24 : index
    %c0_88 = arith.constant 0 : index
    %89 = vector.load %arg9[%c24_87, %c0_88] : memref<288x288xbf16, #tpu.memory_space<vmem>>, vector<8x288xbf16>
    tpu.vector_store %arg9[%c24_87, %c0_88], %88 {strides = array<i32>} : memref<288x288xbf16, #tpu.memory_space<vmem>>, vector<8x288xbf16>,
    %c0_89 = arith.constant 0 : index
    %c19_90 = arith.constant 19 : index
    %90 = vector.load %arg10[%c0_89, %c19_90] : memref<8x326xbf16, #tpu.memory_space<vmem>>, vector<8x288xbf16>
    %c32_91 = arith.constant 32 : index
    %c0_92 = arith.constant 0 : index
    %91 = vector.load %arg9[%c32_91, %c0_92] : memref<288x288xbf16, #tpu.memory_space<vmem>>, vector<8x288xbf16>
    tpu.vector_store %arg9[%c32_91, %c0_92], %90 {strides = array<i32>} : memref<288x288xbf16, #tpu.memory_space<vmem>>, vector<8x288xbf16>,
    %c0_93 = arith.constant 0 : index
    %c20_94 = arith.constant 20 : index
    %92 = vector.load %arg10[%c0_93, %c20_94] : memref<8x326xbf16, #tpu.memory_space<vmem>>, vector<8x288xbf16>
    %c40_95 = arith.constant 40 : index
    %c0_96 = arith.constant 0 : index
    %93 = vector.load %arg9[%c40_95, %c0_96] : memref<288x288xbf16, #tpu.memory_space<vmem>>, vector<8x288xbf16>
    tpu.vector_store %arg9[%c40_95, %c0_96], %92 {strides = array<i32>} : memref<288x288xbf16, #tpu.memory_space<vmem>>, vector<8x288xbf16>,
    %c0_97 = arith.constant 0 : index
    %c36_98 = arith.constant 36 : index
    %94 = vector.load %arg10[%c0_97, %c36_98] : memref<8x326xbf16, #tpu.memory_space<vmem>>, vector<8x288xbf16>
    %c48_99 = arith.constant 48 : index
    %c0_100 = arith.constant 0 : index
    %95 = vector.load %arg9[%c48_99, %c0_100] : memref<288x288xbf16, #tpu.memory_space<vmem>>, vector<8x288xbf16>
    tpu.vector_store %arg9[%c48_99, %c0_100], %94 {strides = array<i32>} : memref<288x288xbf16, #tpu.memory_space<vmem>>, vector<8x288xbf16>,
    %c0_101 = arith.constant 0 : index
    %c37_102 = arith.constant 37 : index
    %96 = vector.load %arg10[%c0_101, %c37_102] : memref<8x326xbf16, #tpu.memory_space<vmem>>, vector<8x288xbf16>
    %c56_103 = arith.constant 56 : index
    %c0_104 = arith.constant 0 : index
    %97 = vector.load %arg9[%c56_103, %c0_104] : memref<288x288xbf16, #tpu.memory_space<vmem>>, vector<8x288xbf16>
    tpu.vector_store %arg9[%c56_103, %c0_104], %96 {strides = array<i32>} : memref<288x288xbf16, #tpu.memory_space<vmem>>, vector<8x288xbf16>,
    %c0_105 = arith.constant 0 : index
    %c38_106 = arith.constant 38 : index
    %98 = vector.load %arg10[%c0_105, %c38_106] : memref<8x326xbf16, #tpu.memory_space<vmem>>, vector<8x288xbf16>
    %c64_107 = arith.constant 64 : index
    %c0_108 = arith.constant 0 : index
    %99 = vector.load %arg9[%c64_107, %c0_108] : memref<288x288xbf16, #tpu.memory_space<vmem>>, vector<8x288xbf16>
    tpu.vector_store %arg9[%c64_107, %c0_108], %98 {strides = array<i32>} : memref<288x288xbf16, #tpu.memory_space<vmem>>, vector<8x288xbf16>,
    %c8_109 = arith.constant 8 : index
    %c0_110 = arith.constant 0 : index
    %100 = vector.load %arg2[%c8_109, %c0_110] : memref<216x288xbf16, #tpu.memory_space<vmem>>, vector<8x72xbf16>
    %c0_111 = arith.constant 0 : index
    %c0_112 = arith.constant 0 : index
    %101 = vector.load %arg9[%c0_111, %c0_112] : memref<288x288xbf16, #tpu.memory_space<vmem>>, vector<72x288xbf16>
    %cst_113 = arith.constant dense<0.000000e+00> : vector<8x288xf32>
    %102 = tpu.matmul %100, %101, %cst_113 {dimension_numbers = #tpu.dot_dimension_numbers<[1], [0], [0], [1], [0, 0, 1, 1], [], []>} : vector<8x72xbf16>, vector<72x288xbf16>, vector<8x288xf32> -> vector<8x288xf32>
    %c8_114 = arith.constant 8 : index
    %c0_115 = arith.constant 0 : index
    %103 = vector.load %arg3[%c8_114, %c0_115] : memref<216x1xf32, #tpu.memory_space<vmem>>, vector<8x1xf32>
    %104 = vector.broadcast %103 : vector<8x1xf32> to vector<8x288xf32>
    %105 = arith.addf %102, %104 : vector<8x288xf32>
    %cst_116 = arith.constant 0.000000e+00 : f32
    %106 = vector.broadcast %cst_116 : f32 to vector<8x288xf32>
    %107 = arith.maximumf %105, %106 : vector<8x288xf32>
    %108 = tpu.iota {dimensions = array<i32: 1>} : vector<1x288xi32>
    %c18_i32_117 = arith.constant 18 : i32
    %c0_i32_118 = arith.constant 0 : i32
    %109 = arith.cmpi eq, %c18_i32_117, %c0_i32_118 : i32
    %c1_i32_119 = arith.constant 1 : i32
    %110 = arith.select %109, %c1_i32_119, %c18_i32_117 : i32
    %111 = vector.broadcast %110 : i32 to vector<1x288xi32>
    %112 = arith.remsi %108, %111 : vector<1x288xi32>
    %c0_i32_120 = arith.constant 0 : i32
    %113 = vector.broadcast %c0_i32_120 : i32 to vector<1x288xi32>
    %114 = arith.cmpi ne, %112, %113 : vector<1x288xi32>
    %c0_i32_121 = arith.constant 0 : i32
    %115 = vector.broadcast %c0_i32_121 : i32 to vector<1x288xi32>
    %116 = arith.cmpi slt, %112, %115 : vector<1x288xi32>
    %c0_i32_122 = arith.constant 0 : i32
    %117 = arith.cmpi slt, %110, %c0_i32_122 : i32
    %118 = vector.broadcast %117 : i1 to vector<1x288xi1>
    %119 = vector.broadcast %118 : vector<1x288xi1> to vector<1x288xi1>
    %120 = arith.xori %116, %119 : vector<1x288xi1>
    %121 = arith.andi %120, %114 : vector<1x288xi1>
    %122 = vector.broadcast %110 : i32 to vector<1x288xi32>
    %123 = arith.addi %112, %122 : vector<1x288xi32>
    %124 = arith.select %121, %123, %112 : vector<1x288xi1>, vector<1x288xi32>
    %c16_i32_123 = arith.constant 16 : i32
    %125 = vector.broadcast %c16_i32_123 : i32 to vector<1x288xi32>
    %126 = arith.cmpi slt, %124, %125 : vector<1x288xi32>
    %cst_124 = arith.constant 0.000000e+00 : f32
    %127 = vector.shape_cast %126 : vector<1x288xi1> to vector<1x288xi1>
    %128 = vector.broadcast %127 : vector<1x288xi1> to vector<8x288xi1>
    %129 = vector.broadcast %cst_124 : f32 to vector<8x288xf32>
    %130 = arith.select %128, %107, %129 : vector<8x288xi1>, vector<8x288xf32>
    %131 = arith.truncf %130 : vector<8x288xf32> to vector<8x288xbf16>
    %c0_125 = arith.constant 0 : index
    %c19_126 = arith.constant 19 : index
    %132 = vector.load %arg11[%c0_125, %c19_126] : memref<8x326xbf16, #tpu.memory_space<vmem>>, vector<8x288xbf16>
    tpu.vector_store %arg11[%c0_125, %c19_126], %131 {strides = array<i32>} : memref<8x326xbf16, #tpu.memory_space<vmem>>, vector<8x288xbf16>,
    %c0_127 = arith.constant 0 : index
    %c0_128 = arith.constant 0 : index
    %133 = vector.load %arg11[%c0_127, %c0_128] : memref<8x326xbf16, #tpu.memory_space<vmem>>, vector<8x288xbf16>
    %c0_129 = arith.constant 0 : index
    %c0_130 = arith.constant 0 : index
    %134 = vector.load %arg9[%c0_129, %c0_130] : memref<288x288xbf16, #tpu.memory_space<vmem>>, vector<8x288xbf16>
    tpu.vector_store %arg9[%c0_129, %c0_130], %133 {strides = array<i32>} : memref<288x288xbf16, #tpu.memory_space<vmem>>, vector<8x288xbf16>,
    %c0_131 = arith.constant 0 : index
    %c1_132 = arith.constant 1 : index
    %135 = vector.load %arg11[%c0_131, %c1_132] : memref<8x326xbf16, #tpu.memory_space<vmem>>, vector<8x288xbf16>
    %c8_133 = arith.constant 8 : index
    %c0_134 = arith.constant 0 : index
    %136 = vector.load %arg9[%c8_133, %c0_134] : memref<288x288xbf16, #tpu.memory_space<vmem>>, vector<8x288xbf16>
    tpu.vector_store %arg9[%c8_133, %c0_134], %135 {strides = array<i32>} : memref<288x288xbf16, #tpu.memory_space<vmem>>, vector<8x288xbf16>,
    %c0_135 = arith.constant 0 : index
    %c2_136 = arith.constant 2 : index
    %137 = vector.load %arg11[%c0_135, %c2_136] : memref<8x326xbf16, #tpu.memory_space<vmem>>, vector<8x288xbf16>
    %c16_137 = arith.constant 16 : index
    %c0_138 = arith.constant 0 : index
    %138 = vector.load %arg9[%c16_137, %c0_138] : memref<288x288xbf16, #tpu.memory_space<vmem>>, vector<8x288xbf16>
    tpu.vector_store %arg9[%c16_137, %c0_138], %137 {strides = array<i32>} : memref<288x288xbf16, #tpu.memory_space<vmem>>, vector<8x288xbf16>,
    %c0_139 = arith.constant 0 : index
    %c18_140 = arith.constant 18 : index
    %139 = vector.load %arg11[%c0_139, %c18_140] : memref<8x326xbf16, #tpu.memory_space<vmem>>, vector<8x288xbf16>
    %c24_141 = arith.constant 24 : index
    %c0_142 = arith.constant 0 : index
    %140 = vector.load %arg9[%c24_141, %c0_142] : memref<288x288xbf16, #tpu.memory_space<vmem>>, vector<8x288xbf16>
    tpu.vector_store %arg9[%c24_141, %c0_142], %139 {strides = array<i32>} : memref<288x288xbf16, #tpu.memory_space<vmem>>, vector<8x288xbf16>,
    %c0_143 = arith.constant 0 : index
    %c19_144 = arith.constant 19 : index
    %141 = vector.load %arg11[%c0_143, %c19_144] : memref<8x326xbf16, #tpu.memory_space<vmem>>, vector<8x288xbf16>
    %c32_145 = arith.constant 32 : index
    %c0_146 = arith.constant 0 : index
    %142 = vector.load %arg9[%c32_145, %c0_146] : memref<288x288xbf16, #tpu.memory_space<vmem>>, vector<8x288xbf16>
    tpu.vector_store %arg9[%c32_145, %c0_146], %141 {strides = array<i32>} : memref<288x288xbf16, #tpu.memory_space<vmem>>, vector<8x288xbf16>,
    %c0_147 = arith.constant 0 : index
    %c20_148 = arith.constant 20 : index
    %143 = vector.load %arg11[%c0_147, %c20_148] : memref<8x326xbf16, #tpu.memory_space<vmem>>, vector<8x288xbf16>
    %c40_149 = arith.constant 40 : index
    %c0_150 = arith.constant 0 : index
    %144 = vector.load %arg9[%c40_149, %c0_150] : memref<288x288xbf16, #tpu.memory_space<vmem>>, vector<8x288xbf16>
    tpu.vector_store %arg9[%c40_149, %c0_150], %143 {strides = array<i32>} : memref<288x288xbf16, #tpu.memory_space<vmem>>, vector<8x288xbf16>,
    %c0_151 = arith.constant 0 : index
    %c36_152 = arith.constant 36 : index
    %145 = vector.load %arg11[%c0_151, %c36_152] : memref<8x326xbf16, #tpu.memory_space<vmem>>, vector<8x288xbf16>
    %c48_153 = arith.constant 48 : index
    %c0_154 = arith.constant 0 : index
    %146 = vector.load %arg9[%c48_153, %c0_154] : memref<288x288xbf16, #tpu.memory_space<vmem>>, vector<8x288xbf16>
    tpu.vector_store %arg9[%c48_153, %c0_154], %145 {strides = array<i32>} : memref<288x288xbf16, #tpu.memory_space<vmem>>, vector<8x288xbf16>,
    %c0_155 = arith.constant 0 : index
    %c37_156 = arith.constant 37 : index
    %147 = vector.load %arg11[%c0_155, %c37_156] : memref<8x326xbf16, #tpu.memory_space<vmem>>, vector<8x288xbf16>
    %c56_157 = arith.constant 56 : index
    %c0_158 = arith.constant 0 : index
    %148 = vector.load %arg9[%c56_157, %c0_158] : memref<288x288xbf16, #tpu.memory_space<vmem>>, vector<8x288xbf16>
    tpu.vector_store %arg9[%c56_157, %c0_158], %147 {strides = array<i32>} : memref<288x288xbf16, #tpu.memory_space<vmem>>, vector<8x288xbf16>,
    %c0_159 = arith.constant 0 : index
    %c38_160 = arith.constant 38 : index
    %149 = vector.load %arg11[%c0_159, %c38_160] : memref<8x326xbf16, #tpu.memory_space<vmem>>, vector<8x288xbf16>
    %c64_161 = arith.constant 64 : index
    %c0_162 = arith.constant 0 : index
    %150 = vector.load %arg9[%c64_161, %c0_162] : memref<288x288xbf16, #tpu.memory_space<vmem>>, vector<8x288xbf16>
    tpu.vector_store %arg9[%c64_161, %c0_162], %149 {strides = array<i32>} : memref<288x288xbf16, #tpu.memory_space<vmem>>, vector<8x288xbf16>,
    %c16_163 = arith.constant 16 : index
    %c0_164 = arith.constant 0 : index
    %151 = vector.load %arg2[%c16_163, %c0_164] : memref<216x288xbf16, #tpu.memory_space<vmem>>, vector<8x72xbf16>
    %c0_165 = arith.constant 0 : index
    %c0_166 = arith.constant 0 : index
    %152 = vector.load %arg9[%c0_165, %c0_166] : memref<288x288xbf16, #tpu.memory_space<vmem>>, vector<72x288xbf16>
    %cst_167 = arith.constant dense<0.000000e+00> : vector<8x288xf32>
    %153 = tpu.matmul %151, %152, %cst_167 {dimension_numbers = #tpu.dot_dimension_numbers<[1], [0], [0], [1], [0, 0, 1, 1], [], []>} : vector<8x72xbf16>, vector<72x288xbf16>, vector<8x288xf32> -> vector<8x288xf32>
    %c16_168 = arith.constant 16 : index
    %c0_169 = arith.constant 0 : index
    %154 = vector.load %arg3[%c16_168, %c0_169] : memref<216x1xf32, #tpu.memory_space<vmem>>, vector<8x1xf32>
    %155 = vector.broadcast %154 : vector<8x1xf32> to vector<8x288xf32>
    %156 = arith.addf %153, %155 : vector<8x288xf32>
    %157 = arith.truncf %156 : vector<8x288xf32> to vector<8x288xbf16>
    %c0_170 = arith.constant 0 : index
    %c0_171 = arith.constant 0 : index
    %158 = vector.load %arg4[%c0_170, %c0_171] : memref<288x102xbf16, #tpu.memory_space<vmem>>, vector<288x102xbf16>
    %cst_172 = arith.constant dense<0.000000e+00> : vector<8x102xf32>
    %159 = tpu.matmul %157, %158, %cst_172 {dimension_numbers = #tpu.dot_dimension_numbers<[1], [0], [0], [1], [0, 0, 1, 1], [], []>} : vector<8x288xbf16>, vector<288x102xbf16>, vector<8x102xf32> -> vector<8x102xf32>
    %160 = arith.truncf %159 : vector<8x102xf32> to vector<8x102xbf16>
    %c0_173 = arith.constant 0 : index
    %c0_174 = arith.constant 0 : index
    %161 = vector.load %arg14[%c0_173, %c0_174] : memref<8x102xbf16, #tpu.memory_space<vmem>>, vector<8x102xbf16>
    tpu.vector_store %arg14[%c0_173, %c0_174], %160 {strides = array<i32>} : memref<8x102xbf16, #tpu.memory_space<vmem>>, vector<8x102xbf16>,
    %c0_175 = arith.constant 0 : index
    %c0_176 = arith.constant 0 : index
    %162 = vector.load %arg14[%c0_175, %c0_176] : memref<8x102xbf16, #tpu.memory_space<vmem>>, vector<8x80xbf16>
    %c0_177 = arith.constant 0 : index
    %c0_178 = arith.constant 0 : index
    %163 = vector.load %arg9[%c0_177, %c0_178] : memref<288x288xbf16, #tpu.memory_space<vmem>>, vector<8x80xbf16>
    tpu.vector_store %arg9[%c0_177, %c0_178], %162 {strides = array<i32>} : memref<288x288xbf16, #tpu.memory_space<vmem>>, vector<8x80xbf16>,
    %c0_179 = arith.constant 0 : index
    %c1_180 = arith.constant 1 : index
    %164 = vector.load %arg14[%c0_179, %c1_180] : memref<8x102xbf16, #tpu.memory_space<vmem>>, vector<8x80xbf16>
    %c8_181 = arith.constant 8 : index
    %c0_182 = arith.constant 0 : index
    %165 = vector.load %arg9[%c8_181, %c0_182] : memref<288x288xbf16, #tpu.memory_space<vmem>>, vector<8x80xbf16>
    tpu.vector_store %arg9[%c8_181, %c0_182], %164 {strides = array<i32>} : memref<288x288xbf16, #tpu.memory_space<vmem>>, vector<8x80xbf16>,
    %c0_183 = arith.constant 0 : index
    %c2_184 = arith.constant 2 : index
    %166 = vector.load %arg14[%c0_183, %c2_184] : memref<8x102xbf16, #tpu.memory_space<vmem>>, vector<8x80xbf16>
    %c16_185 = arith.constant 16 : index
    %c0_186 = arith.constant 0 : index
    %167 = vector.load %arg9[%c16_185, %c0_186] : memref<288x288xbf16, #tpu.memory_space<vmem>>, vector<8x80xbf16>
    tpu.vector_store %arg9[%c16_185, %c0_186], %166 {strides = array<i32>} : memref<288x288xbf16, #tpu.memory_space<vmem>>, vector<8x80xbf16>,
    %c0_187 = arith.constant 0 : index
    %c10 = arith.constant 10 : index
    %168 = vector.load %arg14[%c0_187, %c10] : memref<8x102xbf16, #tpu.memory_space<vmem>>, vector<8x80xbf16>
    %c24_188 = arith.constant 24 : index
    %c0_189 = arith.constant 0 : index
    %169 = vector.load %arg9[%c24_188, %c0_189] : memref<288x288xbf16, #tpu.memory_space<vmem>>, vector<8x80xbf16>
    tpu.vector_store %arg9[%c24_188, %c0_189], %168 {strides = array<i32>} : memref<288x288xbf16, #tpu.memory_space<vmem>>, vector<8x80xbf16>,
    %c0_190 = arith.constant 0 : index
    %c11 = arith.constant 11 : index
    %170 = vector.load %arg14[%c0_190, %c11] : memref<8x102xbf16, #tpu.memory_space<vmem>>, vector<8x80xbf16>
    %c32_191 = arith.constant 32 : index
    %c0_192 = arith.constant 0 : index
    %171 = vector.load %arg9[%c32_191, %c0_192] : memref<288x288xbf16, #tpu.memory_space<vmem>>, vector<8x80xbf16>
    tpu.vector_store %arg9[%c32_191, %c0_192], %170 {strides = array<i32>} : memref<288x288xbf16, #tpu.memory_space<vmem>>, vector<8x80xbf16>,
    %c0_193 = arith.constant 0 : index
    %c12 = arith.constant 12 : index
    %172 = vector.load %arg14[%c0_193, %c12] : memref<8x102xbf16, #tpu.memory_space<vmem>>, vector<8x80xbf16>
    %c40_194 = arith.constant 40 : index
    %c0_195 = arith.constant 0 : index
    %173 = vector.load %arg9[%c40_194, %c0_195] : memref<288x288xbf16, #tpu.memory_space<vmem>>, vector<8x80xbf16>
    tpu.vector_store %arg9[%c40_194, %c0_195], %172 {strides = array<i32>} : memref<288x288xbf16, #tpu.memory_space<vmem>>, vector<8x80xbf16>,
    %c0_196 = arith.constant 0 : index
    %c20_197 = arith.constant 20 : index
    %174 = vector.load %arg14[%c0_196, %c20_197] : memref<8x102xbf16, #tpu.memory_space<vmem>>, vector<8x80xbf16>
    %c48_198 = arith.constant 48 : index
    %c0_199 = arith.constant 0 : index
    %175 = vector.load %arg9[%c48_198, %c0_199] : memref<288x288xbf16, #tpu.memory_space<vmem>>, vector<8x80xbf16>
    tpu.vector_store %arg9[%c48_198, %c0_199], %174 {strides = array<i32>} : memref<288x288xbf16, #tpu.memory_space<vmem>>, vector<8x80xbf16>,
    %c0_200 = arith.constant 0 : index
    %c21 = arith.constant 21 : index
    %176 = vector.load %arg14[%c0_200, %c21] : memref<8x102xbf16, #tpu.memory_space<vmem>>, vector<8x80xbf16>
    %c56_201 = arith.constant 56 : index
    %c0_202 = arith.constant 0 : index
    %177 = vector.load %arg9[%c56_201, %c0_202] : memref<288x288xbf16, #tpu.memory_space<vmem>>, vector<8x80xbf16>
    tpu.vector_store %arg9[%c56_201, %c0_202], %176 {strides = array<i32>} : memref<288x288xbf16, #tpu.memory_space<vmem>>, vector<8x80xbf16>,
    %c0_203 = arith.constant 0 : index
    %c22 = arith.constant 22 : index
    %178 = vector.load %arg14[%c0_203, %c22] : memref<8x102xbf16, #tpu.memory_space<vmem>>, vector<8x80xbf16>
    %c64_204 = arith.constant 64 : index
    %c0_205 = arith.constant 0 : index
    %179 = vector.load %arg9[%c64_204, %c0_205] : memref<288x288xbf16, #tpu.memory_space<vmem>>, vector<8x80xbf16>
    tpu.vector_store %arg9[%c64_204, %c0_205], %178 {strides = array<i32>} : memref<288x288xbf16, #tpu.memory_space<vmem>>, vector<8x80xbf16>,
    %c24_206 = arith.constant 24 : index
    %c0_207 = arith.constant 0 : index
    %180 = vector.load %arg2[%c24_206, %c0_207] : memref<216x288xbf16, #tpu.memory_space<vmem>>, vector<16x72xbf16>
    %c0_208 = arith.constant 0 : index
    %c0_209 = arith.constant 0 : index
    %181 = vector.load %arg9[%c0_208, %c0_209] : memref<288x288xbf16, #tpu.memory_space<vmem>>, vector<72x80xbf16>
    %cst_210 = arith.constant dense<0.000000e+00> : vector<16x80xf32>
    %182 = tpu.matmul %180, %181, %cst_210 {dimension_numbers = #tpu.dot_dimension_numbers<[1], [0], [0], [1], [0, 0, 1, 1], [], []>} : vector<16x72xbf16>, vector<72x80xbf16>, vector<16x80xf32> -> vector<16x80xf32>
    %c24_211 = arith.constant 24 : index
    %c0_212 = arith.constant 0 : index
    %183 = vector.load %arg3[%c24_211, %c0_212] : memref<216x1xf32, #tpu.memory_space<vmem>>, vector<16x1xf32>
    %184 = vector.broadcast %183 : vector<16x1xf32> to vector<16x80xf32>
    %185 = arith.addf %182, %184 : vector<16x80xf32>
    %cst_213 = arith.constant 0.000000e+00 : f32
    %186 = vector.broadcast %cst_213 : f32 to vector<16x80xf32>
    %187 = arith.maximumf %185, %186 : vector<16x80xf32>
    %188 = tpu.iota {dimensions = array<i32: 1>} : vector<1x80xi32>
    %c10_i32 = arith.constant 10 : i32
    %c0_i32_214 = arith.constant 0 : i32
    %189 = arith.cmpi eq, %c10_i32, %c0_i32_214 : i32
    %c1_i32_215 = arith.constant 1 : i32
    %190 = arith.select %189, %c1_i32_215, %c10_i32 : i32
    %191 = vector.broadcast %190 : i32 to vector<1x80xi32>
    %192 = arith.remsi %188, %191 : vector<1x80xi32>
    %c0_i32_216 = arith.constant 0 : i32
    %193 = vector.broadcast %c0_i32_216 : i32 to vector<1x80xi32>
    %194 = arith.cmpi ne, %192, %193 : vector<1x80xi32>
    %c0_i32_217 = arith.constant 0 : i32
    %195 = vector.broadcast %c0_i32_217 : i32 to vector<1x80xi32>
    %196 = arith.cmpi slt, %192, %195 : vector<1x80xi32>
    %c0_i32_218 = arith.constant 0 : i32
    %197 = arith.cmpi slt, %190, %c0_i32_218 : i32
    %198 = vector.broadcast %197 : i1 to vector<1x80xi1>
    %199 = vector.broadcast %198 : vector<1x80xi1> to vector<1x80xi1>
    %200 = arith.xori %196, %199 : vector<1x80xi1>
    %201 = arith.andi %200, %194 : vector<1x80xi1>
    %202 = vector.broadcast %190 : i32 to vector<1x80xi32>
    %203 = arith.addi %192, %202 : vector<1x80xi32>
    %204 = arith.select %201, %203, %192 : vector<1x80xi1>, vector<1x80xi32>
    %c8_i32 = arith.constant 8 : i32
    %205 = vector.broadcast %c8_i32 : i32 to vector<1x80xi32>
    %206 = arith.cmpi slt, %204, %205 : vector<1x80xi32>
    %cst_219 = arith.constant 0.000000e+00 : f32
    %207 = vector.shape_cast %206 : vector<1x80xi1> to vector<1x80xi1>
    %208 = vector.broadcast %207 : vector<1x80xi1> to vector<16x80xi1>
    %209 = vector.broadcast %cst_219 : f32 to vector<16x80xf32>
    %210 = arith.select %208, %187, %209 : vector<16x80xi1>, vector<16x80xf32>
    %211 = arith.truncf %210 : vector<16x80xf32> to vector<16x80xbf16>
    %c0_220 = arith.constant 0 : index
    %c11_221 = arith.constant 11 : index
    %212 = vector.load %arg15[%c0_220, %c11_221] : memref<16x102xbf16, #tpu.memory_space<vmem>>, vector<16x80xbf16>
    tpu.vector_store %arg15[%c0_220, %c11_221], %211 {strides = array<i32>} : memref<16x102xbf16, #tpu.memory_space<vmem>>, vector<16x80xbf16>,
    %c0_222 = arith.constant 0 : index
    %c0_223 = arith.constant 0 : index
    %213 = vector.load %arg15[%c0_222, %c0_223] : memref<16x102xbf16, #tpu.memory_space<vmem>>, vector<16x80xbf16>
    %c0_224 = arith.constant 0 : index
    %c0_225 = arith.constant 0 : index
    %214 = vector.load %arg9[%c0_224, %c0_225] : memref<288x288xbf16, #tpu.memory_space<vmem>>, vector<16x80xbf16>
    tpu.vector_store %arg9[%c0_224, %c0_225], %213 {strides = array<i32>} : memref<288x288xbf16, #tpu.memory_space<vmem>>, vector<16x80xbf16>,
    %c0_226 = arith.constant 0 : index
    %c1_227 = arith.constant 1 : index
    %215 = vector.load %arg15[%c0_226, %c1_227] : memref<16x102xbf16, #tpu.memory_space<vmem>>, vector<16x80xbf16>
    %c16_228 = arith.constant 16 : index
    %c0_229 = arith.constant 0 : index
    %216 = vector.load %arg9[%c16_228, %c0_229] : memref<288x288xbf16, #tpu.memory_space<vmem>>, vector<16x80xbf16>
    tpu.vector_store %arg9[%c16_228, %c0_229], %215 {strides = array<i32>} : memref<288x288xbf16, #tpu.memory_space<vmem>>, vector<16x80xbf16>,
    %c0_230 = arith.constant 0 : index
    %c2_231 = arith.constant 2 : index
    %217 = vector.load %arg15[%c0_230, %c2_231] : memref<16x102xbf16, #tpu.memory_space<vmem>>, vector<16x80xbf16>
    %c32_232 = arith.constant 32 : index
    %c0_233 = arith.constant 0 : index
    %218 = vector.load %arg9[%c32_232, %c0_233] : memref<288x288xbf16, #tpu.memory_space<vmem>>, vector<16x80xbf16>
    tpu.vector_store %arg9[%c32_232, %c0_233], %217 {strides = array<i32>} : memref<288x288xbf16, #tpu.memory_space<vmem>>, vector<16x80xbf16>,
    %c0_234 = arith.constant 0 : index
    %c10_235 = arith.constant 10 : index
    %219 = vector.load %arg15[%c0_234, %c10_235] : memref<16x102xbf16, #tpu.memory_space<vmem>>, vector<16x80xbf16>
    %c48_236 = arith.constant 48 : index
    %c0_237 = arith.constant 0 : index
    %220 = vector.load %arg9[%c48_236, %c0_237] : memref<288x288xbf16, #tpu.memory_space<vmem>>, vector<16x80xbf16>
    tpu.vector_store %arg9[%c48_236, %c0_237], %219 {strides = array<i32>} : memref<288x288xbf16, #tpu.memory_space<vmem>>, vector<16x80xbf16>,
    %c0_238 = arith.constant 0 : index
    %c11_239 = arith.constant 11 : index
    %221 = vector.load %arg15[%c0_238, %c11_239] : memref<16x102xbf16, #tpu.memory_space<vmem>>, vector<16x80xbf16>
    %c64_240 = arith.constant 64 : index
    %c0_241 = arith.constant 0 : index
    %222 = vector.load %arg9[%c64_240, %c0_241] : memref<288x288xbf16, #tpu.memory_space<vmem>>, vector<16x80xbf16>
    tpu.vector_store %arg9[%c64_240, %c0_241], %221 {strides = array<i32>} : memref<288x288xbf16, #tpu.memory_space<vmem>>, vector<16x80xbf16>,
    %c0_242 = arith.constant 0 : index
    %c12_243 = arith.constant 12 : index
    %223 = vector.load %arg15[%c0_242, %c12_243] : memref<16x102xbf16, #tpu.memory_space<vmem>>, vector<16x80xbf16>
    %c80 = arith.constant 80 : index
    %c0_244 = arith.constant 0 : index
    %224 = vector.load %arg9[%c80, %c0_244] : memref<288x288xbf16, #tpu.memory_space<vmem>>, vector<16x80xbf16>
    tpu.vector_store %arg9[%c80, %c0_244], %223 {strides = array<i32>} : memref<288x288xbf16, #tpu.memory_space<vmem>>, vector<16x80xbf16>,
    %c0_245 = arith.constant 0 : index
    %c20_246 = arith.constant 20 : index
    %225 = vector.load %arg15[%c0_245, %c20_246] : memref<16x102xbf16, #tpu.memory_space<vmem>>, vector<16x80xbf16>
    %c96 = arith.constant 96 : index
    %c0_247 = arith.constant 0 : index
    %226 = vector.load %arg9[%c96, %c0_247] : memref<288x288xbf16, #tpu.memory_space<vmem>>, vector<16x80xbf16>
    tpu.vector_store %arg9[%c96, %c0_247], %225 {strides = array<i32>} : memref<288x288xbf16, #tpu.memory_space<vmem>>, vector<16x80xbf16>,
    %c0_248 = arith.constant 0 : index
    %c21_249 = arith.constant 21 : index
    %227 = vector.load %arg15[%c0_248, %c21_249] : memref<16x102xbf16, #tpu.memory_space<vmem>>, vector<16x80xbf16>
    %c112 = arith.constant 112 : index
    %c0_250 = arith.constant 0 : index
    %228 = vector.load %arg9[%c112, %c0_250] : memref<288x288xbf16, #tpu.memory_space<vmem>>, vector<16x80xbf16>
    tpu.vector_store %arg9[%c112, %c0_250], %227 {strides = array<i32>} : memref<288x288xbf16, #tpu.memory_space<vmem>>, vector<16x80xbf16>,
    %c0_251 = arith.constant 0 : index
    %c22_252 = arith.constant 22 : index
    %229 = vector.load %arg15[%c0_251, %c22_252] : memref<16x102xbf16, #tpu.memory_space<vmem>>, vector<16x80xbf16>
    %c128 = arith.constant 128 : index
    %c0_253 = arith.constant 0 : index
    %230 = vector.load %arg9[%c128, %c0_253] : memref<288x288xbf16, #tpu.memory_space<vmem>>, vector<16x80xbf16>
    tpu.vector_store %arg9[%c128, %c0_253], %229 {strides = array<i32>} : memref<288x288xbf16, #tpu.memory_space<vmem>>, vector<16x80xbf16>,
    %c40_254 = arith.constant 40 : index
    %c0_255 = arith.constant 0 : index
    %231 = vector.load %arg2[%c40_254, %c0_255] : memref<216x288xbf16, #tpu.memory_space<vmem>>, vector<16x144xbf16>
    %c0_256 = arith.constant 0 : index
    %c0_257 = arith.constant 0 : index
    %232 = vector.load %arg9[%c0_256, %c0_257] : memref<288x288xbf16, #tpu.memory_space<vmem>>, vector<144x80xbf16>
    %cst_258 = arith.constant dense<0.000000e+00> : vector<16x80xf32>
    %233 = tpu.matmul %231, %232, %cst_258 {dimension_numbers = #tpu.dot_dimension_numbers<[1], [0], [0], [1], [0, 0, 1, 1], [], []>} : vector<16x144xbf16>, vector<144x80xbf16>, vector<16x80xf32> -> vector<16x80xf32>
    %c40_259 = arith.constant 40 : index
    %c0_260 = arith.constant 0 : index
    %234 = vector.load %arg3[%c40_259, %c0_260] : memref<216x1xf32, #tpu.memory_space<vmem>>, vector<16x1xf32>
    %235 = vector.broadcast %234 : vector<16x1xf32> to vector<16x80xf32>
    %236 = arith.addf %233, %235 : vector<16x80xf32>
    %237 = arith.truncf %236 : vector<16x80xf32> to vector<16x80xbf16>
    %c0_261 = arith.constant 0 : index
    %c0_262 = arith.constant 0 : index
    %238 = vector.load %arg5[%c0_261, %c0_262] : memref<80x38xbf16, #tpu.memory_space<vmem>>, vector<80x38xbf16>
    %cst_263 = arith.constant dense<0.000000e+00> : vector<16x38xf32>
    %239 = tpu.matmul %237, %238, %cst_263 {dimension_numbers = #tpu.dot_dimension_numbers<[1], [0], [0], [1], [0, 0, 1, 1], [], []>} : vector<16x80xbf16>, vector<80x38xbf16>, vector<16x38xf32> -> vector<16x38xf32>
    %240 = arith.truncf %239 : vector<16x38xf32> to vector<16x38xbf16>
    %c0_264 = arith.constant 0 : index
    %c0_265 = arith.constant 0 : index
    %241 = vector.load %arg18[%c0_264, %c0_265] : memref<16x38xbf16, #tpu.memory_space<vmem>>, vector<16x38xbf16>
    tpu.vector_store %arg18[%c0_264, %c0_265], %240 {strides = array<i32>} : memref<16x38xbf16, #tpu.memory_space<vmem>>, vector<16x38xbf16>,
    %c0_266 = arith.constant 0 : index
    %c0_267 = arith.constant 0 : index
    %242 = vector.load %arg18[%c0_266, %c0_267] : memref<16x38xbf16, #tpu.memory_space<vmem>>, vector<16x24xbf16>
    %c0_268 = arith.constant 0 : index
    %c0_269 = arith.constant 0 : index
    %243 = vector.load %arg9[%c0_268, %c0_269] : memref<288x288xbf16, #tpu.memory_space<vmem>>, vector<16x24xbf16>
    tpu.vector_store %arg9[%c0_268, %c0_269], %242 {strides = array<i32>} : memref<288x288xbf16, #tpu.memory_space<vmem>>, vector<16x24xbf16>,
    %c0_270 = arith.constant 0 : index
    %c1_271 = arith.constant 1 : index
    %244 = vector.load %arg18[%c0_270, %c1_271] : memref<16x38xbf16, #tpu.memory_space<vmem>>, vector<16x24xbf16>
    %c16_272 = arith.constant 16 : index
    %c0_273 = arith.constant 0 : index
    %245 = vector.load %arg9[%c16_272, %c0_273] : memref<288x288xbf16, #tpu.memory_space<vmem>>, vector<16x24xbf16>
    tpu.vector_store %arg9[%c16_272, %c0_273], %244 {strides = array<i32>} : memref<288x288xbf16, #tpu.memory_space<vmem>>, vector<16x24xbf16>,
    %c0_274 = arith.constant 0 : index
    %c2_275 = arith.constant 2 : index
    %246 = vector.load %arg18[%c0_274, %c2_275] : memref<16x38xbf16, #tpu.memory_space<vmem>>, vector<16x24xbf16>
    %c32_276 = arith.constant 32 : index
    %c0_277 = arith.constant 0 : index
    %247 = vector.load %arg9[%c32_276, %c0_277] : memref<288x288xbf16, #tpu.memory_space<vmem>>, vector<16x24xbf16>
    tpu.vector_store %arg9[%c32_276, %c0_277], %246 {strides = array<i32>} : memref<288x288xbf16, #tpu.memory_space<vmem>>, vector<16x24xbf16>,
    %c0_278 = arith.constant 0 : index
    %c6 = arith.constant 6 : index
    %248 = vector.load %arg18[%c0_278, %c6] : memref<16x38xbf16, #tpu.memory_space<vmem>>, vector<16x24xbf16>
    %c48_279 = arith.constant 48 : index
    %c0_280 = arith.constant 0 : index
    %249 = vector.load %arg9[%c48_279, %c0_280] : memref<288x288xbf16, #tpu.memory_space<vmem>>, vector<16x24xbf16>
    tpu.vector_store %arg9[%c48_279, %c0_280], %248 {strides = array<i32>} : memref<288x288xbf16, #tpu.memory_space<vmem>>, vector<16x24xbf16>,
    %c0_281 = arith.constant 0 : index
    %c7 = arith.constant 7 : index
    %250 = vector.load %arg18[%c0_281, %c7] : memref<16x38xbf16, #tpu.memory_space<vmem>>, vector<16x24xbf16>
    %c64_282 = arith.constant 64 : index
    %c0_283 = arith.constant 0 : index
    %251 = vector.load %arg9[%c64_282, %c0_283] : memref<288x288xbf16, #tpu.memory_space<vmem>>, vector<16x24xbf16>
    tpu.vector_store %arg9[%c64_282, %c0_283], %250 {strides = array<i32>} : memref<288x288xbf16, #tpu.memory_space<vmem>>, vector<16x24xbf16>,
    %c0_284 = arith.constant 0 : index
    %c8_285 = arith.constant 8 : index
    %252 = vector.load %arg18[%c0_284, %c8_285] : memref<16x38xbf16, #tpu.memory_space<vmem>>, vector<16x24xbf16>
    %c80_286 = arith.constant 80 : index
    %c0_287 = arith.constant 0 : index
    %253 = vector.load %arg9[%c80_286, %c0_287] : memref<288x288xbf16, #tpu.memory_space<vmem>>, vector<16x24xbf16>
    tpu.vector_store %arg9[%c80_286, %c0_287], %252 {strides = array<i32>} : memref<288x288xbf16, #tpu.memory_space<vmem>>, vector<16x24xbf16>,
    %c0_288 = arith.constant 0 : index
    %c12_289 = arith.constant 12 : index
    %254 = vector.load %arg18[%c0_288, %c12_289] : memref<16x38xbf16, #tpu.memory_space<vmem>>, vector<16x24xbf16>
    %c96_290 = arith.constant 96 : index
    %c0_291 = arith.constant 0 : index
    %255 = vector.load %arg9[%c96_290, %c0_291] : memref<288x288xbf16, #tpu.memory_space<vmem>>, vector<16x24xbf16>
    tpu.vector_store %arg9[%c96_290, %c0_291], %254 {strides = array<i32>} : memref<288x288xbf16, #tpu.memory_space<vmem>>, vector<16x24xbf16>,
    %c0_292 = arith.constant 0 : index
    %c13 = arith.constant 13 : index
    %256 = vector.load %arg18[%c0_292, %c13] : memref<16x38xbf16, #tpu.memory_space<vmem>>, vector<16x24xbf16>
    %c112_293 = arith.constant 112 : index
    %c0_294 = arith.constant 0 : index
    %257 = vector.load %arg9[%c112_293, %c0_294] : memref<288x288xbf16, #tpu.memory_space<vmem>>, vector<16x24xbf16>
    tpu.vector_store %arg9[%c112_293, %c0_294], %256 {strides = array<i32>} : memref<288x288xbf16, #tpu.memory_space<vmem>>, vector<16x24xbf16>,
    %c0_295 = arith.constant 0 : index
    %c14 = arith.constant 14 : index
    %258 = vector.load %arg18[%c0_295, %c14] : memref<16x38xbf16, #tpu.memory_space<vmem>>, vector<16x24xbf16>
    %c128_296 = arith.constant 128 : index
    %c0_297 = arith.constant 0 : index
    %259 = vector.load %arg9[%c128_296, %c0_297] : memref<288x288xbf16, #tpu.memory_space<vmem>>, vector<16x24xbf16>
    tpu.vector_store %arg9[%c128_296, %c0_297], %258 {strides = array<i32>} : memref<288x288xbf16, #tpu.memory_space<vmem>>, vector<16x24xbf16>,
    %c56_298 = arith.constant 56 : index
    %c0_299 = arith.constant 0 : index
    %260 = vector.load %arg2[%c56_298, %c0_299] : memref<216x288xbf16, #tpu.memory_space<vmem>>, vector<32x144xbf16>
    %c0_300 = arith.constant 0 : index
    %c0_301 = arith.constant 0 : index
    %261 = vector.load %arg9[%c0_300, %c0_301] : memref<288x288xbf16, #tpu.memory_space<vmem>>, vector<144x24xbf16>
    %cst_302 = arith.constant dense<0.000000e+00> : vector<32x24xf32>
    %262 = tpu.matmul %260, %261, %cst_302 {dimension_numbers = #tpu.dot_dimension_numbers<[1], [0], [0], [1], [0, 0, 1, 1], [], []>} : vector<32x144xbf16>, vector<144x24xbf16>, vector<32x24xf32> -> vector<32x24xf32>
    %c56_303 = arith.constant 56 : index
    %c0_304 = arith.constant 0 : index
    %263 = vector.load %arg3[%c56_303, %c0_304] : memref<216x1xf32, #tpu.memory_space<vmem>>, vector<32x1xf32>
    %264 = vector.broadcast %263 : vector<32x1xf32> to vector<32x24xf32>
    %265 = arith.addf %262, %264 : vector<32x24xf32>
    %266 = tpu.iota {dimensions = array<i32: 1>} : vector<1x24xi32>
    %c6_i32 = arith.constant 6 : i32
    %c0_i32_305 = arith.constant 0 : i32
    %267 = arith.cmpi eq, %c6_i32, %c0_i32_305 : i32
    %c1_i32_306 = arith.constant 1 : i32
    %268 = arith.select %267, %c1_i32_306, %c6_i32 : i32
    %269 = vector.broadcast %268 : i32 to vector<1x24xi32>
    %270 = arith.remsi %266, %269 : vector<1x24xi32>
    %c0_i32_307 = arith.constant 0 : i32
    %271 = vector.broadcast %c0_i32_307 : i32 to vector<1x24xi32>
    %272 = arith.cmpi ne, %270, %271 : vector<1x24xi32>
    %c0_i32_308 = arith.constant 0 : i32
    %273 = vector.broadcast %c0_i32_308 : i32 to vector<1x24xi32>
    %274 = arith.cmpi slt, %270, %273 : vector<1x24xi32>
    %c0_i32_309 = arith.constant 0 : i32
    %275 = arith.cmpi slt, %268, %c0_i32_309 : i32
    %276 = vector.broadcast %275 : i1 to vector<1x24xi1>
    %277 = vector.broadcast %276 : vector<1x24xi1> to vector<1x24xi1>
    %278 = arith.xori %274, %277 : vector<1x24xi1>
    %279 = arith.andi %278, %272 : vector<1x24xi1>
    %280 = vector.broadcast %268 : i32 to vector<1x24xi32>
    %281 = arith.addi %270, %280 : vector<1x24xi32>
    %282 = arith.select %279, %281, %270 : vector<1x24xi1>, vector<1x24xi32>
    %c4_i32 = arith.constant 4 : i32
    %283 = vector.broadcast %c4_i32 : i32 to vector<1x24xi32>
    %284 = arith.cmpi slt, %282, %283 : vector<1x24xi32>
    %cst_310 = arith.constant 0.000000e+00 : f32
    %285 = vector.shape_cast %284 : vector<1x24xi1> to vector<1x24xi1>
    %286 = vector.broadcast %285 : vector<1x24xi1> to vector<32x24xi1>
    %287 = vector.broadcast %cst_310 : f32 to vector<32x24xf32>
    %288 = arith.select %286, %265, %287 : vector<32x24xi1>, vector<32x24xf32>
    %289 = arith.truncf %288 : vector<32x24xf32> to vector<32x24xbf16>
    %c0_311 = arith.constant 0 : index
    %c7_312 = arith.constant 7 : index
    %290 = vector.load %arg19[%c0_311, %c7_312] : memref<32x38xbf16, #tpu.memory_space<vmem>>, vector<32x24xbf16>
    tpu.vector_store %arg19[%c0_311, %c7_312], %289 {strides = array<i32>} : memref<32x38xbf16, #tpu.memory_space<vmem>>, vector<32x24xbf16>,
    %c0_313 = arith.constant 0 : index
    %c0_314 = arith.constant 0 : index
    %291 = vector.load %arg19[%c0_313, %c0_314] : memref<32x38xbf16, #tpu.memory_space<vmem>>, vector<32x24xbf16>
    %c0_315 = arith.constant 0 : index
    %c0_316 = arith.constant 0 : index
    %292 = vector.load %arg9[%c0_315, %c0_316] : memref<288x288xbf16, #tpu.memory_space<vmem>>, vector<32x24xbf16>
    tpu.vector_store %arg9[%c0_315, %c0_316], %291 {strides = array<i32>} : memref<288x288xbf16, #tpu.memory_space<vmem>>, vector<32x24xbf16>,
    %c0_317 = arith.constant 0 : index
    %c1_318 = arith.constant 1 : index
    %293 = vector.load %arg19[%c0_317, %c1_318] : memref<32x38xbf16, #tpu.memory_space<vmem>>, vector<32x24xbf16>
    %c32_319 = arith.constant 32 : index
    %c0_320 = arith.constant 0 : index
    %294 = vector.load %arg9[%c32_319, %c0_320] : memref<288x288xbf16, #tpu.memory_space<vmem>>, vector<32x24xbf16>
    tpu.vector_store %arg9[%c32_319, %c0_320], %293 {strides = array<i32>} : memref<288x288xbf16, #tpu.memory_space<vmem>>, vector<32x24xbf16>,
    %c0_321 = arith.constant 0 : index
    %c2_322 = arith.constant 2 : index
    %295 = vector.load %arg19[%c0_321, %c2_322] : memref<32x38xbf16, #tpu.memory_space<vmem>>, vector<32x24xbf16>
    %c64_323 = arith.constant 64 : index
    %c0_324 = arith.constant 0 : index
    %296 = vector.load %arg9[%c64_323, %c0_324] : memref<288x288xbf16, #tpu.memory_space<vmem>>, vector<32x24xbf16>
    tpu.vector_store %arg9[%c64_323, %c0_324], %295 {strides = array<i32>} : memref<288x288xbf16, #tpu.memory_space<vmem>>, vector<32x24xbf16>,
    %c0_325 = arith.constant 0 : index
    %c6_326 = arith.constant 6 : index
    %297 = vector.load %arg19[%c0_325, %c6_326] : memref<32x38xbf16, #tpu.memory_space<vmem>>, vector<32x24xbf16>
    %c96_327 = arith.constant 96 : index
    %c0_328 = arith.constant 0 : index
    %298 = vector.load %arg9[%c96_327, %c0_328] : memref<288x288xbf16, #tpu.memory_space<vmem>>, vector<32x24xbf16>
    tpu.vector_store %arg9[%c96_327, %c0_328], %297 {strides = array<i32>} : memref<288x288xbf16, #tpu.memory_space<vmem>>, vector<32x24xbf16>,
    %c0_329 = arith.constant 0 : index
    %c7_330 = arith.constant 7 : index
    %299 = vector.load %arg19[%c0_329, %c7_330] : memref<32x38xbf16, #tpu.memory_space<vmem>>, vector<32x24xbf16>
    %c128_331 = arith.constant 128 : index
    %c0_332 = arith.constant 0 : index
    %300 = vector.load %arg9[%c128_331, %c0_332] : memref<288x288xbf16, #tpu.memory_space<vmem>>, vector<32x24xbf16>
    tpu.vector_store %arg9[%c128_331, %c0_332], %299 {strides = array<i32>} : memref<288x288xbf16, #tpu.memory_space<vmem>>, vector<32x24xbf16>,
    %c0_333 = arith.constant 0 : index
    %c8_334 = arith.constant 8 : index
    %301 = vector.load %arg19[%c0_333, %c8_334] : memref<32x38xbf16, #tpu.memory_space<vmem>>, vector<32x24xbf16>
    %c160 = arith.constant 160 : index
    %c0_335 = arith.constant 0 : index
    %302 = vector.load %arg9[%c160, %c0_335] : memref<288x288xbf16, #tpu.memory_space<vmem>>, vector<32x24xbf16>
    tpu.vector_store %arg9[%c160, %c0_335], %301 {strides = array<i32>} : memref<288x288xbf16, #tpu.memory_space<vmem>>, vector<32x24xbf16>,
    %c0_336 = arith.constant 0 : index
    %c12_337 = arith.constant 12 : index
    %303 = vector.load %arg19[%c0_336, %c12_337] : memref<32x38xbf16, #tpu.memory_space<vmem>>, vector<32x24xbf16>
    %c192 = arith.constant 192 : index
    %c0_338 = arith.constant 0 : index
    %304 = vector.load %arg9[%c192, %c0_338] : memref<288x288xbf16, #tpu.memory_space<vmem>>, vector<32x24xbf16>
    tpu.vector_store %arg9[%c192, %c0_338], %303 {strides = array<i32>} : memref<288x288xbf16, #tpu.memory_space<vmem>>, vector<32x24xbf16>,
    %c0_339 = arith.constant 0 : index
    %c13_340 = arith.constant 13 : index
    %305 = vector.load %arg19[%c0_339, %c13_340] : memref<32x38xbf16, #tpu.memory_space<vmem>>, vector<32x24xbf16>
    %c224 = arith.constant 224 : index
    %c0_341 = arith.constant 0 : index
    %306 = vector.load %arg9[%c224, %c0_341] : memref<288x288xbf16, #tpu.memory_space<vmem>>, vector<32x24xbf16>
    tpu.vector_store %arg9[%c224, %c0_341], %305 {strides = array<i32>} : memref<288x288xbf16, #tpu.memory_space<vmem>>, vector<32x24xbf16>,
    %c0_342 = arith.constant 0 : index
    %c14_343 = arith.constant 14 : index
    %307 = vector.load %arg19[%c0_342, %c14_343] : memref<32x38xbf16, #tpu.memory_space<vmem>>, vector<32x24xbf16>
    %c256 = arith.constant 256 : index
    %c0_344 = arith.constant 0 : index
    %308 = vector.load %arg9[%c256, %c0_344] : memref<288x288xbf16, #tpu.memory_space<vmem>>, vector<32x24xbf16>
    tpu.vector_store %arg9[%c256, %c0_344], %307 {strides = array<i32>} : memref<288x288xbf16, #tpu.memory_space<vmem>>, vector<32x24xbf16>,
    %c88 = arith.constant 88 : index
    %c0_345 = arith.constant 0 : index
    %309 = vector.load %arg2[%c88, %c0_345] : memref<216x288xbf16, #tpu.memory_space<vmem>>, vector<64x288xbf16>
    %c0_346 = arith.constant 0 : index
    %c0_347 = arith.constant 0 : index
    %310 = vector.load %arg9[%c0_346, %c0_347] : memref<288x288xbf16, #tpu.memory_space<vmem>>, vector<288x24xbf16>
    %cst_348 = arith.constant dense<0.000000e+00> : vector<64x24xf32>
    %311 = tpu.matmul %309, %310, %cst_348 {dimension_numbers = #tpu.dot_dimension_numbers<[1], [0], [0], [1], [0, 0, 1, 1], [], []>} : vector<64x288xbf16>, vector<288x24xbf16>, vector<64x24xf32> -> vector<64x24xf32>
    %c88_349 = arith.constant 88 : index
    %c0_350 = arith.constant 0 : index
    %312 = vector.load %arg3[%c88_349, %c0_350] : memref<216x1xf32, #tpu.memory_space<vmem>>, vector<64x1xf32>
    %313 = vector.broadcast %312 : vector<64x1xf32> to vector<64x24xf32>
    %314 = arith.addf %311, %313 : vector<64x24xf32>
    %315 = vector.extract_strided_slice %314 {offsets = [0, 0], sizes = [16, 24], strides = [1, 1]} : vector<64x24xf32> to vector<16x24xf32>
    %316 = arith.truncf %315 : vector<16x24xf32> to vector<16x24xbf16>
    %c0_351 = arith.constant 0 : index
    %c0_352 = arith.constant 0 : index
    %c0_353 = arith.constant 0 : index
    %317 = vector.load %arg6[%c0_351, %c0_352, %c0_353] : memref<4x24x102xbf16, #tpu.memory_space<vmem>>, vector<1x24x102xbf16>
    %318 = vector.shape_cast %317 : vector<1x24x102xbf16> to vector<24x102xbf16>
    %cst_354 = arith.constant dense<0.000000e+00> : vector<16x102xf32>
    %319 = tpu.matmul %316, %318, %cst_354 {dimension_numbers = #tpu.dot_dimension_numbers<[1], [0], [0], [1], [0, 0, 1, 1], [], []>} : vector<16x24xbf16>, vector<24x102xbf16>, vector<16x102xf32> -> vector<16x102xf32>
    %320 = vector.extract_strided_slice %314 {offsets = [16, 0], sizes = [16, 24], strides = [1, 1]} : vector<64x24xf32> to vector<16x24xf32>
    %321 = arith.truncf %320 : vector<16x24xf32> to vector<16x24xbf16>
    %c1_355 = arith.constant 1 : index
    %c0_356 = arith.constant 0 : index
    %c0_357 = arith.constant 0 : index
    %322 = vector.load %arg6[%c1_355, %c0_356, %c0_357] : memref<4x24x102xbf16, #tpu.memory_space<vmem>>, vector<1x24x102xbf16>
    %323 = vector.shape_cast %322 : vector<1x24x102xbf16> to vector<24x102xbf16>
    %cst_358 = arith.constant dense<0.000000e+00> : vector<16x102xf32>
    %324 = tpu.matmul %321, %323, %cst_358 {dimension_numbers = #tpu.dot_dimension_numbers<[1], [0], [0], [1], [0, 0, 1, 1], [], []>} : vector<16x24xbf16>, vector<24x102xbf16>, vector<16x102xf32> -> vector<16x102xf32>
    %325 = arith.addf %319, %324 : vector<16x102xf32>
    %326 = vector.extract_strided_slice %314 {offsets = [32, 0], sizes = [16, 24], strides = [1, 1]} : vector<64x24xf32> to vector<16x24xf32>
    %327 = arith.truncf %326 : vector<16x24xf32> to vector<16x24xbf16>
    %c2_359 = arith.constant 2 : index
    %c0_360 = arith.constant 0 : index
    %c0_361 = arith.constant 0 : index
    %328 = vector.load %arg6[%c2_359, %c0_360, %c0_361] : memref<4x24x102xbf16, #tpu.memory_space<vmem>>, vector<1x24x102xbf16>
    %329 = vector.shape_cast %328 : vector<1x24x102xbf16> to vector<24x102xbf16>
    %cst_362 = arith.constant dense<0.000000e+00> : vector<16x102xf32>
    %330 = tpu.matmul %327, %329, %cst_362 {dimension_numbers = #tpu.dot_dimension_numbers<[1], [0], [0], [1], [0, 0, 1, 1], [], []>} : vector<16x24xbf16>, vector<24x102xbf16>, vector<16x102xf32> -> vector<16x102xf32>
    %331 = arith.addf %325, %330 : vector<16x102xf32>
    %332 = vector.extract_strided_slice %314 {offsets = [48, 0], sizes = [16, 24], strides = [1, 1]} : vector<64x24xf32> to vector<16x24xf32>
    %333 = arith.truncf %332 : vector<16x24xf32> to vector<16x24xbf16>
    %c3 = arith.constant 3 : index
    %c0_363 = arith.constant 0 : index
    %c0_364 = arith.constant 0 : index
    %334 = vector.load %arg6[%c3, %c0_363, %c0_364] : memref<4x24x102xbf16, #tpu.memory_space<vmem>>, vector<1x24x102xbf16>
    %335 = vector.shape_cast %334 : vector<1x24x102xbf16> to vector<24x102xbf16>
    %cst_365 = arith.constant dense<0.000000e+00> : vector<16x102xf32>
    %336 = tpu.matmul %333, %335, %cst_365 {dimension_numbers = #tpu.dot_dimension_numbers<[1], [0], [0], [1], [0, 0, 1, 1], [], []>} : vector<16x24xbf16>, vector<24x102xbf16>, vector<16x102xf32> -> vector<16x102xf32>
    %337 = arith.addf %331, %336 : vector<16x102xf32>
    %338 = arith.truncf %337 : vector<16x102xf32> to vector<16x102xbf16>
    %c0_366 = arith.constant 0 : index
    %c0_367 = arith.constant 0 : index
    %339 = vector.load %arg16[%c0_366, %c0_367] : memref<16x102xbf16, #tpu.memory_space<vmem>>, vector<16x102xbf16>
    tpu.vector_store %arg16[%c0_366, %c0_367], %338 {strides = array<i32>} : memref<16x102xbf16, #tpu.memory_space<vmem>>, vector<16x102xbf16>,
    %c0_368 = arith.constant 0 : index
    %c0_369 = arith.constant 0 : index
    %340 = vector.load %arg15[%c0_368, %c0_369] : memref<16x102xbf16, #tpu.memory_space<vmem>>, vector<16x80xbf16>
    %c0_370 = arith.constant 0 : index
    %c0_371 = arith.constant 0 : index
    %341 = vector.load %arg9[%c0_370, %c0_371] : memref<288x288xbf16, #tpu.memory_space<vmem>>, vector<16x80xbf16>
    tpu.vector_store %arg9[%c0_370, %c0_371], %340 {strides = array<i32>} : memref<288x288xbf16, #tpu.memory_space<vmem>>, vector<16x80xbf16>,
    %c0_372 = arith.constant 0 : index
    %c0_373 = arith.constant 0 : index
    %342 = vector.load %arg16[%c0_372, %c0_373] : memref<16x102xbf16, #tpu.memory_space<vmem>>, vector<16x80xbf16>
    %c16_374 = arith.constant 16 : index
    %c0_375 = arith.constant 0 : index
    %343 = vector.load %arg9[%c16_374, %c0_375] : memref<288x288xbf16, #tpu.memory_space<vmem>>, vector<16x80xbf16>
    tpu.vector_store %arg9[%c16_374, %c0_375], %342 {strides = array<i32>} : memref<288x288xbf16, #tpu.memory_space<vmem>>, vector<16x80xbf16>,
    %c0_376 = arith.constant 0 : index
    %c1_377 = arith.constant 1 : index
    %344 = vector.load %arg15[%c0_376, %c1_377] : memref<16x102xbf16, #tpu.memory_space<vmem>>, vector<16x80xbf16>
    %c32_378 = arith.constant 32 : index
    %c0_379 = arith.constant 0 : index
    %345 = vector.load %arg9[%c32_378, %c0_379] : memref<288x288xbf16, #tpu.memory_space<vmem>>, vector<16x80xbf16>
    tpu.vector_store %arg9[%c32_378, %c0_379], %344 {strides = array<i32>} : memref<288x288xbf16, #tpu.memory_space<vmem>>, vector<16x80xbf16>,
    %c0_380 = arith.constant 0 : index
    %c1_381 = arith.constant 1 : index
    %346 = vector.load %arg16[%c0_380, %c1_381] : memref<16x102xbf16, #tpu.memory_space<vmem>>, vector<16x80xbf16>
    %c48_382 = arith.constant 48 : index
    %c0_383 = arith.constant 0 : index
    %347 = vector.load %arg9[%c48_382, %c0_383] : memref<288x288xbf16, #tpu.memory_space<vmem>>, vector<16x80xbf16>
    tpu.vector_store %arg9[%c48_382, %c0_383], %346 {strides = array<i32>} : memref<288x288xbf16, #tpu.memory_space<vmem>>, vector<16x80xbf16>,
    %c0_384 = arith.constant 0 : index
    %c2_385 = arith.constant 2 : index
    %348 = vector.load %arg15[%c0_384, %c2_385] : memref<16x102xbf16, #tpu.memory_space<vmem>>, vector<16x80xbf16>
    %c64_386 = arith.constant 64 : index
    %c0_387 = arith.constant 0 : index
    %349 = vector.load %arg9[%c64_386, %c0_387] : memref<288x288xbf16, #tpu.memory_space<vmem>>, vector<16x80xbf16>
    tpu.vector_store %arg9[%c64_386, %c0_387], %348 {strides = array<i32>} : memref<288x288xbf16, #tpu.memory_space<vmem>>, vector<16x80xbf16>,
    %c0_388 = arith.constant 0 : index
    %c2_389 = arith.constant 2 : index
    %350 = vector.load %arg16[%c0_388, %c2_389] : memref<16x102xbf16, #tpu.memory_space<vmem>>, vector<16x80xbf16>
    %c80_390 = arith.constant 80 : index
    %c0_391 = arith.constant 0 : index
    %351 = vector.load %arg9[%c80_390, %c0_391] : memref<288x288xbf16, #tpu.memory_space<vmem>>, vector<16x80xbf16>
    tpu.vector_store %arg9[%c80_390, %c0_391], %350 {strides = array<i32>} : memref<288x288xbf16, #tpu.memory_space<vmem>>, vector<16x80xbf16>,
    %c0_392 = arith.constant 0 : index
    %c10_393 = arith.constant 10 : index
    %352 = vector.load %arg15[%c0_392, %c10_393] : memref<16x102xbf16, #tpu.memory_space<vmem>>, vector<16x80xbf16>
    %c96_394 = arith.constant 96 : index
    %c0_395 = arith.constant 0 : index
    %353 = vector.load %arg9[%c96_394, %c0_395] : memref<288x288xbf16, #tpu.memory_space<vmem>>, vector<16x80xbf16>
    tpu.vector_store %arg9[%c96_394, %c0_395], %352 {strides = array<i32>} : memref<288x288xbf16, #tpu.memory_space<vmem>>, vector<16x80xbf16>,
    %c0_396 = arith.constant 0 : index
    %c10_397 = arith.constant 10 : index
    %354 = vector.load %arg16[%c0_396, %c10_397] : memref<16x102xbf16, #tpu.memory_space<vmem>>, vector<16x80xbf16>
    %c112_398 = arith.constant 112 : index
    %c0_399 = arith.constant 0 : index
    %355 = vector.load %arg9[%c112_398, %c0_399] : memref<288x288xbf16, #tpu.memory_space<vmem>>, vector<16x80xbf16>
    tpu.vector_store %arg9[%c112_398, %c0_399], %354 {strides = array<i32>} : memref<288x288xbf16, #tpu.memory_space<vmem>>, vector<16x80xbf16>,
    %c0_400 = arith.constant 0 : index
    %c11_401 = arith.constant 11 : index
    %356 = vector.load %arg15[%c0_400, %c11_401] : memref<16x102xbf16, #tpu.memory_space<vmem>>, vector<16x80xbf16>
    %c128_402 = arith.constant 128 : index
    %c0_403 = arith.constant 0 : index
    %357 = vector.load %arg9[%c128_402, %c0_403] : memref<288x288xbf16, #tpu.memory_space<vmem>>, vector<16x80xbf16>
    tpu.vector_store %arg9[%c128_402, %c0_403], %356 {strides = array<i32>} : memref<288x288xbf16, #tpu.memory_space<vmem>>, vector<16x80xbf16>,
    %c0_404 = arith.constant 0 : index
    %c11_405 = arith.constant 11 : index
    %358 = vector.load %arg16[%c0_404, %c11_405] : memref<16x102xbf16, #tpu.memory_space<vmem>>, vector<16x80xbf16>
    %c144 = arith.constant 144 : index
    %c0_406 = arith.constant 0 : index
    %359 = vector.load %arg9[%c144, %c0_406] : memref<288x288xbf16, #tpu.memory_space<vmem>>, vector<16x80xbf16>
    tpu.vector_store %arg9[%c144, %c0_406], %358 {strides = array<i32>} : memref<288x288xbf16, #tpu.memory_space<vmem>>, vector<16x80xbf16>,
    %c0_407 = arith.constant 0 : index
    %c12_408 = arith.constant 12 : index
    %360 = vector.load %arg15[%c0_407, %c12_408] : memref<16x102xbf16, #tpu.memory_space<vmem>>, vector<16x80xbf16>
    %c160_409 = arith.constant 160 : index
    %c0_410 = arith.constant 0 : index
    %361 = vector.load %arg9[%c160_409, %c0_410] : memref<288x288xbf16, #tpu.memory_space<vmem>>, vector<16x80xbf16>
    tpu.vector_store %arg9[%c160_409, %c0_410], %360 {strides = array<i32>} : memref<288x288xbf16, #tpu.memory_space<vmem>>, vector<16x80xbf16>,
    %c0_411 = arith.constant 0 : index
    %c12_412 = arith.constant 12 : index
    %362 = vector.load %arg16[%c0_411, %c12_412] : memref<16x102xbf16, #tpu.memory_space<vmem>>, vector<16x80xbf16>
    %c176 = arith.constant 176 : index
    %c0_413 = arith.constant 0 : index
    %363 = vector.load %arg9[%c176, %c0_413] : memref<288x288xbf16, #tpu.memory_space<vmem>>, vector<16x80xbf16>
    tpu.vector_store %arg9[%c176, %c0_413], %362 {strides = array<i32>} : memref<288x288xbf16, #tpu.memory_space<vmem>>, vector<16x80xbf16>,
    %c0_414 = arith.constant 0 : index
    %c20_415 = arith.constant 20 : index
    %364 = vector.load %arg15[%c0_414, %c20_415] : memref<16x102xbf16, #tpu.memory_space<vmem>>, vector<16x80xbf16>
    %c192_416 = arith.constant 192 : index
    %c0_417 = arith.constant 0 : index
    %365 = vector.load %arg9[%c192_416, %c0_417] : memref<288x288xbf16, #tpu.memory_space<vmem>>, vector<16x80xbf16>
    tpu.vector_store %arg9[%c192_416, %c0_417], %364 {strides = array<i32>} : memref<288x288xbf16, #tpu.memory_space<vmem>>, vector<16x80xbf16>,
    %c0_418 = arith.constant 0 : index
    %c20_419 = arith.constant 20 : index
    %366 = vector.load %arg16[%c0_418, %c20_419] : memref<16x102xbf16, #tpu.memory_space<vmem>>, vector<16x80xbf16>
    %c208 = arith.constant 208 : index
    %c0_420 = arith.constant 0 : index
    %367 = vector.load %arg9[%c208, %c0_420] : memref<288x288xbf16, #tpu.memory_space<vmem>>, vector<16x80xbf16>
    tpu.vector_store %arg9[%c208, %c0_420], %366 {strides = array<i32>} : memref<288x288xbf16, #tpu.memory_space<vmem>>, vector<16x80xbf16>,
    %c0_421 = arith.constant 0 : index
    %c21_422 = arith.constant 21 : index
    %368 = vector.load %arg15[%c0_421, %c21_422] : memref<16x102xbf16, #tpu.memory_space<vmem>>, vector<16x80xbf16>
    %c224_423 = arith.constant 224 : index
    %c0_424 = arith.constant 0 : index
    %369 = vector.load %arg9[%c224_423, %c0_424] : memref<288x288xbf16, #tpu.memory_space<vmem>>, vector<16x80xbf16>
    tpu.vector_store %arg9[%c224_423, %c0_424], %368 {strides = array<i32>} : memref<288x288xbf16, #tpu.memory_space<vmem>>, vector<16x80xbf16>,
    %c0_425 = arith.constant 0 : index
    %c21_426 = arith.constant 21 : index
    %370 = vector.load %arg16[%c0_425, %c21_426] : memref<16x102xbf16, #tpu.memory_space<vmem>>, vector<16x80xbf16>
    %c240 = arith.constant 240 : index
    %c0_427 = arith.constant 0 : index
    %371 = vector.load %arg9[%c240, %c0_427] : memref<288x288xbf16, #tpu.memory_space<vmem>>, vector<16x80xbf16>
    tpu.vector_store %arg9[%c240, %c0_427], %370 {strides = array<i32>} : memref<288x288xbf16, #tpu.memory_space<vmem>>, vector<16x80xbf16>,
    %c0_428 = arith.constant 0 : index
    %c22_429 = arith.constant 22 : index
    %372 = vector.load %arg15[%c0_428, %c22_429] : memref<16x102xbf16, #tpu.memory_space<vmem>>, vector<16x80xbf16>
    %c256_430 = arith.constant 256 : index
    %c0_431 = arith.constant 0 : index
    %373 = vector.load %arg9[%c256_430, %c0_431] : memref<288x288xbf16, #tpu.memory_space<vmem>>, vector<16x80xbf16>
    tpu.vector_store %arg9[%c256_430, %c0_431], %372 {strides = array<i32>} : memref<288x288xbf16, #tpu.memory_space<vmem>>, vector<16x80xbf16>,
    %c0_432 = arith.constant 0 : index
    %c22_433 = arith.constant 22 : index
    %374 = vector.load %arg16[%c0_432, %c22_433] : memref<16x102xbf16, #tpu.memory_space<vmem>>, vector<16x80xbf16>
    %c272 = arith.constant 272 : index
    %c0_434 = arith.constant 0 : index
    %375 = vector.load %arg9[%c272, %c0_434] : memref<288x288xbf16, #tpu.memory_space<vmem>>, vector<16x80xbf16>
    tpu.vector_store %arg9[%c272, %c0_434], %374 {strides = array<i32>} : memref<288x288xbf16, #tpu.memory_space<vmem>>, vector<16x80xbf16>,
    %c152 = arith.constant 152 : index
    %c0_435 = arith.constant 0 : index
    %376 = vector.load %arg2[%c152, %c0_435] : memref<216x288xbf16, #tpu.memory_space<vmem>>, vector<16x288xbf16>
    %c0_436 = arith.constant 0 : index
    %c0_437 = arith.constant 0 : index
    %377 = vector.load %arg9[%c0_436, %c0_437] : memref<288x288xbf16, #tpu.memory_space<vmem>>, vector<288x80xbf16>
    %cst_438 = arith.constant dense<0.000000e+00> : vector<16x80xf32>
    %378 = tpu.matmul %376, %377, %cst_438 {dimension_numbers = #tpu.dot_dimension_numbers<[1], [0], [0], [1], [0, 0, 1, 1], [], []>} : vector<16x288xbf16>, vector<288x80xbf16>, vector<16x80xf32> -> vector<16x80xf32>
    %c152_439 = arith.constant 152 : index
    %c0_440 = arith.constant 0 : index
    %379 = vector.load %arg3[%c152_439, %c0_440] : memref<216x1xf32, #tpu.memory_space<vmem>>, vector<16x1xf32>
    %380 = vector.broadcast %379 : vector<16x1xf32> to vector<16x80xf32>
    %381 = arith.addf %378, %380 : vector<16x80xf32>
    %cst_441 = arith.constant 0.000000e+00 : f32
    %382 = vector.broadcast %cst_441 : f32 to vector<16x80xf32>
    %383 = arith.maximumf %381, %382 : vector<16x80xf32>
    %384 = tpu.iota {dimensions = array<i32: 1>} : vector<1x80xi32>
    %c10_i32_442 = arith.constant 10 : i32
    %c0_i32_443 = arith.constant 0 : i32
    %385 = arith.cmpi eq, %c10_i32_442, %c0_i32_443 : i32
    %c1_i32_444 = arith.constant 1 : i32
    %386 = arith.select %385, %c1_i32_444, %c10_i32_442 : i32
    %387 = vector.broadcast %386 : i32 to vector<1x80xi32>
    %388 = arith.remsi %384, %387 : vector<1x80xi32>
    %c0_i32_445 = arith.constant 0 : i32
    %389 = vector.broadcast %c0_i32_445 : i32 to vector<1x80xi32>
    %390 = arith.cmpi ne, %388, %389 : vector<1x80xi32>
    %c0_i32_446 = arith.constant 0 : i32
    %391 = vector.broadcast %c0_i32_446 : i32 to vector<1x80xi32>
    %392 = arith.cmpi slt, %388, %391 : vector<1x80xi32>
    %c0_i32_447 = arith.constant 0 : i32
    %393 = arith.cmpi slt, %386, %c0_i32_447 : i32
    %394 = vector.broadcast %393 : i1 to vector<1x80xi1>
    %395 = vector.broadcast %394 : vector<1x80xi1> to vector<1x80xi1>
    %396 = arith.xori %392, %395 : vector<1x80xi1>
    %397 = arith.andi %396, %390 : vector<1x80xi1>
    %398 = vector.broadcast %386 : i32 to vector<1x80xi32>
    %399 = arith.addi %388, %398 : vector<1x80xi32>
    %400 = arith.select %397, %399, %388 : vector<1x80xi1>, vector<1x80xi32>
    %c8_i32_448 = arith.constant 8 : i32
    %401 = vector.broadcast %c8_i32_448 : i32 to vector<1x80xi32>
    %402 = arith.cmpi slt, %400, %401 : vector<1x80xi32>
    %cst_449 = arith.constant 0.000000e+00 : f32
    %403 = vector.shape_cast %402 : vector<1x80xi1> to vector<1x80xi1>
    %404 = vector.broadcast %403 : vector<1x80xi1> to vector<16x80xi1>
    %405 = vector.broadcast %cst_449 : f32 to vector<16x80xf32>
    %406 = arith.select %404, %383, %405 : vector<16x80xi1>, vector<16x80xf32>
    %407 = arith.truncf %406 : vector<16x80xf32> to vector<16x80xbf16>
    %c0_450 = arith.constant 0 : index
    %c11_451 = arith.constant 11 : index
    %408 = vector.load %arg17[%c0_450, %c11_451] : memref<16x102xbf16, #tpu.memory_space<vmem>>, vector<16x80xbf16>
    tpu.vector_store %arg17[%c0_450, %c11_451], %407 {strides = array<i32>} : memref<16x102xbf16, #tpu.memory_space<vmem>>, vector<16x80xbf16>,
    %c0_452 = arith.constant 0 : index
    %c0_453 = arith.constant 0 : index
    %409 = vector.load %arg17[%c0_452, %c0_453] : memref<16x102xbf16, #tpu.memory_space<vmem>>, vector<16x80xbf16>
    %c0_454 = arith.constant 0 : index
    %c0_455 = arith.constant 0 : index
    %410 = vector.load %arg9[%c0_454, %c0_455] : memref<288x288xbf16, #tpu.memory_space<vmem>>, vector<16x80xbf16>
    tpu.vector_store %arg9[%c0_454, %c0_455], %409 {strides = array<i32>} : memref<288x288xbf16, #tpu.memory_space<vmem>>, vector<16x80xbf16>,
    %c0_456 = arith.constant 0 : index
    %c1_457 = arith.constant 1 : index
    %411 = vector.load %arg17[%c0_456, %c1_457] : memref<16x102xbf16, #tpu.memory_space<vmem>>, vector<16x80xbf16>
    %c16_458 = arith.constant 16 : index
    %c0_459 = arith.constant 0 : index
    %412 = vector.load %arg9[%c16_458, %c0_459] : memref<288x288xbf16, #tpu.memory_space<vmem>>, vector<16x80xbf16>
    tpu.vector_store %arg9[%c16_458, %c0_459], %411 {strides = array<i32>} : memref<288x288xbf16, #tpu.memory_space<vmem>>, vector<16x80xbf16>,
    %c0_460 = arith.constant 0 : index
    %c2_461 = arith.constant 2 : index
    %413 = vector.load %arg17[%c0_460, %c2_461] : memref<16x102xbf16, #tpu.memory_space<vmem>>, vector<16x80xbf16>
    %c32_462 = arith.constant 32 : index
    %c0_463 = arith.constant 0 : index
    %414 = vector.load %arg9[%c32_462, %c0_463] : memref<288x288xbf16, #tpu.memory_space<vmem>>, vector<16x80xbf16>
    tpu.vector_store %arg9[%c32_462, %c0_463], %413 {strides = array<i32>} : memref<288x288xbf16, #tpu.memory_space<vmem>>, vector<16x80xbf16>,
    %c0_464 = arith.constant 0 : index
    %c10_465 = arith.constant 10 : index
    %415 = vector.load %arg17[%c0_464, %c10_465] : memref<16x102xbf16, #tpu.memory_space<vmem>>, vector<16x80xbf16>
    %c48_466 = arith.constant 48 : index
    %c0_467 = arith.constant 0 : index
    %416 = vector.load %arg9[%c48_466, %c0_467] : memref<288x288xbf16, #tpu.memory_space<vmem>>, vector<16x80xbf16>
    tpu.vector_store %arg9[%c48_466, %c0_467], %415 {strides = array<i32>} : memref<288x288xbf16, #tpu.memory_space<vmem>>, vector<16x80xbf16>,
    %c0_468 = arith.constant 0 : index
    %c11_469 = arith.constant 11 : index
    %417 = vector.load %arg17[%c0_468, %c11_469] : memref<16x102xbf16, #tpu.memory_space<vmem>>, vector<16x80xbf16>
    %c64_470 = arith.constant 64 : index
    %c0_471 = arith.constant 0 : index
    %418 = vector.load %arg9[%c64_470, %c0_471] : memref<288x288xbf16, #tpu.memory_space<vmem>>, vector<16x80xbf16>
    tpu.vector_store %arg9[%c64_470, %c0_471], %417 {strides = array<i32>} : memref<288x288xbf16, #tpu.memory_space<vmem>>, vector<16x80xbf16>,
    %c0_472 = arith.constant 0 : index
    %c12_473 = arith.constant 12 : index
    %419 = vector.load %arg17[%c0_472, %c12_473] : memref<16x102xbf16, #tpu.memory_space<vmem>>, vector<16x80xbf16>
    %c80_474 = arith.constant 80 : index
    %c0_475 = arith.constant 0 : index
    %420 = vector.load %arg9[%c80_474, %c0_475] : memref<288x288xbf16, #tpu.memory_space<vmem>>, vector<16x80xbf16>
    tpu.vector_store %arg9[%c80_474, %c0_475], %419 {strides = array<i32>} : memref<288x288xbf16, #tpu.memory_space<vmem>>, vector<16x80xbf16>,
    %c0_476 = arith.constant 0 : index
    %c20_477 = arith.constant 20 : index
    %421 = vector.load %arg17[%c0_476, %c20_477] : memref<16x102xbf16, #tpu.memory_space<vmem>>, vector<16x80xbf16>
    %c96_478 = arith.constant 96 : index
    %c0_479 = arith.constant 0 : index
    %422 = vector.load %arg9[%c96_478, %c0_479] : memref<288x288xbf16, #tpu.memory_space<vmem>>, vector<16x80xbf16>
    tpu.vector_store %arg9[%c96_478, %c0_479], %421 {strides = array<i32>} : memref<288x288xbf16, #tpu.memory_space<vmem>>, vector<16x80xbf16>,
    %c0_480 = arith.constant 0 : index
    %c21_481 = arith.constant 21 : index
    %423 = vector.load %arg17[%c0_480, %c21_481] : memref<16x102xbf16, #tpu.memory_space<vmem>>, vector<16x80xbf16>
    %c112_482 = arith.constant 112 : index
    %c0_483 = arith.constant 0 : index
    %424 = vector.load %arg9[%c112_482, %c0_483] : memref<288x288xbf16, #tpu.memory_space<vmem>>, vector<16x80xbf16>
    tpu.vector_store %arg9[%c112_482, %c0_483], %423 {strides = array<i32>} : memref<288x288xbf16, #tpu.memory_space<vmem>>, vector<16x80xbf16>,
    %c0_484 = arith.constant 0 : index
    %c22_485 = arith.constant 22 : index
    %425 = vector.load %arg17[%c0_484, %c22_485] : memref<16x102xbf16, #tpu.memory_space<vmem>>, vector<16x80xbf16>
    %c128_486 = arith.constant 128 : index
    %c0_487 = arith.constant 0 : index
    %426 = vector.load %arg9[%c128_486, %c0_487] : memref<288x288xbf16, #tpu.memory_space<vmem>>, vector<16x80xbf16>
    tpu.vector_store %arg9[%c128_486, %c0_487], %425 {strides = array<i32>} : memref<288x288xbf16, #tpu.memory_space<vmem>>, vector<16x80xbf16>,
    %c168 = arith.constant 168 : index
    %c0_488 = arith.constant 0 : index
    %427 = vector.load %arg2[%c168, %c0_488] : memref<216x288xbf16, #tpu.memory_space<vmem>>, vector<32x144xbf16>
    %c0_489 = arith.constant 0 : index
    %c0_490 = arith.constant 0 : index
    %428 = vector.load %arg9[%c0_489, %c0_490] : memref<288x288xbf16, #tpu.memory_space<vmem>>, vector<144x80xbf16>
    %cst_491 = arith.constant dense<0.000000e+00> : vector<32x80xf32>
    %429 = tpu.matmul %427, %428, %cst_491 {dimension_numbers = #tpu.dot_dimension_numbers<[1], [0], [0], [1], [0, 0, 1, 1], [], []>} : vector<32x144xbf16>, vector<144x80xbf16>, vector<32x80xf32> -> vector<32x80xf32>
    %c168_492 = arith.constant 168 : index
    %c0_493 = arith.constant 0 : index
    %430 = vector.load %arg3[%c168_492, %c0_493] : memref<216x1xf32, #tpu.memory_space<vmem>>, vector<32x1xf32>
    %431 = vector.broadcast %430 : vector<32x1xf32> to vector<32x80xf32>
    %432 = arith.addf %429, %431 : vector<32x80xf32>
    %433 = vector.extract_strided_slice %432 {offsets = [0, 0], sizes = [8, 80], strides = [1, 1]} : vector<32x80xf32> to vector<8x80xf32>
    %434 = arith.truncf %433 : vector<8x80xf32> to vector<8x80xbf16>
    %c0_494 = arith.constant 0 : index
    %c0_495 = arith.constant 0 : index
    %c0_496 = arith.constant 0 : index
    %435 = vector.load %arg7[%c0_494, %c0_495, %c0_496] : memref<4x80x326xbf16, #tpu.memory_space<vmem>>, vector<1x80x326xbf16>
    %436 = vector.shape_cast %435 : vector<1x80x326xbf16> to vector<80x326xbf16>
    %cst_497 = arith.constant dense<0.000000e+00> : vector<8x326xf32>
    %437 = tpu.matmul %434, %436, %cst_497 {dimension_numbers = #tpu.dot_dimension_numbers<[1], [0], [0], [1], [0, 0, 1, 1], [], []>} : vector<8x80xbf16>, vector<80x326xbf16>, vector<8x326xf32> -> vector<8x326xf32>
    %438 = vector.extract_strided_slice %432 {offsets = [8, 0], sizes = [8, 80], strides = [1, 1]} : vector<32x80xf32> to vector<8x80xf32>
    %439 = arith.truncf %438 : vector<8x80xf32> to vector<8x80xbf16>
    %c1_498 = arith.constant 1 : index
    %c0_499 = arith.constant 0 : index
    %c0_500 = arith.constant 0 : index
    %440 = vector.load %arg7[%c1_498, %c0_499, %c0_500] : memref<4x80x326xbf16, #tpu.memory_space<vmem>>, vector<1x80x326xbf16>
    %441 = vector.shape_cast %440 : vector<1x80x326xbf16> to vector<80x326xbf16>
    %cst_501 = arith.constant dense<0.000000e+00> : vector<8x326xf32>
    %442 = tpu.matmul %439, %441, %cst_501 {dimension_numbers = #tpu.dot_dimension_numbers<[1], [0], [0], [1], [0, 0, 1, 1], [], []>} : vector<8x80xbf16>, vector<80x326xbf16>, vector<8x326xf32> -> vector<8x326xf32>
    %443 = arith.addf %437, %442 : vector<8x326xf32>
    %444 = vector.extract_strided_slice %432 {offsets = [16, 0], sizes = [8, 80], strides = [1, 1]} : vector<32x80xf32> to vector<8x80xf32>
    %445 = arith.truncf %444 : vector<8x80xf32> to vector<8x80xbf16>
    %c2_502 = arith.constant 2 : index
    %c0_503 = arith.constant 0 : index
    %c0_504 = arith.constant 0 : index
    %446 = vector.load %arg7[%c2_502, %c0_503, %c0_504] : memref<4x80x326xbf16, #tpu.memory_space<vmem>>, vector<1x80x326xbf16>
    %447 = vector.shape_cast %446 : vector<1x80x326xbf16> to vector<80x326xbf16>
    %cst_505 = arith.constant dense<0.000000e+00> : vector<8x326xf32>
    %448 = tpu.matmul %445, %447, %cst_505 {dimension_numbers = #tpu.dot_dimension_numbers<[1], [0], [0], [1], [0, 0, 1, 1], [], []>} : vector<8x80xbf16>, vector<80x326xbf16>, vector<8x326xf32> -> vector<8x326xf32>
    %449 = arith.addf %443, %448 : vector<8x326xf32>
    %450 = vector.extract_strided_slice %432 {offsets = [24, 0], sizes = [8, 80], strides = [1, 1]} : vector<32x80xf32> to vector<8x80xf32>
    %451 = arith.truncf %450 : vector<8x80xf32> to vector<8x80xbf16>
    %c3_506 = arith.constant 3 : index
    %c0_507 = arith.constant 0 : index
    %c0_508 = arith.constant 0 : index
    %452 = vector.load %arg7[%c3_506, %c0_507, %c0_508] : memref<4x80x326xbf16, #tpu.memory_space<vmem>>, vector<1x80x326xbf16>
    %453 = vector.shape_cast %452 : vector<1x80x326xbf16> to vector<80x326xbf16>
    %cst_509 = arith.constant dense<0.000000e+00> : vector<8x326xf32>
    %454 = tpu.matmul %451, %453, %cst_509 {dimension_numbers = #tpu.dot_dimension_numbers<[1], [0], [0], [1], [0, 0, 1, 1], [], []>} : vector<8x80xbf16>, vector<80x326xbf16>, vector<8x326xf32> -> vector<8x326xf32>
    %455 = arith.addf %449, %454 : vector<8x326xf32>
    %456 = arith.truncf %455 : vector<8x326xf32> to vector<8x326xbf16>
    %c0_510 = arith.constant 0 : index
    %c0_511 = arith.constant 0 : index
    %457 = vector.load %arg12[%c0_510, %c0_511] : memref<8x326xbf16, #tpu.memory_space<vmem>>, vector<8x326xbf16>
    tpu.vector_store %arg12[%c0_510, %c0_511], %456 {strides = array<i32>} : memref<8x326xbf16, #tpu.memory_space<vmem>>, vector<8x326xbf16>,
    %c0_512 = arith.constant 0 : index
    %c0_513 = arith.constant 0 : index
    %458 = vector.load %arg11[%c0_512, %c0_513] : memref<8x326xbf16, #tpu.memory_space<vmem>>, vector<8x288xbf16>
    %c0_514 = arith.constant 0 : index
    %c0_515 = arith.constant 0 : index
    %459 = vector.load %arg9[%c0_514, %c0_515] : memref<288x288xbf16, #tpu.memory_space<vmem>>, vector<8x288xbf16>
    tpu.vector_store %arg9[%c0_514, %c0_515], %458 {strides = array<i32>} : memref<288x288xbf16, #tpu.memory_space<vmem>>, vector<8x288xbf16>,
    %c0_516 = arith.constant 0 : index
    %c0_517 = arith.constant 0 : index
    %460 = vector.load %arg12[%c0_516, %c0_517] : memref<8x326xbf16, #tpu.memory_space<vmem>>, vector<8x288xbf16>
    %c8_518 = arith.constant 8 : index
    %c0_519 = arith.constant 0 : index
    %461 = vector.load %arg9[%c8_518, %c0_519] : memref<288x288xbf16, #tpu.memory_space<vmem>>, vector<8x288xbf16>
    tpu.vector_store %arg9[%c8_518, %c0_519], %460 {strides = array<i32>} : memref<288x288xbf16, #tpu.memory_space<vmem>>, vector<8x288xbf16>,
    %c0_520 = arith.constant 0 : index
    %c1_521 = arith.constant 1 : index
    %462 = vector.load %arg11[%c0_520, %c1_521] : memref<8x326xbf16, #tpu.memory_space<vmem>>, vector<8x288xbf16>
    %c16_522 = arith.constant 16 : index
    %c0_523 = arith.constant 0 : index
    %463 = vector.load %arg9[%c16_522, %c0_523] : memref<288x288xbf16, #tpu.memory_space<vmem>>, vector<8x288xbf16>
    tpu.vector_store %arg9[%c16_522, %c0_523], %462 {strides = array<i32>} : memref<288x288xbf16, #tpu.memory_space<vmem>>, vector<8x288xbf16>,
    %c0_524 = arith.constant 0 : index
    %c1_525 = arith.constant 1 : index
    %464 = vector.load %arg12[%c0_524, %c1_525] : memref<8x326xbf16, #tpu.memory_space<vmem>>, vector<8x288xbf16>
    %c24_526 = arith.constant 24 : index
    %c0_527 = arith.constant 0 : index
    %465 = vector.load %arg9[%c24_526, %c0_527] : memref<288x288xbf16, #tpu.memory_space<vmem>>, vector<8x288xbf16>
    tpu.vector_store %arg9[%c24_526, %c0_527], %464 {strides = array<i32>} : memref<288x288xbf16, #tpu.memory_space<vmem>>, vector<8x288xbf16>,
    %c0_528 = arith.constant 0 : index
    %c2_529 = arith.constant 2 : index
    %466 = vector.load %arg11[%c0_528, %c2_529] : memref<8x326xbf16, #tpu.memory_space<vmem>>, vector<8x288xbf16>
    %c32_530 = arith.constant 32 : index
    %c0_531 = arith.constant 0 : index
    %467 = vector.load %arg9[%c32_530, %c0_531] : memref<288x288xbf16, #tpu.memory_space<vmem>>, vector<8x288xbf16>
    tpu.vector_store %arg9[%c32_530, %c0_531], %466 {strides = array<i32>} : memref<288x288xbf16, #tpu.memory_space<vmem>>, vector<8x288xbf16>,
    %c0_532 = arith.constant 0 : index
    %c2_533 = arith.constant 2 : index
    %468 = vector.load %arg12[%c0_532, %c2_533] : memref<8x326xbf16, #tpu.memory_space<vmem>>, vector<8x288xbf16>
    %c40_534 = arith.constant 40 : index
    %c0_535 = arith.constant 0 : index
    %469 = vector.load %arg9[%c40_534, %c0_535] : memref<288x288xbf16, #tpu.memory_space<vmem>>, vector<8x288xbf16>
    tpu.vector_store %arg9[%c40_534, %c0_535], %468 {strides = array<i32>} : memref<288x288xbf16, #tpu.memory_space<vmem>>, vector<8x288xbf16>,
    %c0_536 = arith.constant 0 : index
    %c18_537 = arith.constant 18 : index
    %470 = vector.load %arg11[%c0_536, %c18_537] : memref<8x326xbf16, #tpu.memory_space<vmem>>, vector<8x288xbf16>
    %c48_538 = arith.constant 48 : index
    %c0_539 = arith.constant 0 : index
    %471 = vector.load %arg9[%c48_538, %c0_539] : memref<288x288xbf16, #tpu.memory_space<vmem>>, vector<8x288xbf16>
    tpu.vector_store %arg9[%c48_538, %c0_539], %470 {strides = array<i32>} : memref<288x288xbf16, #tpu.memory_space<vmem>>, vector<8x288xbf16>,
    %c0_540 = arith.constant 0 : index
    %c18_541 = arith.constant 18 : index
    %472 = vector.load %arg12[%c0_540, %c18_541] : memref<8x326xbf16, #tpu.memory_space<vmem>>, vector<8x288xbf16>
    %c56_542 = arith.constant 56 : index
    %c0_543 = arith.constant 0 : index
    %473 = vector.load %arg9[%c56_542, %c0_543] : memref<288x288xbf16, #tpu.memory_space<vmem>>, vector<8x288xbf16>
    tpu.vector_store %arg9[%c56_542, %c0_543], %472 {strides = array<i32>} : memref<288x288xbf16, #tpu.memory_space<vmem>>, vector<8x288xbf16>,
    %c0_544 = arith.constant 0 : index
    %c19_545 = arith.constant 19 : index
    %474 = vector.load %arg11[%c0_544, %c19_545] : memref<8x326xbf16, #tpu.memory_space<vmem>>, vector<8x288xbf16>
    %c64_546 = arith.constant 64 : index
    %c0_547 = arith.constant 0 : index
    %475 = vector.load %arg9[%c64_546, %c0_547] : memref<288x288xbf16, #tpu.memory_space<vmem>>, vector<8x288xbf16>
    tpu.vector_store %arg9[%c64_546, %c0_547], %474 {strides = array<i32>} : memref<288x288xbf16, #tpu.memory_space<vmem>>, vector<8x288xbf16>,
    %c0_548 = arith.constant 0 : index
    %c19_549 = arith.constant 19 : index
    %476 = vector.load %arg12[%c0_548, %c19_549] : memref<8x326xbf16, #tpu.memory_space<vmem>>, vector<8x288xbf16>
    %c72 = arith.constant 72 : index
    %c0_550 = arith.constant 0 : index
    %477 = vector.load %arg9[%c72, %c0_550] : memref<288x288xbf16, #tpu.memory_space<vmem>>, vector<8x288xbf16>
    tpu.vector_store %arg9[%c72, %c0_550], %476 {strides = array<i32>} : memref<288x288xbf16, #tpu.memory_space<vmem>>, vector<8x288xbf16>,
    %c0_551 = arith.constant 0 : index
    %c20_552 = arith.constant 20 : index
    %478 = vector.load %arg11[%c0_551, %c20_552] : memref<8x326xbf16, #tpu.memory_space<vmem>>, vector<8x288xbf16>
    %c80_553 = arith.constant 80 : index
    %c0_554 = arith.constant 0 : index
    %479 = vector.load %arg9[%c80_553, %c0_554] : memref<288x288xbf16, #tpu.memory_space<vmem>>, vector<8x288xbf16>
    tpu.vector_store %arg9[%c80_553, %c0_554], %478 {strides = array<i32>} : memref<288x288xbf16, #tpu.memory_space<vmem>>, vector<8x288xbf16>,
    %c0_555 = arith.constant 0 : index
    %c20_556 = arith.constant 20 : index
    %480 = vector.load %arg12[%c0_555, %c20_556] : memref<8x326xbf16, #tpu.memory_space<vmem>>, vector<8x288xbf16>
    %c88_557 = arith.constant 88 : index
    %c0_558 = arith.constant 0 : index
    %481 = vector.load %arg9[%c88_557, %c0_558] : memref<288x288xbf16, #tpu.memory_space<vmem>>, vector<8x288xbf16>
    tpu.vector_store %arg9[%c88_557, %c0_558], %480 {strides = array<i32>} : memref<288x288xbf16, #tpu.memory_space<vmem>>, vector<8x288xbf16>,
    %c0_559 = arith.constant 0 : index
    %c36_560 = arith.constant 36 : index
    %482 = vector.load %arg11[%c0_559, %c36_560] : memref<8x326xbf16, #tpu.memory_space<vmem>>, vector<8x288xbf16>
    %c96_561 = arith.constant 96 : index
    %c0_562 = arith.constant 0 : index
    %483 = vector.load %arg9[%c96_561, %c0_562] : memref<288x288xbf16, #tpu.memory_space<vmem>>, vector<8x288xbf16>
    tpu.vector_store %arg9[%c96_561, %c0_562], %482 {strides = array<i32>} : memref<288x288xbf16, #tpu.memory_space<vmem>>, vector<8x288xbf16>,
    %c0_563 = arith.constant 0 : index
    %c36_564 = arith.constant 36 : index
    %484 = vector.load %arg12[%c0_563, %c36_564] : memref<8x326xbf16, #tpu.memory_space<vmem>>, vector<8x288xbf16>
    %c104 = arith.constant 104 : index
    %c0_565 = arith.constant 0 : index
    %485 = vector.load %arg9[%c104, %c0_565] : memref<288x288xbf16, #tpu.memory_space<vmem>>, vector<8x288xbf16>
    tpu.vector_store %arg9[%c104, %c0_565], %484 {strides = array<i32>} : memref<288x288xbf16, #tpu.memory_space<vmem>>, vector<8x288xbf16>,
    %c0_566 = arith.constant 0 : index
    %c37_567 = arith.constant 37 : index
    %486 = vector.load %arg11[%c0_566, %c37_567] : memref<8x326xbf16, #tpu.memory_space<vmem>>, vector<8x288xbf16>
    %c112_568 = arith.constant 112 : index
    %c0_569 = arith.constant 0 : index
    %487 = vector.load %arg9[%c112_568, %c0_569] : memref<288x288xbf16, #tpu.memory_space<vmem>>, vector<8x288xbf16>
    tpu.vector_store %arg9[%c112_568, %c0_569], %486 {strides = array<i32>} : memref<288x288xbf16, #tpu.memory_space<vmem>>, vector<8x288xbf16>,
    %c0_570 = arith.constant 0 : index
    %c37_571 = arith.constant 37 : index
    %488 = vector.load %arg12[%c0_570, %c37_571] : memref<8x326xbf16, #tpu.memory_space<vmem>>, vector<8x288xbf16>
    %c120 = arith.constant 120 : index
    %c0_572 = arith.constant 0 : index
    %489 = vector.load %arg9[%c120, %c0_572] : memref<288x288xbf16, #tpu.memory_space<vmem>>, vector<8x288xbf16>
    tpu.vector_store %arg9[%c120, %c0_572], %488 {strides = array<i32>} : memref<288x288xbf16, #tpu.memory_space<vmem>>, vector<8x288xbf16>,
    %c0_573 = arith.constant 0 : index
    %c38_574 = arith.constant 38 : index
    %490 = vector.load %arg11[%c0_573, %c38_574] : memref<8x326xbf16, #tpu.memory_space<vmem>>, vector<8x288xbf16>
    %c128_575 = arith.constant 128 : index
    %c0_576 = arith.constant 0 : index
    %491 = vector.load %arg9[%c128_575, %c0_576] : memref<288x288xbf16, #tpu.memory_space<vmem>>, vector<8x288xbf16>
    tpu.vector_store %arg9[%c128_575, %c0_576], %490 {strides = array<i32>} : memref<288x288xbf16, #tpu.memory_space<vmem>>, vector<8x288xbf16>,
    %c0_577 = arith.constant 0 : index
    %c38_578 = arith.constant 38 : index
    %492 = vector.load %arg12[%c0_577, %c38_578] : memref<8x326xbf16, #tpu.memory_space<vmem>>, vector<8x288xbf16>
    %c136 = arith.constant 136 : index
    %c0_579 = arith.constant 0 : index
    %493 = vector.load %arg9[%c136, %c0_579] : memref<288x288xbf16, #tpu.memory_space<vmem>>, vector<8x288xbf16>
    tpu.vector_store %arg9[%c136, %c0_579], %492 {strides = array<i32>} : memref<288x288xbf16, #tpu.memory_space<vmem>>, vector<8x288xbf16>,
    %c200 = arith.constant 200 : index
    %c0_580 = arith.constant 0 : index
    %494 = vector.load %arg2[%c200, %c0_580] : memref<216x288xbf16, #tpu.memory_space<vmem>>, vector<8x144xbf16>
    %c0_581 = arith.constant 0 : index
    %c0_582 = arith.constant 0 : index
    %495 = vector.load %arg9[%c0_581, %c0_582] : memref<288x288xbf16, #tpu.memory_space<vmem>>, vector<144x288xbf16>
    %cst_583 = arith.constant dense<0.000000e+00> : vector<8x288xf32>
    %496 = tpu.matmul %494, %495, %cst_583 {dimension_numbers = #tpu.dot_dimension_numbers<[1], [0], [0], [1], [0, 0, 1, 1], [], []>} : vector<8x144xbf16>, vector<144x288xbf16>, vector<8x288xf32> -> vector<8x288xf32>
    %c200_584 = arith.constant 200 : index
    %c0_585 = arith.constant 0 : index
    %497 = vector.load %arg3[%c200_584, %c0_585] : memref<216x1xf32, #tpu.memory_space<vmem>>, vector<8x1xf32>
    %498 = vector.broadcast %497 : vector<8x1xf32> to vector<8x288xf32>
    %499 = arith.addf %496, %498 : vector<8x288xf32>
    %cst_586 = arith.constant 0.000000e+00 : f32
    %500 = vector.broadcast %cst_586 : f32 to vector<8x288xf32>
    %501 = arith.maximumf %499, %500 : vector<8x288xf32>
    %502 = tpu.iota {dimensions = array<i32: 1>} : vector<1x288xi32>
    %c18_i32_587 = arith.constant 18 : i32
    %c0_i32_588 = arith.constant 0 : i32
    %503 = arith.cmpi eq, %c18_i32_587, %c0_i32_588 : i32
    %c1_i32_589 = arith.constant 1 : i32
    %504 = arith.select %503, %c1_i32_589, %c18_i32_587 : i32
    %505 = vector.broadcast %504 : i32 to vector<1x288xi32>
    %506 = arith.remsi %502, %505 : vector<1x288xi32>
    %c0_i32_590 = arith.constant 0 : i32
    %507 = vector.broadcast %c0_i32_590 : i32 to vector<1x288xi32>
    %508 = arith.cmpi ne, %506, %507 : vector<1x288xi32>
    %c0_i32_591 = arith.constant 0 : i32
    %509 = vector.broadcast %c0_i32_591 : i32 to vector<1x288xi32>
    %510 = arith.cmpi slt, %506, %509 : vector<1x288xi32>
    %c0_i32_592 = arith.constant 0 : i32
    %511 = arith.cmpi slt, %504, %c0_i32_592 : i32
    %512 = vector.broadcast %511 : i1 to vector<1x288xi1>
    %513 = vector.broadcast %512 : vector<1x288xi1> to vector<1x288xi1>
    %514 = arith.xori %510, %513 : vector<1x288xi1>
    %515 = arith.andi %514, %508 : vector<1x288xi1>
    %516 = vector.broadcast %504 : i32 to vector<1x288xi32>
    %517 = arith.addi %506, %516 : vector<1x288xi32>
    %518 = arith.select %515, %517, %506 : vector<1x288xi1>, vector<1x288xi32>
    %c16_i32_593 = arith.constant 16 : i32
    %519 = vector.broadcast %c16_i32_593 : i32 to vector<1x288xi32>
    %520 = arith.cmpi slt, %518, %519 : vector<1x288xi32>
    %cst_594 = arith.constant 0.000000e+00 : f32
    %521 = vector.shape_cast %520 : vector<1x288xi1> to vector<1x288xi1>
    %522 = vector.broadcast %521 : vector<1x288xi1> to vector<8x288xi1>
    %523 = vector.broadcast %cst_594 : f32 to vector<8x288xf32>
    %524 = arith.select %522, %501, %523 : vector<8x288xi1>, vector<8x288xf32>
    %525 = arith.truncf %524 : vector<8x288xf32> to vector<8x288xbf16>
    %c0_595 = arith.constant 0 : index
    %c19_596 = arith.constant 19 : index
    %526 = vector.load %arg13[%c0_595, %c19_596] : memref<8x326xbf16, #tpu.memory_space<vmem>>, vector<8x288xbf16>
    tpu.vector_store %arg13[%c0_595, %c19_596], %525 {strides = array<i32>} : memref<8x326xbf16, #tpu.memory_space<vmem>>, vector<8x288xbf16>,
    %c0_597 = arith.constant 0 : index
    %c0_598 = arith.constant 0 : index
    %527 = vector.load %arg13[%c0_597, %c0_598] : memref<8x326xbf16, #tpu.memory_space<vmem>>, vector<8x326xbf16>
    %c0_599 = arith.constant 0 : index
    %c0_600 = arith.constant 0 : index
    %528 = vector.load %arg10[%c0_599, %c0_600] : memref<8x326xbf16, #tpu.memory_space<vmem>>, vector<8x326xbf16>
    %529 = arith.addf %527, %528 : vector<8x326xbf16>
    %c0_601 = arith.constant 0 : index
    %c0_602 = arith.constant 0 : index
    %530 = vector.load %arg12[%c0_601, %c0_602] : memref<8x326xbf16, #tpu.memory_space<vmem>>, vector<8x326xbf16>
    tpu.vector_store %arg12[%c0_601, %c0_602], %529 {strides = array<i32>} : memref<8x326xbf16, #tpu.memory_space<vmem>>, vector<8x326xbf16>,
    %c0_603 = arith.constant 0 : index
    %c0_604 = arith.constant 0 : index
    %531 = vector.load %arg12[%c0_603, %c0_604] : memref<8x326xbf16, #tpu.memory_space<vmem>>, vector<8x288xbf16>
    %c0_605 = arith.constant 0 : index
    %c0_606 = arith.constant 0 : index
    %532 = vector.load %arg9[%c0_605, %c0_606] : memref<288x288xbf16, #tpu.memory_space<vmem>>, vector<8x288xbf16>
    tpu.vector_store %arg9[%c0_605, %c0_606], %531 {strides = array<i32>} : memref<288x288xbf16, #tpu.memory_space<vmem>>, vector<8x288xbf16>,
    %c0_607 = arith.constant 0 : index
    %c1_608 = arith.constant 1 : index
    %533 = vector.load %arg12[%c0_607, %c1_608] : memref<8x326xbf16, #tpu.memory_space<vmem>>, vector<8x288xbf16>
    %c8_609 = arith.constant 8 : index
    %c0_610 = arith.constant 0 : index
    %534 = vector.load %arg9[%c8_609, %c0_610] : memref<288x288xbf16, #tpu.memory_space<vmem>>, vector<8x288xbf16>
    tpu.vector_store %arg9[%c8_609, %c0_610], %533 {strides = array<i32>} : memref<288x288xbf16, #tpu.memory_space<vmem>>, vector<8x288xbf16>,
    %c0_611 = arith.constant 0 : index
    %c2_612 = arith.constant 2 : index
    %535 = vector.load %arg12[%c0_611, %c2_612] : memref<8x326xbf16, #tpu.memory_space<vmem>>, vector<8x288xbf16>
    %c16_613 = arith.constant 16 : index
    %c0_614 = arith.constant 0 : index
    %536 = vector.load %arg9[%c16_613, %c0_614] : memref<288x288xbf16, #tpu.memory_space<vmem>>, vector<8x288xbf16>
    tpu.vector_store %arg9[%c16_613, %c0_614], %535 {strides = array<i32>} : memref<288x288xbf16, #tpu.memory_space<vmem>>, vector<8x288xbf16>,
    %c0_615 = arith.constant 0 : index
    %c18_616 = arith.constant 18 : index
    %537 = vector.load %arg12[%c0_615, %c18_616] : memref<8x326xbf16, #tpu.memory_space<vmem>>, vector<8x288xbf16>
    %c24_617 = arith.constant 24 : index
    %c0_618 = arith.constant 0 : index
    %538 = vector.load %arg9[%c24_617, %c0_618] : memref<288x288xbf16, #tpu.memory_space<vmem>>, vector<8x288xbf16>
    tpu.vector_store %arg9[%c24_617, %c0_618], %537 {strides = array<i32>} : memref<288x288xbf16, #tpu.memory_space<vmem>>, vector<8x288xbf16>,
    %c0_619 = arith.constant 0 : index
    %c19_620 = arith.constant 19 : index
    %539 = vector.load %arg12[%c0_619, %c19_620] : memref<8x326xbf16, #tpu.memory_space<vmem>>, vector<8x288xbf16>
    %c32_621 = arith.constant 32 : index
    %c0_622 = arith.constant 0 : index
    %540 = vector.load %arg9[%c32_621, %c0_622] : memref<288x288xbf16, #tpu.memory_space<vmem>>, vector<8x288xbf16>
    tpu.vector_store %arg9[%c32_621, %c0_622], %539 {strides = array<i32>} : memref<288x288xbf16, #tpu.memory_space<vmem>>, vector<8x288xbf16>,
    %c0_623 = arith.constant 0 : index
    %c20_624 = arith.constant 20 : index
    %541 = vector.load %arg12[%c0_623, %c20_624] : memref<8x326xbf16, #tpu.memory_space<vmem>>, vector<8x288xbf16>
    %c40_625 = arith.constant 40 : index
    %c0_626 = arith.constant 0 : index
    %542 = vector.load %arg9[%c40_625, %c0_626] : memref<288x288xbf16, #tpu.memory_space<vmem>>, vector<8x288xbf16>
    tpu.vector_store %arg9[%c40_625, %c0_626], %541 {strides = array<i32>} : memref<288x288xbf16, #tpu.memory_space<vmem>>, vector<8x288xbf16>,
    %c0_627 = arith.constant 0 : index
    %c36_628 = arith.constant 36 : index
    %543 = vector.load %arg12[%c0_627, %c36_628] : memref<8x326xbf16, #tpu.memory_space<vmem>>, vector<8x288xbf16>
    %c48_629 = arith.constant 48 : index
    %c0_630 = arith.constant 0 : index
    %544 = vector.load %arg9[%c48_629, %c0_630] : memref<288x288xbf16, #tpu.memory_space<vmem>>, vector<8x288xbf16>
    tpu.vector_store %arg9[%c48_629, %c0_630], %543 {strides = array<i32>} : memref<288x288xbf16, #tpu.memory_space<vmem>>, vector<8x288xbf16>,
    %c0_631 = arith.constant 0 : index
    %c37_632 = arith.constant 37 : index
    %545 = vector.load %arg12[%c0_631, %c37_632] : memref<8x326xbf16, #tpu.memory_space<vmem>>, vector<8x288xbf16>
    %c56_633 = arith.constant 56 : index
    %c0_634 = arith.constant 0 : index
    %546 = vector.load %arg9[%c56_633, %c0_634] : memref<288x288xbf16, #tpu.memory_space<vmem>>, vector<8x288xbf16>
    tpu.vector_store %arg9[%c56_633, %c0_634], %545 {strides = array<i32>} : memref<288x288xbf16, #tpu.memory_space<vmem>>, vector<8x288xbf16>,
    %c0_635 = arith.constant 0 : index
    %c38_636 = arith.constant 38 : index
    %547 = vector.load %arg12[%c0_635, %c38_636] : memref<8x326xbf16, #tpu.memory_space<vmem>>, vector<8x288xbf16>
    %c64_637 = arith.constant 64 : index
    %c0_638 = arith.constant 0 : index
    %548 = vector.load %arg9[%c64_637, %c0_638] : memref<288x288xbf16, #tpu.memory_space<vmem>>, vector<8x288xbf16>
    tpu.vector_store %arg9[%c64_637, %c0_638], %547 {strides = array<i32>} : memref<288x288xbf16, #tpu.memory_space<vmem>>, vector<8x288xbf16>,
    %c208_639 = arith.constant 208 : index
    %c0_640 = arith.constant 0 : index
    %549 = vector.load %arg2[%c208_639, %c0_640] : memref<216x288xbf16, #tpu.memory_space<vmem>>, vector<3x72xbf16>
    %c0_641 = arith.constant 0 : index
    %c0_642 = arith.constant 0 : index
    %550 = vector.load %arg9[%c0_641, %c0_642] : memref<288x288xbf16, #tpu.memory_space<vmem>>, vector<72x288xbf16>
    %cst_643 = arith.constant dense<0.000000e+00> : vector<3x288xf32>
    %551 = tpu.matmul %549, %550, %cst_643 {dimension_numbers = #tpu.dot_dimension_numbers<[1], [0], [0], [1], [0, 0, 1, 1], [], []>} : vector<3x72xbf16>, vector<72x288xbf16>, vector<3x288xf32> -> vector<3x288xf32>
    %c208_644 = arith.constant 208 : index
    %c0_645 = arith.constant 0 : index
    %552 = vector.load %arg3[%c208_644, %c0_645] : memref<216x1xf32, #tpu.memory_space<vmem>>, vector<3x1xf32>
    %553 = vector.broadcast %552 : vector<3x1xf32> to vector<3x288xf32>
    %554 = arith.addf %551, %553 : vector<3x288xf32>
    %c0_646 = arith.constant 0 : index
    %c0_647 = arith.constant 0 : index
    %c0_648 = arith.constant 0 : index
    %555 = vector.load %arg8[%c0_646, %c0_647, %c0_648] : memref<1x3x288xf32, #tpu.memory_space<vmem>>, vector<1x3x288xf32>
    %556 = vector.shape_cast %555 : vector<1x3x288xf32> to vector<3x288xf32>
    %557 = vector.shape_cast %554 : vector<3x288xf32> to vector<1x3x288xf32>
    tpu.vector_store %arg8[%c0_646, %c0_647, %c0_648], %557 {strides = array<i32>} : memref<1x3x288xf32, #tpu.memory_space<vmem>>, vector<1x3x288xf32>,
    return
  }
  func.func @transform_0(%arg0: i32) -> (i32, i32, i32) {
    %c0_i32 = arith.constant 0 : i32
    %c0_i32_0 = arith.constant 0 : i32
    %c0_i32_1 = arith.constant 0 : i32
    return %arg0, %c0_i32, %c0_i32_0 : i32, i32, i32
  }
  func.func @transform_1(%arg0: i32) -> (i32, i32) {
    %c0_i32 = arith.constant 0 : i32
    %c0_i32_0 = arith.constant 0 : i32
    %c0_i32_1 = arith.constant 0 : i32
    return %c0_i32, %c0_i32_0 : i32, i32
  }
  func.func @transform_2(%arg0: i32) -> (i32, i32) {
    %c0_i32 = arith.constant 0 : i32
    %c0_i32_0 = arith.constant 0 : i32
    %c0_i32_1 = arith.constant 0 : i32
    return %c0_i32, %c0_i32_0 : i32, i32
  }
  func.func @transform_3(%arg0: i32) -> (i32, i32) {
    %c0_i32 = arith.constant 0 : i32
    %c0_i32_0 = arith.constant 0 : i32
    %c0_i32_1 = arith.constant 0 : i32
    return %c0_i32, %c0_i32_0 : i32, i32
  }
  func.func @transform_4(%arg0: i32) -> (i32, i32) {
    %c0_i32 = arith.constant 0 : i32
    %c0_i32_0 = arith.constant 0 : i32
    %c0_i32_1 = arith.constant 0 : i32
    return %c0_i32, %c0_i32_0 : i32, i32
  }
  func.func @transform_5(%arg0: i32) -> (i32, i32, i32) {
    %c0_i32 = arith.constant 0 : i32
    %c0_i32_0 = arith.constant 0 : i32
    %c0_i32_1 = arith.constant 0 : i32
    %c0_i32_2 = arith.constant 0 : i32
    return %c0_i32, %c0_i32_0, %c0_i32_1 : i32, i32, i32
  }
  func.func @transform_6(%arg0: i32) -> (i32, i32, i32) {
    %c0_i32 = arith.constant 0 : i32
    %c0_i32_0 = arith.constant 0 : i32
    %c0_i32_1 = arith.constant 0 : i32
    %c0_i32_2 = arith.constant 0 : i32
    return %c0_i32, %c0_i32_0, %c0_i32_1 : i32, i32, i32
  }
  func.func @transform_7(%arg0: i32) -> (i32, i32, i32) {
    %c0_i32 = arith.constant 0 : i32
    %c0_i32_0 = arith.constant 0 : i32
    %c0_i32_1 = arith.constant 0 : i32
    return %arg0, %c0_i32, %c0_i32_0 : i32, i32, i32
  }
}

</mosaic_0001>

<bundles_post_ra>
// kernel: forward.1
= control target key start
LH: loop header
LB: loop body
LE: loop exit
PB: predicated region body
PF: predicated region fallthrough
CT: control target
= control target key end

     0   :  { %s6145_s24 = smov 0   ;;  %s7465_s0 = inlined_call_operand.vmem [shape: bf16[2,8,326], index: 0, kind: input, shape index: {}]   ;;  %s7466_s1 = inlined_call_operand.vmem [shape: bf16[216,288], index: 1, kind: input, shape index: {}]   ;;  %s7467_s2 = inlined_call_operand.vmem [shape: f32[216,1], index: 2, kind: input, shape index: {}]   ;;  %s7468_s3 = inlined_call_operand.vmem [shape: bf16[288,102], index: 3, kind: input, shape index: {}]   ;;  %s7469_s4 = inlined_call_operand.vmem [shape: bf16[80,38], index: 4, kind: input, shape index: {}]   ;;  %s7470_s5 = inlined_call_operand.vmem [shape: bf16[4,24,102], index: 5, kind: input, shape index: {}]   ;;  %s7471_s6 = inlined_call_operand.vmem [shape: bf16[4,80,326], index: 6, kind: input, shape index: {}]   ;;  %s7472_s7 = inlined_call_operand.vmem [shape: f32[2,3,288], index: 7, kind: output, shape index: {}]  }
   0x1 LB: > { %s4980_s25 = sadd.s32 4294967295, %s6079_s24   ;;  %p4984_p0 = scmp.ge.s32.totalorder %s6079_s24, 1  ;;  %s6079_s24 = sphi %s6145_s24, %s17_s24  }
   0x2   : > { %p237_p1 = scmp.lt.s32.totalorder %s6079_s24, 3 }
   0x4   : > { %p238_p2 = pnand %p4984_p0, %p237_p1 }
   0x5   : > { %p269_p3 = scmp.lt.s32.totalorder (!%p238_p2), %s4980_s25, 1  ;;  %v6081_v1 = vmov (!%p238_p2), 0.0   ;;  %s6082_s30 = smov (!%p238_p2), 127   ;;  %vm7506_vm0 = vcmask (!%p238_p2), 257024   ;;  %v6090_v13 = vmov (!%p238_p2), 0   ;;  %v534_v14 = vld [vmem:[%s7467_s2] sm:$0xff] (!%p238_p2) }
   0x6   : > { %241 = sbr.rel (%p238_p2) target bundleno = 6078 (0x17be), region = 48  ;;  %5570 = vmatprep.subr.bf16.mxu1 (!%p238_p2), %v6081_v1  ;;  %s6083_s8 = smov (!%p238_p2), 126   ;;  %586 = vmatprep.mubr.bf16.mxu0 (!%p238_p2), %v6090_v13  ;;  %vm7473_vm1 = vmmov (!%p238_p2), 0   ;;  %vm7505_vm2 = vcmask (!%p238_p2), 1039360   ;;  %vm7503_vm3 = vcmask (!%p238_p2), 261124   ;;  %vm7504_vm4 = vcmask (!%p238_p2), 1031168  }
   0x7   : > { %s7496_s9 = smov (!%p238_p2), 110   ;;  %s7494_s10 = smov (!%p238_p2), 109   ;;  %5849 = vset.pattern.permute.xlu0 (!%p238_p2), %v6090_v13  ;;  %5850 = vset.pattern.permute.xlu1 (!%p238_p2), %v6090_v13  ;;  %vm7482_vm5 = vcmask (!%p238_p2), 900096   ;;  %vm7481_vm6 = vcmask (!%p238_p2), 891904   ;;  %vm7480_vm7 = vcmask (!%p238_p2), 883712   ;;  %vm7479_vm8 = vcmask (!%p238_p2), 752640  }
   0x8   : > { %s6086_s11 = smov (!%p238_p2), 108   ;;  %s7492_s12 = smov (!%p238_p2), 92   ;;  %5580 = vmatprep.mubr.msk.bf16.mxu1 (!%p238_p2), %vm7473_vm1, %v6081_v1  ;;  %vm7478_vm9 = vcmask (!%p238_p2), 744448   ;;  %vm7477_vm10 = vcmask (!%p238_p2), 736256   ;;  %vm7476_vm11 = vcmask (!%p238_p2), 1043456   ;;  %vm7475_vm12 = vcmask (!%p238_p2), 588800  }
   0x9   : > { %s7490_s13 = smov (!%p238_p2), 91   ;;  %s7487_s14 = smov (!%p238_p2), 90   ;;  %vm280_vm13 = vcmask (!%p238_p2), 150528  }
   0xa   : > { %281 = vst.msk [vmem:[#allocation3] sm:$0xf] (!%p238_p2), %vm280_vm13, %v6090_v13  ;;  %290 = vst.msk [vmem:[#allocation4] sm:$0xf] (!%p238_p2), %vm280_vm13, %v6090_v13  ;;  %s7485_s19 = smov (!%p238_p2), 19   ;;  %s6093_s20 = smov (!%p238_p2), 117  }
   0xb   : > { %296 = vst.msk [vmem:[#allocation6] sm:$0xf] (!%p238_p2), %vm280_vm13, %v6090_v13  ;;  %s7499_s21 = smov (!%p238_p2), 118   ;;  %s6095_s22 = smov (!%p238_p2), 116  }
   0xc   : > { %s7501_s23 = smov (!%p238_p2), 106   ;;  %s6097_s27 = smov (!%p238_p2), 107  }
   0xd   : > { %s7652_s25 = smov (!%p269_p3, %s4980_s25), 1  ;;  %s7498_s28 = smov 11  }
   0xe   : > { %s7484_s26 = smul.u32 12, %s7652_s25  ;;  %s6099_s16 = smov 121  }
   0xf   : > { %s6100_s17 = smov 122   ;;  %s7566_s15 = smov 109  }
  0x10   : > { %s6161_s29 = scalar_lea.vmem %s7465_s0, %s7484_s26  ;;  %s6101_s26 = smov 120  }
  0x11   : > { %v317_v0 = vld [vmem:[%s6161_s29] sm:$0xff]  ;;  %v5853_v4 = vld [vmem:[%s6161_s29 + $0x8] ss:$0 sps:$4 sm:$0xff]  }
  0x12   : > { %v4991_v2 = vcombine.high %v317_v0, %v317_v0  ;;  %v4990_v3 = vcombine.low %v317_v0, %v317_v0  ;;  %v5854_v5 = vld [vmem:[%s6161_s29 + $0x8] ss:$0 sps:$4 sm:$0xff]  }
  0x13   : > { %v5861_v6 = vld [vmem:[%s6161_s29 + $0x8] ss:$0 sps:$4 sm:$0xff]  }
  0x14   : > { %329 = vrot.lane.b32.xlu0 %v4991_v2, %s6082_s30  ;;  %327 = vrot.lane.b32.xlu1 %v4990_v3, %s6082_s30  ;;  %314 = vst [vmem:[#allocation2 + $0x8] sm:$0xf] %v4991_v2  ;;  %313 = vst [vmem:[#allocation2] sm:$0xf] %v4990_v3  ;;  %v5855_v7 = vld [vmem:[%s6161_s29 + $0x8] ss:$0 sps:$4 sm:$0xff]  }
  0x15   : > { %316 = vst.msk [vmem:[#allocation2 + $0x10] sm:$0xf] %vm7506_vm0, %v5861_v6  ;;  %v5856_v8 = vld [vmem:[%s6161_s29 + $0x8] ss:$0 sps:$4 sm:$0xff]  }
  0x16   : > { %v5857_v9 = vld [vmem:[%s6161_s29 + $0x8] ss:$0 sps:$4 sm:$0xff]  }
  0x17   : > { %v5858_v10 = vld [vmem:[%s6161_s29 + $0x8] ss:$0 sps:$4 sm:$0xff]  }
  0x18   : > { %331 = vrot.lane.b32.xlu0 %v5853_v4, %s6082_s30  ;;  %355 = vrot.lane.b32.xlu1 %v4991_v2, %s6083_s8  ;;  %v5859_v11 = vld [vmem:[%s6161_s29 + $0x8] ss:$0 sps:$4 sm:$0xff]  }
  0x19   : > { %v5860_v12 = vld [vmem:[%s6161_s29 + $0x8] ss:$0 sps:$4 sm:$0xff]   ;;  %s7565_s29 = smov 110  }
  0x1c   : > { %357 = vrot.lane.b32.xlu0 %v5854_v5, %s6083_s8  ;;  %380 = vrot.lane.b32.xlu1 %v4991_v2, %s7496_s9 }
  0x20   : > { %382 = vrot.lane.b32.xlu0 %v5855_v7, %s7496_s9  ;;  %353 = vrot.lane.b32.xlu1 %v4990_v3, %s6083_s8 }
  0x24   : > { %378 = vrot.lane.b32.xlu0 %v4990_v3, %s7496_s9  ;;  %405 = vrot.lane.b32.xlu1 %v4991_v2, %s7494_s10 }
  0x28   : > { %407 = vrot.lane.b32.xlu0 %v5856_v8, %s7494_s10  ;;  %430 = vrot.lane.b32.xlu1 %v4991_v2, %s6086_s11 }
  0x2c   : > { %432 = vrot.lane.b32.xlu0 %v5857_v9, %s6086_s11  ;;  %403 = vrot.lane.b32.xlu1 %v4990_v3, %s7494_s10  ;;  %v518_v9 = vld [vmem:[%s7466_s1] sm:$0xf] }
  0x30   : > { %428 = vrot.lane.b32.xlu0 %v4990_v3, %s6086_s11  ;;  %455 = vrot.lane.b32.xlu1 %v4991_v2, %s7492_s12 }
  0x34   : > { %457 = vrot.lane.b32.xlu0 %v5858_v10, %s7492_s12  ;;  %480 = vrot.lane.b32.xlu1 %v4991_v2, %s7490_s13  ;;  %v635_v10 = vlaneseq }
  0x38   : > { %482 = vrot.lane.b32.xlu0 %v5859_v11, %s7490_s13  ;;  %453 = vrot.lane.b32.xlu1 %v4990_v3, %s7492_s12  ;;  %v6250_v11 = vand.u32 127, %v635_v10 }
  0x3c   : > { %478 = vrot.lane.b32.xlu0 %v4990_v3, %s7490_s13  ;;  %503 = vrot.lane.b32.xlu1 %v4990_v3, %s7487_s14 }
  0x40   : > { %505 = vrot.lane.b32.xlu0 %v4991_v2, %s7487_s14  ;;  %507 = vrot.lane.b32.xlu1 %v5860_v12, %s7487_s14  ;;  %v637_v12 = vadd.s32 128, %v6250_v11 }
  0x44   : > { %537 = vperm.xlu0 %5849, %v534_v14   ;;  %v638_v14 = vadd.s32 256, %v6250_v11 }
  0x86   : > { %v330_v15 = vpop.permute.xlu0 %329  ;;  %v328_v16 = vpop.permute.xlu1 %327 }
  0x87   : > { %v334_v17 = vsel %vm7505_vm2, %v328_v16, %v330_v15 }
  0x88   : > { %339 = vst [vmem:[#allocation2] sm:$0xf0] %v334_v17 }
  0x8a   : > { %v332_v18 = vpop.permute.xlu0 %331  ;;  %v356_v19 = vpop.permute.xlu1 %355 }
  0x8b   : > { %v335_v20 = vsel %vm7505_vm2, %v330_v15, %v332_v18  ;;  %342 = vst.msk [vmem:[#allocation2 + $0x10] sm:$0xf0] %vm7503_vm3, %v332_v18  ;;  %v6255_v15 = vmul.u32.u64.low 3817748708, %v6250_v11  ;;  %v6256_v16 = vmul.u32.u64.high 3817748708, %v6250_v11, %v6255_v15 }
  0x8c   : > { %340 = vst [vmem:[#allocation2 + $0x8] sm:$0xf0] %v335_v20  ;;  %v6258_v17 = vmul.u32.u64.low 3817748708, %v637_v12  ;;  %v6259_v18 = vmul.u32.u64.high 3817748708, %v637_v12, %v6258_v17 }
  0x8e   : > { %v358_v21 = vpop.permute.xlu0 %357  ;;  %v381_v22 = vpop.permute.xlu1 %380 }
  0x8f   : > { %v361_v23 = vsel %vm7504_vm4, %v356_v19, %v358_v21  ;;  %367 = vst.msk [vmem:[#allocation2 + $0x28] sm:$0xf] %vm7506_vm0, %v358_v21  ;;  %v519_v30 = vld [vmem:[#allocation2] sm:$0xff]  ;;  %v645_v21 = vshrl.u32 %v6256_v16, 4  ;;  %v950_v16 = vld [vmem:[%s7467_s2 + $0x8] sm:$0xff] }
  0x90   : > { %366 = vst [vmem:[#allocation2 + $0x20] sm:$0xf] %v361_v23 }
  0x92   : > { %v383_v24 = vpop.permute.xlu0 %382  ;;  %v354_v25 = vpop.permute.xlu1 %353  ;;  %v521_v26 = vld [vmem:[#allocation2 + $0x10] sm:$0xff] }
  0x93   : > { %v386_v27 = vsel %vm7482_vm5, %v381_v22, %v383_v24  ;;  %392 = vst.msk [vmem:[#allocation2 + $0x28] sm:$0xf0] %vm7503_vm3, %v383_v24  ;;  %v360_v28 = vsel %vm7504_vm4, %v354_v25, %v356_v19  ;;  %5571 = vmatpush3.bf16.msra.mxu1 %v521_v26  ;;  %v520_v29 = vld [vmem:[#allocation2 + $0x8] sm:$0xff]  ;;  %v6261_v19 = vmul.u32.u64.low 3817748708, %v638_v14  ;;  %v6262_v20 = vmul.u32.u64.high 3817748708, %v638_v14, %v6261_v19 }
  0x94   : > { %391 = vst [vmem:[#allocation2 + $0x20] sm:$0xf0] %v386_v27  ;;  %365 = vst [vmem:[#allocation2 + $0x18] sm:$0xf] %v360_v28  ;;  %554 = vmatprep.subr.bf16.mxu0 %v520_v29  ;;  %5572 = vmatprep.subr.bf16.mxu1 %v6081_v1  ;;  %v646_v24 = vmul.u32 18, %v645_v21 }
  0x95   : > { %555 = vmatpush1.bf16.msra.mxu0 %v519_v30  ;;  %v667_v23 = vshrl.u32 %v6262_v20, 4 }
  0x96   : > { %v379_v31 = vpop.permute.xlu0 %378  ;;  %v406_v32 = vpop.permute.xlu1 %405  ;;  %v647_v27 = vsub.s32 %v6250_v11, %v646_v24 }
  0x97   : > { %v385_v33 = vsel %vm7482_vm5, %v379_v31, %v381_v22  ;;  %v656_v22 = vshrl.u32 %v6259_v18, 4  ;;  %v668_v26 = vmul.u32 18, %v667_v23 }
  0x98   : > { %390 = vst [vmem:[#allocation2 + $0x18] sm:$0xf0] %v385_v33  ;;  %vm672_vm14 = vcmp.ne.s32.totalorder %v647_v27, 0  ;;  %vm675_vm15 = vcmp.lt.s32.totalorder %v647_v27, 0  ;;  %v681_v30 = vadd.s32 18, %v647_v27 }
  0x99   : > { %v657_v25 = vmul.u32 18, %v656_v22  ;;  %v669_v29 = vsub.s32 %v638_v14, %v668_v26 }
  0x9a   : > { %v408_v34 = vpop.permute.xlu0 %407  ;;  %v431_v35 = vpop.permute.xlu1 %430  ;;  %v524_v36 = vld [vmem:[#allocation2 + $0x28] sm:$0xff] }
  0x9b   : > { %v411_v37 = vsel %vm7481_vm6, %v406_v32, %v408_v34  ;;  %417 = vst.msk [vmem:[#allocation2 + $0x40] sm:$0xf] %vm7506_vm0, %v408_v34  ;;  %5573 = vmatpush3.bf16.msra.mxu1 %v524_v36  ;;  %v523_v38 = vld [vmem:[#allocation2 + $0x20] sm:$0xff]  ;;  %v658_v28 = vsub.s32 %v637_v12, %v657_v25  ;;  %v683_v34 = vadd.s32 18, %v669_v29 }
  0x9c   : > { %416 = vst [vmem:[#allocation2 + $0x38] sm:$0xf] %v411_v37  ;;  %556 = vmatprep.subr.bf16.mxu0 %v523_v38  ;;  %5574 = vmatprep.subr.bf16.mxu1 %v6081_v1 }
  0x9d   : > { %vm673_vm13 = vcmp.ne.s32.totalorder %v658_v28, 0 }
  0x9e   : > { %v433_v39 = vpop.permute.xlu0 %432  ;;  %v404_v40 = vpop.permute.xlu1 %403 }
  0x9f   : > { %v436_v41 = vsel %vm7480_vm7, %v431_v35, %v433_v39  ;;  %442 = vst.msk [vmem:[#allocation2 + $0x40] sm:$0xf0] %vm7503_vm3, %v433_v39  ;;  %v410_v42 = vsel %vm7481_vm6, %v404_v40, %v406_v32  ;;  %v522_v43 = vld [vmem:[#allocation2 + $0x18] sm:$0xff]  ;;  %v682_v32 = vadd.s32 18, %v658_v28 }
  0xa0   : > { %441 = vst [vmem:[#allocation2 + $0x38] sm:$0xf0] %v436_v41  ;;  %415 = vst [vmem:[#allocation2 + $0x30] sm:$0xf] %v410_v42  ;;  %557 = vmatpush1.bf16.msra.mxu0 %v522_v43 }
  0xa2   : > { %v429_v44 = vpop.permute.xlu0 %428  ;;  %v456_v45 = vpop.permute.xlu1 %455 }
  0xa3   : > { %v435_v46 = vsel %vm7480_vm7, %v429_v44, %v431_v35  ;;  %vm282_vm7 = vcmask 568728  }
  0xa4   : > { %440 = vst [vmem:[#allocation2 + $0x30] sm:$0xf0] %v435_v46  ;;  %283 = vst.msk [vmem:[#allocation3 + $0x8] sm:$0xf] %vm282_vm7, %v6090_v13 }
  0xa5   : > { %291 = vst.msk [vmem:[#allocation4 + $0x8] sm:$0xf] %vm282_vm7, %v6090_v13  ;;  %297 = vst.msk [vmem:[#allocation6 + $0x8] sm:$0xf] %vm282_vm7, %v6090_v13 }
  0xa6   : > { %v458_v47 = vpop.permute.xlu0 %457  ;;  %v481_v48 = vpop.permute.xlu1 %480  ;;  %v527_v49 = vld [vmem:[#allocation2 + $0x40] sm:$0xff] }
  0xa7   : > { %v461_v50 = vsel %vm7479_vm8, %v456_v45, %v458_v47  ;;  %467 = vst.msk [vmem:[#allocation2 + $0x58] sm:$0xf] %vm7506_vm0, %v458_v47  ;;  %5575 = vmatpush3.bf16.msra.mxu1 %v527_v49  ;;  %v526_v51 = vld [vmem:[#allocation2 + $0x38] sm:$0xff] }
  0xa8   : > { %466 = vst [vmem:[#allocation2 + $0x50] sm:$0xf] %v461_v50  ;;  %558 = vmatprep.subr.bf16.mxu0 %v526_v51  ;;  %5576 = vmatprep.subr.bf16.mxu1 %v6081_v1 }
  0xaa   : > { %v483_v52 = vpop.permute.xlu0 %482  ;;  %v454_v53 = vpop.permute.xlu1 %453 }
  0xab   : > { %v486_v54 = vsel %vm7478_vm9, %v481_v48, %v483_v52  ;;  %492 = vst.msk [vmem:[#allocation2 + $0x58] sm:$0xf0] %vm7503_vm3, %v483_v52  ;;  %v460_v55 = vsel %vm7479_vm8, %v454_v53, %v456_v45  ;;  %v525_v56 = vld [vmem:[#allocation2 + $0x30] sm:$0xff] }
  0xac   : > { %491 = vst [vmem:[#allocation2 + $0x50] sm:$0xf0] %v486_v54  ;;  %465 = vst [vmem:[#allocation2 + $0x48] sm:$0xf] %v460_v55  ;;  %559 = vmatpush1.bf16.msra.mxu0 %v525_v56 }
  0xae   : > { %v479_v57 = vpop.permute.xlu0 %478  ;;  %v504_v58 = vpop.permute.xlu1 %503 }
  0xaf   : > { %v485_v59 = vsel %vm7478_vm9, %v479_v57, %v481_v48 }
  0xb0   : > { %490 = vst [vmem:[#allocation2 + $0x48] sm:$0xf0] %v485_v59 }
  0xb2   : > { %v506_v60 = vpop.permute.xlu0 %505  ;;  %v508_v61 = vpop.permute.xlu1 %507  ;;  %v530_v62 = vld [vmem:[#allocation2 + $0x58] sm:$0xff] }
  0xb3   : > { %v510_v63 = vsel %vm7477_vm10, %v504_v58, %v506_v60  ;;  %v511_v0 = vsel %vm7477_vm10, %v506_v60, %v508_v61  ;;  %517 = vst.msk [vmem:[#allocation2 + $0x70] sm:$0xf] %vm7506_vm0, %v508_v61  ;;  %5577 = vmatpush3.bf16.msra.mxu1 %v530_v62  ;;  %v529_v2 = vld [vmem:[#allocation2 + $0x50] sm:$0xff]  ;;  %vm677_vm10 = vcmp.lt.s32.totalorder %v669_v29, 0 }
  0xb4   : > { %515 = vst [vmem:[#allocation2 + $0x60] sm:$0xf] %v510_v63  ;;  %516 = vst [vmem:[#allocation2 + $0x68] sm:$0xf] %v511_v0  ;;  %560 = vmatprep.subr.bf16.mxu0 %v529_v2  ;;  %5578 = vmatprep.subr.bf16.mxu1 %v6081_v1 }
  0xb7   : > { %v528_v3 = vld [vmem:[#allocation2 + $0x48] sm:$0xff] }
  0xb8   : > { %561 = vmatpush1.bf16.msra.mxu0 %v528_v3 }
  0xba   : > { %v533_v4 = vld [vmem:[#allocation2 + $0x70] sm:$0xf] }
  0xbb   : > { %v532_v5 = vld [vmem:[#allocation2 + $0x68] sm:$0xf]  ;;  %v552_v6 = vsel %vm7476_vm11, %v533_v4, 0  ;;  %v531_v7 = vld [vmem:[#allocation2 + $0x60] sm:$0xf] }
  0xbc   : > { %5014 = vmatprep.subr.msk.bf16.mxu0 %vm7476_vm11, %v532_v5  ;;  %5579 = vmatpush3.bf16.msra.mxu1 %v552_v6  ;;  %v546_v8 = vsel %vm7476_vm11, %v531_v7, 0  ;;  %vm674_vm11 = vcmp.ne.s32.totalorder %v669_v29, 0 }
  0xbd   : > { %563 = vmatpush1.bf16.msra.mxu0 %v546_v8  ;;  %5584 = vmatprep.subr.bf16.mxu1 %v6081_v1  ;;  %vm6278_vm8 = vmand %vm677_vm10, %vm674_vm11  ;;  %vm7489_vm11 = vcmask 154624  }
  0xbe   : > { %v686_v42 = vsel %vm6278_vm8, %v683_v34, %v669_v29  ;;  %vm720_vm8 = vcmask 1043608  }
  0xbf   : > { %5581 = vmatmul.mubr.msk.bf16.vlgmr.msra.gmra.mrb[0].mxu1 %vm7475_vm12, %v518_v9  ;;  %vm6299_vm7 = vcmp.lt.s32.totalorder %v686_v42, 16 }
  0xc0   : > { %5015 = vmatmul.mubr.msk.bf16.vlgmr.msra.gmra.mrb[0].mxu0 %vm7475_vm12, %v518_v9  ;;  %5594 = vmatprep.mubr.msk.bf16.mxu1 %vm7473_vm1, %v6081_v1  ;;  %vm676_vm1 = vcmp.lt.s32.totalorder %v658_v28, 0  ;;  %vm6268_vm12 = vmand %vm675_vm15, %vm672_vm14  ;;  %vm7483_vm14 = vcmask 412672   ;;  %vm7521_vm15 = vcmask 883712  }
  0xc1   : > { %1000 = vmatprep.mubr.bf16.mxu0 %v6090_v13  ;;  %vm6272_vm9 = vmand %vm676_vm1, %vm673_vm13  ;;  %v684_v35 = vsel %vm6268_vm12, %v681_v30, %v647_v27 }
  0xc2   : > { %v685_v38 = vsel %vm6272_vm9, %v682_v32, %v658_v28  ;;  %vm6287_vm1 = vcmp.lt.s32.totalorder %v684_v35, 16  ;;  %vm721_vm9 = vcmask 1047556   ;;  %vm7522_vm13 = vmmov %vm7521_vm15 }
  0xc3   : > { %v538_v37 = vpop.permute.xlu0 %537  ;;  %vm6293_vm10 = vcmp.lt.s32.totalorder %v685_v38, 16  ;;  %vm6309_vm12 = vmor %vm721_vm9, %vm720_vm8  ;;  %vm7523_vm8 = vcmask 752640   ;;  %vm7524_vm9 = vcmask 744448  }
 0x192   : > { %v629_v39 = vpop.f32.mrb[0].mxu1 }
 0x193   : > { %v588_v40 = vpop.f32.mrb[0].mxu0  ;;  %v5582_v43 = vpop.f32.mrb[1].mxu1  ;;  %v630_v49 = vadd.f32 %v629_v39, %v538_v37 }
 0x194   : > { %v589_v44 = vadd.f32 %v588_v40, %v538_v37  ;;  %v590_v45 = vpop.f32.mrb[1].mxu0  ;;  %v632_v47 = vpop.f32.mrb[2].mxu1 }
 0x195   : > { %v591_v48 = vadd.f32 %v590_v45, %v538_v37  ;;  %v592_v50 = vpop.f32.mrb[2].mxu0  ;;  %v5583_v51 = vpop.f32.mrb[3].mxu1  ;;  %v698_v57 = vsel %vm6299_vm7, %v630_v49, 0.0 }
 0x196   : > { %v696_v52 = vsel %vm6287_vm1, %v589_v44, 0.0  ;;  %v593_v54 = vpop.f32.mrb[3].mxu0  ;;  %v5395_v58 = vpack.c.bf16 %v698_v57, %v698_v57 }
 0x197   : > { %v697_v55 = vsel %vm6293_vm10, %v591_v48, 0.0 }
 0x198   : > { %v5394_v56 = vpack.c.bf16 %v697_v55, %v696_v52 }
 0x19a   : > { %710 = vrot.lane.b32.xlu1 %v5394_v56, %s7485_s19 }
 0x19e   : > { %712 = vrot.lane.b32.xlu1 %v5395_v58, %s7485_s19 }
 0x20c   : > { %v711_v59 = vpop.permute.xlu1 %710 }
 0x20d   : > { %v714_v61 = vrot.slane %v711_v59, 4 }
 0x20f   : > { %v716_v62 = vsel %vm7489_vm11, %v714_v61, %v711_v59 }
 0x210   : > { %723 = vst.msk [vmem:[#allocation3] sm:$0xff] %vm6309_vm12, %v716_v62  ;;  %v713_v63 = vpop.permute.xlu1 %712 }
 0x211   : > { %v717_v0 = vsel %vm7489_vm11, %v714_v61, %v713_v63 }
 0x212   : > { %725 = vst.msk [vmem:[#allocation3 + $0x8] sm:$0xf] %vm7483_vm14, %v717_v0 }
 0x217   : > { %v726_v2 = vld [vmem:[#allocation3] sm:$0xff] }
 0x218   : > { %v5019_v3 = vcombine.low %v726_v2, %v726_v2  ;;  %v5020_v4 = vcombine.high %v726_v2, %v726_v2 }
 0x219   : > { %v5864_v5 = vld [vmem:[#allocation3 + $0x8] ss:$0 sps:$4 sm:$0xff]  }
 0x21a   : > { %740 = vst [vmem:[#allocation2 + $0x8] sm:$0xf] %v5020_v4  ;;  %739 = vst [vmem:[#allocation2] sm:$0xf] %v5019_v3  ;;  %754 = vrot.lane.b32.xlu0 %v5020_v4, %s6082_s30  ;;  %v5865_v6 = vld [vmem:[#allocation3 + $0x8] ss:$0 sps:$4 sm:$0xff]  }
 0x21b   : > { %741 = vst.msk [vmem:[#allocation2 + $0x10] sm:$0xf] %vm7506_vm0, %v5864_v5  ;;  %756 = vrot.lane.b32.xlu1 %v5865_v6, %s6082_s30  ;;  %v5866_v7 = vld [vmem:[#allocation3 + $0x8] ss:$0 sps:$4 sm:$0xff]  }
 0x21c   : > { %v5867_v8 = vld [vmem:[#allocation3 + $0x8] ss:$0 sps:$4 sm:$0xff]  }
 0x21d   : > { %v5868_v9 = vld [vmem:[#allocation3 + $0x8] ss:$0 sps:$4 sm:$0xff]  }
 0x21e   : > { %752 = vrot.lane.b32.xlu0 %v5019_v3, %s6082_s30  ;;  %v5869_v10 = vld [vmem:[#allocation3 + $0x8] ss:$0 sps:$4 sm:$0xff]  }
 0x21f   : > { %778 = vrot.lane.b32.xlu1 %v5020_v4, %s6083_s8  ;;  %v5870_v12 = vld [vmem:[#allocation3 + $0x8] ss:$0 sps:$4 sm:$0xff]  }
 0x220   : > { %v5871_v14 = vld [vmem:[#allocation3 + $0x8] ss:$0 sps:$4 sm:$0xff]  }
 0x221   : > { %v5872_v15 = vld [vmem:[#allocation3 + $0x8] ss:$0 sps:$4 sm:$0xff]  }
 0x222   : > { %780 = vrot.lane.b32.xlu0 %v5866_v7, %s6083_s8 }
 0x223   : > { %802 = vrot.lane.b32.xlu1 %v5020_v4, %s7496_s9 }
 0x226   : > { %804 = vrot.lane.b32.xlu0 %v5867_v8, %s7496_s9 }
 0x227   : > { %776 = vrot.lane.b32.xlu1 %v5019_v3, %s6083_s8 }
 0x22a   : > { %800 = vrot.lane.b32.xlu0 %v5019_v3, %s7496_s9 }
 0x22b   : > { %826 = vrot.lane.b32.xlu1 %v5020_v4, %s7494_s10 }
 0x22e   : > { %828 = vrot.lane.b32.xlu0 %v5868_v9, %s7494_s10 }
 0x22f   : > { %850 = vrot.lane.b32.xlu1 %v5020_v4, %s6086_s11 }
 0x232   : > { %852 = vrot.lane.b32.xlu0 %v5869_v10, %s6086_s11 }
 0x233   : > { %824 = vrot.lane.b32.xlu1 %v5019_v3, %s7494_s10 }
 0x236   : > { %848 = vrot.lane.b32.xlu0 %v5019_v3, %s6086_s11 }
 0x237   : > { %874 = vrot.lane.b32.xlu1 %v5020_v4, %s7492_s12 }
 0x23a   : > { %876 = vrot.lane.b32.xlu0 %v5870_v12, %s7492_s12 }
 0x23b   : > { %898 = vrot.lane.b32.xlu1 %v5020_v4, %s7490_s13 }
 0x23e   : > { %900 = vrot.lane.b32.xlu0 %v5871_v14, %s7490_s13 }
 0x23f   : > { %872 = vrot.lane.b32.xlu1 %v5019_v3, %s7492_s12 }
 0x242   : > { %896 = vrot.lane.b32.xlu0 %v5019_v3, %s7490_s13 }
 0x243   : > { %920 = vrot.lane.b32.xlu1 %v5019_v3, %s7487_s14 }
 0x246   : > { %922 = vrot.lane.b32.xlu0 %v5020_v4, %s7487_s14 }
 0x247   : > { %924 = vrot.lane.b32.xlu1 %v5872_v15, %s7487_s14 }
 0x24a   : > { %953 = vperm.xlu0 %5849, %v950_v16  }
 0x28c   : > { %v755_v17 = vpop.permute.xlu0 %754 }
 0x28d   : > { %v757_v18 = vpop.permute.xlu1 %756 }
 0x28e   : > { %v759_v19 = vsel %vm7505_vm2, %v755_v17, %v757_v18  ;;  %765 = vst.msk [vmem:[#allocation2 + $0x10] sm:$0xf0] %vm7503_vm3, %v757_v18 }
 0x28f   : > { %764 = vst [vmem:[#allocation2 + $0x8] sm:$0xf0] %v759_v19 }
 0x290   : > { %v753_v20 = vpop.permute.xlu0 %752 }
 0x291   : > { %v758_v21 = vsel %vm7505_vm2, %v753_v20, %v755_v17  ;;  %v779_v22 = vpop.permute.xlu1 %778  ;;  %v934_v17 = vld [vmem:[%s7466_s1 + $0xc] sm:$0xf] }
 0x292   : > { %763 = vst [vmem:[#allocation2] sm:$0xf0] %v758_v21 }
 0x294   : > { %v781_v23 = vpop.permute.xlu0 %780 }
 0x295   : > { %v783_v24 = vsel %vm7504_vm4, %v779_v22, %v781_v23  ;;  %789 = vst.msk [vmem:[#allocation2 + $0x28] sm:$0xf] %vm7506_vm0, %v781_v23  ;;  %v803_v25 = vpop.permute.xlu1 %802  ;;  %v937_v26 = vld [vmem:[#allocation2 + $0x10] sm:$0xff] }
 0x296   : > { %788 = vst [vmem:[#allocation2 + $0x20] sm:$0xf] %v783_v24  ;;  %5585 = vmatpush3.bf16.msra.mxu1 %v937_v26  ;;  %v936_v27 = vld [vmem:[#allocation2 + $0x8] sm:$0xff] }
 0x297   : > { %968 = vmatprep.subr.bf16.mxu0 %v936_v27  ;;  %5586 = vmatprep.subr.bf16.mxu1 %v6081_v1 }
 0x298   : > { %v805_v28 = vpop.permute.xlu0 %804 }
 0x299   : > { %v807_v29 = vsel %vm7482_vm5, %v803_v25, %v805_v28  ;;  %813 = vst.msk [vmem:[#allocation2 + $0x28] sm:$0xf0] %vm7503_vm3, %v805_v28  ;;  %v935_v30 = vld [vmem:[#allocation2] sm:$0xff]  ;;  %v777_v31 = vpop.permute.xlu1 %776 }
 0x29a   : > { %812 = vst [vmem:[#allocation2 + $0x20] sm:$0xf0] %v807_v29  ;;  %969 = vmatpush1.bf16.msra.mxu0 %v935_v30  ;;  %v782_v32 = vsel %vm7504_vm4, %v777_v31, %v779_v22 }
 0x29b   : > { %787 = vst [vmem:[#allocation2 + $0x18] sm:$0xf] %v782_v32 }
 0x29c   : > { %v801_v33 = vpop.permute.xlu0 %800 }
 0x29d   : > { %v806_v34 = vsel %vm7482_vm5, %v801_v33, %v803_v25  ;;  %v827_v35 = vpop.permute.xlu1 %826  ;;  %vm7534_vm5 = vmmov 0  }
 0x29e   : > { %811 = vst [vmem:[#allocation2 + $0x18] sm:$0xf0] %v806_v34 }
 0x2a0   : > { %v829_v36 = vpop.permute.xlu0 %828  ;;  %v940_v37 = vld [vmem:[#allocation2 + $0x28] sm:$0xff] }
 0x2a1   : > { %v831_v38 = vsel %vm7481_vm6, %v827_v35, %v829_v36  ;;  %837 = vst.msk [vmem:[#allocation2 + $0x40] sm:$0xf] %vm7506_vm0, %v829_v36  ;;  %5587 = vmatpush3.bf16.msra.mxu1 %v940_v37  ;;  %v939_v39 = vld [vmem:[#allocation2 + $0x20] sm:$0xff]  ;;  %v851_v40 = vpop.permute.xlu1 %850 }
 0x2a2   : > { %836 = vst [vmem:[#allocation2 + $0x38] sm:$0xf] %v831_v38  ;;  %970 = vmatprep.subr.bf16.mxu0 %v939_v39  ;;  %5588 = vmatprep.subr.bf16.mxu1 %v6081_v1 }
 0x2a4   : > { %v853_v42 = vpop.permute.xlu0 %852 }
 0x2a5   : > { %v855_v43 = vsel %vm7521_vm15, %v851_v40, %v853_v42  ;;  %861 = vst.msk [vmem:[#allocation2 + $0x40] sm:$0xf0] %vm7503_vm3, %v853_v42  ;;  %v938_v44 = vld [vmem:[#allocation2 + $0x18] sm:$0xff]  ;;  %v825_v45 = vpop.permute.xlu1 %824  ;;  %vm7525_vm15 = vmmov %vm7523_vm8 }
 0x2a6   : > { %860 = vst [vmem:[#allocation2 + $0x38] sm:$0xf0] %v855_v43  ;;  %971 = vmatpush1.bf16.msra.mxu0 %v938_v44  ;;  %v830_v47 = vsel %vm7481_vm6, %v825_v45, %v827_v35 }
 0x2a7   : > { %835 = vst [vmem:[#allocation2 + $0x30] sm:$0xf] %v830_v47 }
 0x2a8   : > { %v849_v48 = vpop.permute.xlu0 %848 }
 0x2a9   : > { %v854_v49 = vsel %vm7522_vm13, %v849_v48, %v851_v40  ;;  %v875_v50 = vpop.permute.xlu1 %874  ;;  %vm7526_vm13 = vmmov %vm7524_vm9 }
 0x2aa   : > { %859 = vst [vmem:[#allocation2 + $0x30] sm:$0xf0] %v854_v49 }
 0x2ac   : > { %v877_v51 = vpop.permute.xlu0 %876  ;;  %v943_v52 = vld [vmem:[#allocation2 + $0x40] sm:$0xff] }
 0x2ad   : > { %v879_v54 = vsel %vm7523_vm8, %v875_v50, %v877_v51  ;;  %885 = vst.msk [vmem:[#allocation2 + $0x58] sm:$0xf] %vm7506_vm0, %v877_v51  ;;  %5589 = vmatpush3.bf16.msra.mxu1 %v943_v52  ;;  %v942_v55 = vld [vmem:[#allocation2 + $0x38] sm:$0xff]  ;;  %v899_v56 = vpop.permute.xlu1 %898  ;;  %vm7527_vm8 = vcmask 736256  }
 0x2ae   : > { %884 = vst [vmem:[#allocation2 + $0x50] sm:$0xf] %v879_v54  ;;  %972 = vmatprep.subr.bf16.mxu0 %v942_v55  ;;  %5590 = vmatprep.subr.bf16.mxu1 %v6081_v1 }
 0x2b0   : > { %v901_v57 = vpop.permute.xlu0 %900 }
 0x2b1   : > { %v903_v58 = vsel %vm7524_vm9, %v899_v56, %v901_v57  ;;  %909 = vst.msk [vmem:[#allocation2 + $0x58] sm:$0xf0] %vm7503_vm3, %v901_v57  ;;  %v941_v59 = vld [vmem:[#allocation2 + $0x30] sm:$0xff]  ;;  %v873_v61 = vpop.permute.xlu1 %872  ;;  %vm7528_vm9 = vmmov %vm7527_vm8 }
 0x2b2   : > { %908 = vst [vmem:[#allocation2 + $0x50] sm:$0xf0] %v903_v58  ;;  %973 = vmatpush1.bf16.msra.mxu0 %v941_v59  ;;  %v878_v62 = vsel %vm7525_vm15, %v873_v61, %v875_v50  ;;  %vm7529_vm15 = vcmask 1043456   ;;  %v1301_v58 = vld [vmem:[%s7467_s2 + $0x10] sm:$0xff] }
 0x2b3   : > { %883 = vst [vmem:[#allocation2 + $0x48] sm:$0xf] %v878_v62 }
 0x2b4   : > { %v897_v63 = vpop.permute.xlu0 %896 }
 0x2b5   : > { %v902_v0 = vsel %vm7526_vm13, %v897_v63, %v899_v56  ;;  %v921_v2 = vpop.permute.xlu1 %920  ;;  %vm7530_vm13 = vmmov %vm7529_vm15 }
 0x2b6   : > { %907 = vst [vmem:[#allocation2 + $0x48] sm:$0xf0] %v902_v0 }
 0x2b8   : > { %v923_v3 = vpop.permute.xlu0 %922  ;;  %v946_v4 = vld [vmem:[#allocation2 + $0x58] sm:$0xff] }
 0x2b9   : > { %v926_v5 = vsel %vm7527_vm8, %v921_v2, %v923_v3  ;;  %5591 = vmatpush3.bf16.msra.mxu1 %v946_v4  ;;  %v945_v6 = vld [vmem:[#allocation2 + $0x50] sm:$0xff]  ;;  %v925_v7 = vpop.permute.xlu1 %924  ;;  %vm7531_vm8 = vmmov %vm7530_vm13 }
 0x2ba   : > { %931 = vst [vmem:[#allocation2 + $0x60] sm:$0xf] %v926_v5  ;;  %974 = vmatprep.subr.bf16.mxu0 %v945_v6  ;;  %5592 = vmatprep.subr.bf16.mxu1 %v6081_v1  ;;  %v927_v8 = vsel %vm7528_vm9, %v923_v3, %v925_v7  ;;  %933 = vst.msk [vmem:[#allocation2 + $0x70] sm:$0xf] %vm7506_vm0, %v925_v7  ;;  %vm7532_vm9 = vcmask 588800  }
 0x2bb   : > { %932 = vst [vmem:[#allocation2 + $0x68] sm:$0xf] %v927_v8  ;;  %vm7533_vm6 = vmmov %vm7532_vm9 }
 0x2bd   : > { %v944_v9 = vld [vmem:[#allocation2 + $0x48] sm:$0xff] }
 0x2be   : > { %975 = vmatpush1.bf16.msra.mxu0 %v944_v9 }
 0x2c1   : > { %v947_v10 = vld [vmem:[#allocation2 + $0x60] sm:$0xf]  ;;  %v949_v12 = vld [vmem:[#allocation2 + $0x70] sm:$0xf] }
 0x2c2   : > { %v960_v14 = vsel %vm7529_vm15, %v947_v10, 0  ;;  %v948_v15 = vld [vmem:[#allocation2 + $0x68] sm:$0xf]  ;;  %v966_v16 = vsel %vm7530_vm13, %v949_v12, 0  ;;  %vm7537_vm13 = vcmask 891904  }
 0x2c3   : > { %5046 = vmatprep.subr.msk.bf16.mxu0 %vm7531_vm8, %v948_v15  ;;  %5593 = vmatpush3.bf16.msra.mxu1 %v966_v16  ;;  %vm7538_vm8 = vmmov %vm7537_vm13 }
 0x2c4   : > { %977 = vmatpush1.bf16.msra.mxu0 %v960_v14  ;;  %5598 = vmatprep.subr.bf16.mxu1 %v6081_v1 }
 0x2c6   : > { %5595 = vmatmul.mubr.msk.bf16.vlgmr.msra.gmra.mrb[4].mxu1 %vm7532_vm9, %v934_v17  ;;  %vm7539_vm9 = vcmask 883712  }
 0x2c7   : > { %5047 = vmatmul.mubr.msk.bf16.vlgmr.msra.gmra.mrb[4].mxu0 %vm7533_vm6, %v934_v17  ;;  %5608 = vmatprep.mubr.msk.bf16.mxu1 %vm7534_vm5, %v6081_v1  ;;  %vm7535_vm6 = vcmask 900096  }
 0x2c8   : > { %1351 = vmatprep.mubr.bf16.mxu0 %v6090_v13  ;;  %vm7536_vm15 = vmmov %vm7535_vm6 }
 0x2c9   : > { %v954_v18 = vpop.permute.xlu0 %953 }
 0x399   : > { %v1043_v19 = vpop.f32.mrb[4].mxu1 }
 0x39a   : > { %v1044_v20 = vadd.f32 %v1043_v19, %v954_v18  ;;  %v1002_v21 = vpop.f32.mrb[4].mxu0  ;;  %v5596_v22 = vpop.f32.mrb[5].mxu1 }
 0x39b   : > { %v1003_v23 = vadd.f32 %v1002_v21, %v954_v18  ;;  %v1004_v24 = vpop.f32.mrb[5].mxu0  ;;  %v1046_v25 = vpop.f32.mrb[6].mxu1 }
 0x39c   : > { %v1051_v26 = vmax.f32 %v1044_v20, 0.0  ;;  %v1005_v27 = vadd.f32 %v1004_v24, %v954_v18  ;;  %v1006_v28 = vpop.f32.mrb[6].mxu0  ;;  %v5597_v29 = vpop.f32.mrb[7].mxu1 }
 0x39d   : > { %v1049_v30 = vmax.f32 %v1003_v23, 0.0  ;;  %v1007_v31 = vpop.f32.mrb[7].mxu0 }
 0x39e   : > { %v1054_v32 = vsel %vm6299_vm7, %v1051_v26, 0.0  ;;  %v1050_v33 = vmax.f32 %v1005_v27, 0.0 }
 0x39f   : > { %v5397_v34 = vpack.c.bf16 %v1054_v32, %v1054_v32  ;;  %v1052_v35 = vsel %vm6287_vm1, %v1049_v30, 0.0 }
 0x3a0   : > { %v1053_v36 = vsel %vm6293_vm10, %v1050_v33, 0.0 }
 0x3a1   : > { %1068 = vrot.lane.b32.xlu0 %v5397_v34, %s7485_s19  ;;  %v5396_v37 = vpack.c.bf16 %v1053_v36, %v1052_v35 }
 0x3a3   : > { %1066 = vrot.lane.b32.xlu1 %v5396_v37, %s7485_s19  ;;  %s6103_s19 = smov 115  }
 0x413   : > { %v1069_v40 = vpop.permute.xlu0 %1068 }
 0x415   : > { %v1067_v38 = vpop.permute.xlu1 %1066 }
 0x416   : > { %v1070_v39 = vrot.slane %v1067_v38, 4 }
 0x418   : > { %v1071_v42 = vsel %vm7489_vm11, %v1070_v39, %v1067_v38  ;;  %v1072_v43 = vsel %vm7489_vm11, %v1070_v39, %v1069_v40  ;;  %vm2020_vm11 = vcmask 195584  }
 0x419   : > { %1075 = vst.msk [vmem:[#allocation4] sm:$0xff] %vm6309_vm12, %v1071_v42 }
 0x41a   : > { %1076 = vst.msk [vmem:[#allocation4 + $0x8] sm:$0xf] %vm7483_vm14, %v1072_v43 }
 0x420   : > { %v1093_v44 = vld [vmem:[#allocation4] sm:$0xff] }
 0x421   : > { %v5874_v45 = vld [vmem:[#allocation4 + $0x8] ss:$0 sps:$4 sm:$0xff]   ;;  %v5055_v47 = vcombine.high %v1093_v44, %v1093_v44  ;;  %v5054_v48 = vcombine.low %v1093_v44, %v1093_v44 }
 0x422   : > { %1107 = vrot.lane.b32.xlu0 %v5874_v45, %s6082_s30  ;;  %v5883_v49 = vld [vmem:[#allocation4 + $0x8] ss:$0 sps:$4 sm:$0xff]  }
 0x423   : > { %1105 = vrot.lane.b32.xlu1 %v5055_v47, %s6082_s30  ;;  %1091 = vst [vmem:[#allocation2 + $0x8] sm:$0xf] %v5055_v47  ;;  %1090 = vst [vmem:[#allocation2] sm:$0xf] %v5054_v48  ;;  %v5876_v50 = vld [vmem:[#allocation4 + $0x8] ss:$0 sps:$4 sm:$0xff]  }
 0x424   : > { %1092 = vst.msk [vmem:[#allocation2 + $0x10] sm:$0xf] %vm7506_vm0, %v5883_v49  ;;  %v5877_v51 = vld [vmem:[#allocation4 + $0x8] ss:$0 sps:$4 sm:$0xff]  }
 0x425   : > { %v5878_v52 = vld [vmem:[#allocation4 + $0x8] ss:$0 sps:$4 sm:$0xff]  }
 0x426   : > { %1129 = vrot.lane.b32.xlu0 %v5055_v47, %s6083_s8  ;;  %v5879_v54 = vld [vmem:[#allocation4 + $0x8] ss:$0 sps:$4 sm:$0xff]  }
 0x427   : > { %1103 = vrot.lane.b32.xlu1 %v5054_v48, %s6082_s30  ;;  %v5880_v55 = vld [vmem:[#allocation4 + $0x8] ss:$0 sps:$4 sm:$0xff]  }
 0x428   : > { %v5881_v56 = vld [vmem:[#allocation4 + $0x8] ss:$0 sps:$4 sm:$0xff]  }
 0x429   : > { %v5882_v57 = vld [vmem:[#allocation4 + $0x8] ss:$0 sps:$4 sm:$0xff]  }
 0x42a   : > { %1153 = vrot.lane.b32.xlu0 %v5055_v47, %s7496_s9  ;;  %v5884_v3 = vld [vmem:[#allocation4 + $0x8] ss:$0 sps:$4 sm:$0xff]  }
 0x42b   : > { %1131 = vrot.lane.b32.xlu1 %v5876_v50, %s6083_s8 }
 0x42e   : > { %1127 = vrot.lane.b32.xlu0 %v5054_v48, %s6083_s8 }
 0x42f   : > { %1155 = vrot.lane.b32.xlu1 %v5877_v51, %s7496_s9 }
 0x432   : > { %1177 = vrot.lane.b32.xlu0 %v5055_v47, %s7494_s10 }
 0x433   : > { %1151 = vrot.lane.b32.xlu1 %v5054_v48, %s7496_s9  ;;  %s7568_s9 = smov 91  }
 0x436   : > { %1201 = vrot.lane.b32.xlu0 %v5055_v47, %s6086_s11 }
 0x437   : > { %1179 = vrot.lane.b32.xlu1 %v5878_v52, %s7494_s10 }
 0x43a   : > { %1175 = vrot.lane.b32.xlu0 %v5054_v48, %s7494_s10  ;;  %s7569_s10 = smov 90  }
 0x43b   : > { %1203 = vrot.lane.b32.xlu1 %v5879_v54, %s6086_s11 }
 0x43e   : > { %1225 = vrot.lane.b32.xlu0 %v5055_v47, %s7492_s12 }
 0x43f   : > { %1199 = vrot.lane.b32.xlu1 %v5054_v48, %s6086_s11 }
 0x442   : > { %1249 = vrot.lane.b32.xlu0 %v5055_v47, %s7490_s13 }
 0x443   : > { %1227 = vrot.lane.b32.xlu1 %v5880_v55, %s7492_s12 }
 0x446   : > { %1223 = vrot.lane.b32.xlu0 %v5054_v48, %s7492_s12  ;;  %s7616_s12 = smov 19  }
 0x447   : > { %1251 = vrot.lane.b32.xlu1 %v5881_v56, %s7490_s13 }
 0x44a   : > { %1271 = vrot.lane.b32.xlu0 %v5054_v48, %s7487_s14 }
 0x44b   : > { %1247 = vrot.lane.b32.xlu1 %v5054_v48, %s7490_s13 }
 0x44e   : > { %1275 = vrot.lane.b32.xlu0 %v5882_v57, %s7487_s14  ;;  %v1285_v57 = vld [vmem:[%s7466_s1 + $0x18] sm:$0xf] }
 0x44f   : > { %1273 = vrot.lane.b32.xlu1 %v5055_v47, %s7487_s14  ;;  %s6102_s14 = smov 114  }
 0x453   : > { %1304 = vperm.xlu1 %5850, %v1301_v58   ;;  %v5885_v58 = vld [vmem:[%s7468_s3 + $0x40] sm:$0xff]  }
 0x494   : > { %v1108_v59 = vpop.permute.xlu0 %1107 }
 0x495   : > { %v1106_v61 = vpop.permute.xlu1 %1105  ;;  %1116 = vst.msk [vmem:[#allocation2 + $0x10] sm:$0xf0] %vm7503_vm3, %v1108_v59 }
 0x496   : > { %v1110_v62 = vsel %vm7505_vm2, %v1106_v61, %v1108_v59 }
 0x497   : > { %1115 = vst [vmem:[#allocation2 + $0x8] sm:$0xf0] %v1110_v62  ;;  %v5897_v62 = vld [vmem:[%s7468_s3 + $0x80] sm:$0xff]  }
 0x498   : > { %v1130_v63 = vpop.permute.xlu0 %1129 }
 0x499   : > { %v1104_v0 = vpop.permute.xlu1 %1103 }
 0x49a   : > { %v1109_v2 = vsel %vm7505_vm2, %v1104_v0, %v1106_v61  ;;  %v5886_v0 = vld [vmem:[%s7468_s3] sm:$0xff]  }
 0x49b   : > { %1114 = vst [vmem:[#allocation2] sm:$0xf0] %v1109_v2  ;;  %v5887_v2 = vld [vmem:[%s7468_s3 + $0x48] sm:$0xff]  }
 0x49c   : > { %v1154_v4 = vpop.permute.xlu0 %1153  ;;  %v1288_v5 = vld [vmem:[#allocation2 + $0x10] sm:$0xff] }
 0x49d   : > { %v1132_v6 = vpop.permute.xlu1 %1131  ;;  %5599 = vmatpush3.bf16.msra.mxu1 %v1288_v5  ;;  %4034 = vst.msk [vmem:[#allocation2 + $0x10] sm:$0xf] %vm7506_vm0, %v5884_v3  ;;  %v5888_v3 = vld [vmem:[%s7468_s3 + $0x8] sm:$0xff]   ;;  %v5890_v5 = vld [vmem:[%s7468_s3 + $0x10] sm:$0xff]  }
 0x49e   : > { %v1134_v7 = vsel %vm7504_vm4, %v1130_v63, %v1132_v6  ;;  %1140 = vst.msk [vmem:[#allocation2 + $0x28] sm:$0xf] %vm7506_vm0, %v1132_v6  ;;  %v1287_v8 = vld [vmem:[#allocation2 + $0x8] sm:$0xff]  ;;  %5600 = vmatprep.subr.bf16.mxu1 %v6081_v1  ;;  %v5891_v6 = vld [vmem:[%s7468_s3 + $0x58] sm:$0xff]  }
 0x49f   : > { %1139 = vst [vmem:[#allocation2 + $0x20] sm:$0xf] %v1134_v7  ;;  %1319 = vmatprep.subr.bf16.mxu0 %v1287_v8  ;;  %4033 = vst [vmem:[#allocation2 + $0x8] sm:$0xf] %v5055_v47  ;;  %v5892_v7 = vld [vmem:[%s7468_s3 + $0x18] sm:$0xff]   ;;  %v5893_v8 = vld [vmem:[%s7468_s3 + $0x60] sm:$0xff]  }
 0x4a0   : > { %v1128_v9 = vpop.permute.xlu0 %1127 }
 0x4a1   : > { %v1156_v10 = vpop.permute.xlu1 %1155  ;;  %v1133_v12 = vsel %vm7504_vm4, %v1128_v9, %v1130_v63  ;;  %v5894_v9 = vld [vmem:[%s7468_s3 + $0x20] sm:$0xff]  }
 0x4a2   : > { %v1158_v14 = vsel %vm7535_vm6, %v1154_v4, %v1156_v10  ;;  %1164 = vst.msk [vmem:[#allocation2 + $0x28] sm:$0xf0] %vm7503_vm3, %v1156_v10  ;;  %1138 = vst [vmem:[#allocation2 + $0x18] sm:$0xf] %v1133_v12  ;;  %v1286_v15 = vld [vmem:[#allocation2] sm:$0xff]  ;;  %v5895_v10 = vld [vmem:[%s7468_s3 + $0x68] sm:$0xff]  }
 0x4a3   : > { %1163 = vst [vmem:[#allocation2 + $0x20] sm:$0xf0] %v1158_v14  ;;  %1320 = vmatpush1.bf16.msra.mxu0 %v1286_v15  ;;  %vm7540_vm6 = vmmov %vm7539_vm9  ;;  %v5896_v12 = vld [vmem:[%s7468_s3 + $0x28] sm:$0xff]   ;;  %v5898_v14 = vld [vmem:[%s7468_s3 + $0x70] sm:$0xff]  }
 0x4a4   : > { %v1178_v16 = vpop.permute.xlu0 %1177  ;;  %v5899_v15 = vld [vmem:[%s7468_s3 + $0x30] sm:$0xff]  }
 0x4a5   : > { %v1152_v17 = vpop.permute.xlu1 %1151 }
 0x4a6   : > { %v1157_v18 = vsel %vm7536_vm15, %v1152_v17, %v1154_v4  ;;  %vm7541_vm15 = vcmask 752640   ;;  %v5889_v4 = vld [vmem:[%s7468_s3 + $0x50] sm:$0xff]   ;;  %v5901_v17 = vld [vmem:[%s7468_s3 + $0x78] sm:$0xff]  }
 0x4a7   : > { %1162 = vst [vmem:[#allocation2 + $0x18] sm:$0xf0] %v1157_v18  ;;  %v5902_v18 = vld [vmem:[%s7468_s3 + $0x38] sm:$0xff]  }
 0x4a8   : > { %v1202_v19 = vpop.permute.xlu0 %1201 }
 0x4a9   : > { %v1180_v20 = vpop.permute.xlu1 %1179  ;;  %v1291_v21 = vld [vmem:[#allocation2 + $0x28] sm:$0xff] }
 0x4aa   : > { %v1182_v22 = vsel %vm7537_vm13, %v1178_v16, %v1180_v20  ;;  %1188 = vst.msk [vmem:[#allocation2 + $0x40] sm:$0xf] %vm7506_vm0, %v1180_v20  ;;  %5601 = vmatpush3.bf16.msra.mxu1 %v1291_v21  ;;  %v1290_v23 = vld [vmem:[#allocation2 + $0x20] sm:$0xff]  ;;  %vm7542_vm13 = vmmov %vm7541_vm15 }
 0x4ab   : > { %1187 = vst [vmem:[#allocation2 + $0x38] sm:$0xf] %v1182_v22  ;;  %1321 = vmatprep.subr.bf16.mxu0 %v1290_v23  ;;  %5602 = vmatprep.subr.bf16.mxu1 %v6081_v1 }
 0x4ac   : > { %v1176_v24 = vpop.permute.xlu0 %1175 }
 0x4ad   : > { %v1204_v25 = vpop.permute.xlu1 %1203  ;;  %v1181_v26 = vsel %vm7538_vm8, %v1176_v24, %v1178_v16  ;;  %vm7543_vm8 = vcmask 744448   ;;  %v5900_v16 = vld [vmem:[%s7468_s3 + $0x88] sm:$0xff]  }
 0x4ae   : > { %v1206_v27 = vsel %vm7539_vm9, %v1202_v19, %v1204_v25  ;;  %1212 = vst.msk [vmem:[#allocation2 + $0x40] sm:$0xf0] %vm7503_vm3, %v1204_v25  ;;  %1186 = vst [vmem:[#allocation2 + $0x30] sm:$0xf] %v1181_v26  ;;  %v1289_v28 = vld [vmem:[#allocation2 + $0x18] sm:$0xff] }
 0x4af   : > { %1211 = vst [vmem:[#allocation2 + $0x38] sm:$0xf0] %v1206_v27  ;;  %1322 = vmatpush1.bf16.msra.mxu0 %v1289_v28  ;;  %vm7544_vm9 = vmmov %vm7543_vm8 }
 0x4b0   : > { %v1226_v29 = vpop.permute.xlu0 %1225 }
 0x4b1   : > { %v1200_v30 = vpop.permute.xlu1 %1199 }
 0x4b2   : > { %v1205_v31 = vsel %vm7540_vm6, %v1200_v30, %v1202_v19  ;;  %vm7545_vm6 = vcmask 736256  }
 0x4b3   : > { %1210 = vst [vmem:[#allocation2 + $0x30] sm:$0xf0] %v1205_v31 }
 0x4b4   : > { %v1250_v32 = vpop.permute.xlu0 %1249 }
 0x4b5   : > { %v1228_v33 = vpop.permute.xlu1 %1227  ;;  %v1294_v34 = vld [vmem:[#allocation2 + $0x40] sm:$0xff] }
 0x4b6   : > { %v1230_v35 = vsel %vm7541_vm15, %v1226_v29, %v1228_v33  ;;  %1236 = vst.msk [vmem:[#allocation2 + $0x58] sm:$0xf] %vm7506_vm0, %v1228_v33  ;;  %5603 = vmatpush3.bf16.msra.mxu1 %v1294_v34  ;;  %v1293_v36 = vld [vmem:[#allocation2 + $0x38] sm:$0xff]  ;;  %vm7546_vm15 = vmmov %vm7545_vm6 }
 0x4b7   : > { %1235 = vst [vmem:[#allocation2 + $0x50] sm:$0xf] %v1230_v35  ;;  %1323 = vmatprep.subr.bf16.mxu0 %v1293_v36  ;;  %5604 = vmatprep.subr.bf16.mxu1 %v6081_v1 }
 0x4b8   : > { %v1224_v37 = vpop.permute.xlu0 %1223 }
 0x4b9   : > { %v1252_v38 = vpop.permute.xlu1 %1251  ;;  %v1229_v39 = vsel %vm7542_vm13, %v1224_v37, %v1226_v29  ;;  %vm7547_vm13 = vcmask 1043456  }
 0x4ba   : > { %v1254_v40 = vsel %vm7543_vm8, %v1250_v32, %v1252_v38  ;;  %1260 = vst.msk [vmem:[#allocation2 + $0x58] sm:$0xf0] %vm7503_vm3, %v1252_v38  ;;  %1234 = vst [vmem:[#allocation2 + $0x48] sm:$0xf] %v1229_v39  ;;  %v1292_v42 = vld [vmem:[#allocation2 + $0x30] sm:$0xff]  ;;  %vm287_vm3 = vcmask 310520  }
 0x4bb   : > { %1259 = vst [vmem:[#allocation2 + $0x50] sm:$0xf0] %v1254_v40  ;;  %1324 = vmatpush1.bf16.msra.mxu0 %v1292_v42  ;;  %vm7548_vm8 = vmmov %vm7547_vm13 }
 0x4bc   : > { %v1272_v43 = vpop.permute.xlu0 %1271 }
 0x4bd   : > { %v1248_v44 = vpop.permute.xlu1 %1247 }
 0x4be   : > { %v1253_v45 = vsel %vm7544_vm9, %v1248_v44, %v1250_v32  ;;  %vm7549_vm9 = vmmov %vm7548_vm8 }
 0x4bf   : > { %1258 = vst [vmem:[#allocation2 + $0x48] sm:$0xf0] %v1253_v45 }
 0x4c0   : > { %v1276_v47 = vpop.permute.xlu0 %1275 }
 0x4c1   : > { %v1274_v48 = vpop.permute.xlu1 %1273  ;;  %1284 = vst.msk [vmem:[#allocation2 + $0x70] sm:$0xf] %vm7506_vm0, %v1276_v47  ;;  %v1297_v49 = vld [vmem:[#allocation2 + $0x58] sm:$0xff] }
 0x4c2   : > { %v1277_v50 = vsel %vm7545_vm6, %v1272_v43, %v1274_v48  ;;  %v1278_v51 = vsel %vm7546_vm15, %v1274_v48, %v1276_v47  ;;  %5605 = vmatpush3.bf16.msra.mxu1 %v1297_v49  ;;  %v1296_v52 = vld [vmem:[#allocation2 + $0x50] sm:$0xff]  ;;  %vm7550_vm6 = vcmask 588800  }
 0x4c3   : > { %1282 = vst [vmem:[#allocation2 + $0x60] sm:$0xf] %v1277_v50  ;;  %1283 = vst [vmem:[#allocation2 + $0x68] sm:$0xf] %v1278_v51  ;;  %1325 = vmatprep.subr.bf16.mxu0 %v1296_v52  ;;  %5606 = vmatprep.subr.bf16.mxu1 %v6081_v1 }
 0x4c4   : > { %vm7551_vm15 = vmmov %vm7550_vm6 }
 0x4c6   : > { %v1295_v54 = vld [vmem:[#allocation2 + $0x48] sm:$0xff] }
 0x4c7   : > { %1326 = vmatpush1.bf16.msra.mxu0 %v1295_v54 }
 0x4c8   : > { %v1300_v55 = vld [vmem:[#allocation2 + $0x70] sm:$0xf] }
 0x4c9   : > { %v1317_v56 = vsel %vm7547_vm13, %v1300_v55, 0  ;;  %vm1547_vm13 = vcmask 261120  }
 0x4ca   : > { %v1299_v59 = vld [vmem:[#allocation2 + $0x68] sm:$0xf]  ;;  %5607 = vmatpush3.bf16.msra.mxu1 %v1317_v56  ;;  %v1298_v61 = vld [vmem:[#allocation2 + $0x60] sm:$0xf] }
 0x4cb   : > { %5078 = vmatprep.subr.msk.bf16.mxu0 %vm7548_vm8, %v1299_v59  ;;  %v1311_v63 = vsel %vm7549_vm9, %v1298_v61, 0  ;;  %5612 = vmatprep.subr.bf16.mxu1 %v6081_v1  ;;  %vm1632_vm8 = vcmask 830464   ;;  %vm1635_vm9 = vcmask 650240  }
 0x4cc   : > { %1328 = vmatpush1.bf16.msra.mxu0 %v1311_v63 }
 0x4cd   : > { %5609 = vmatmul.mubr.msk.bf16.vlgmr.msra.gmra.mrb[8].mxu1 %vm7550_vm6, %v1285_v57  ;;  %5420 = vmatprep.subr.bf16.mxu0 %v5885_v58  ;;  %v1709_v58 = vld [vmem:[%s7467_s2 + $0x18] sm:$0xff]  ;;  %vm1644_vm6 = vcmask 654340  }
 0x4ce   : > { %5613 = vmatpush3.bf16.msra.mxu1 %v5897_v62  ;;  %5616 = vmatprep.mubr.msk.bf16.mxu1 %vm7534_vm5, %v6081_v1 }
 0x4cf   : > { %5079 = vmatmul.mubr.msk.bf16.vlgmr.msra.gmra.mrb[8].mxu0 %vm7551_vm15, %v1285_v57  ;;  %5614 = vmatprep.subr.bf16.mxu1 %v6081_v1  ;;  %v1710_v57 = vld [vmem:[%s7467_s2 + $0x20] sm:$0xff]  ;;  %vm7552_vm15 = vcmask 1043456  }
 0x4d0   : > { %5421 = vmatpush3.bf16.msra.mxu0 %v5886_v0 }
 0x4d1   : > { %5422 = vmatprep.subr.bf16.mxu0 %v5887_v2 }
 0x4d2   : > { %5615 = vmatpush3.bf16.msra.mxu1 %v5900_v16  ;;  %v1305_v19 = vpop.permute.xlu1 %1304 }
 0x4d3   : > { %5620 = vmatprep.subr.bf16.mxu1 %v6081_v1 }
 0x4d4   : > { %5423 = vmatpush3.bf16.msra.mxu0 %v5888_v3 }
 0x4d5   : > { %5424 = vmatprep.subr.bf16.mxu0 %v5889_v4 }
 0x4d8   : > { %5425 = vmatpush3.bf16.msra.mxu0 %v5890_v5 }
 0x4d9   : > { %5426 = vmatprep.subr.bf16.mxu0 %v5891_v6 }
 0x4dc   : > { %5427 = vmatpush3.bf16.msra.mxu0 %v5892_v7 }
 0x4dd   : > { %5428 = vmatprep.subr.bf16.mxu0 %v5893_v8 }
 0x4e0   : > { %5429 = vmatpush3.bf16.msra.mxu0 %v5894_v9 }
 0x4e1   : > { %5430 = vmatprep.subr.bf16.mxu0 %v5895_v10 }
 0x4e4   : > { %5431 = vmatpush3.bf16.msra.mxu0 %v5896_v12  ;;  %v5911_v12 = vld [vmem:[%s7466_s1 + $0x24] ss:$12 sps:$4 sm:$0xff]  }
 0x4e5   : > { %5432 = vmatprep.subr.bf16.mxu0 %v5898_v14 }
 0x4e8   : > { %5433 = vmatpush3.bf16.msra.mxu0 %v5899_v15  ;;  %v6567_v14 = vmul.u32.u64.low 3435973837, %v6250_v11  ;;  %v6568_v15 = vmul.u32.u64.high 3435973837, %v6250_v11, %v6567_v14 }
 0x4e9   : > { %5434 = vmatprep.subr.bf16.mxu0 %v5901_v17 }
 0x4ea   : > { %v1781_v16 = vshrl.u32 %v6568_v15, 3 }
 0x4ec   : > { %5435 = vmatpush3.bf16.msra.mxu0 %v5902_v18  ;;  %v1782_v17 = vmul.u32 10, %v1781_v16 }
 0x4ed   : > { %5634 = vmatprep.subr.bf16.mxu0 %v6081_v1 }
 0x4ee   : > { %v1783_v18 = vsub.s32 %v6250_v11, %v1782_v17 }
 0x5a0   : > { %v1394_v20 = vpop.f32.mrb[8].mxu1 }
 0x5a1   : > { %v1395_v21 = vadd.f32 %v1394_v20, %v1305_v19  ;;  %v5610_v22 = vpop.f32.mrb[9].mxu1 }
 0x5a2   : > { %v1353_v23 = vpop.f32.mrb[8].mxu0  ;;  %v1397_v24 = vpop.f32.mrb[10].mxu1 }
 0x5a3   : > { %v1402_v25 = vpack.c.bf16 %v1395_v21, %v1395_v21  ;;  %v1354_v26 = vadd.f32 %v1353_v23, %v1305_v19  ;;  %v1355_v27 = vpop.f32.mrb[9].mxu0  ;;  %v5611_v28 = vpop.f32.mrb[11].mxu1 }
 0x5a4   : > { %v1356_v29 = vadd.f32 %v1355_v27, %v1305_v19  ;;  %v1357_v30 = vpop.f32.mrb[10].mxu0  ;;  %v1789_v19 = vadd.s32 10, %v1783_v18 }
 0x5a5   : > { %v1358_v31 = vpop.f32.mrb[11].mxu0  ;;  %5617 = vmatmul.mubr.msk.bf16.vlgmr.msra.gmra.mrb[12].mxu1 %vm1547_vm13, %v1402_v25  ;;  %v1400_v33 = vpack.c.bf16 %v1354_v26, %v1354_v26 }
 0x5a6   : > { %v1401_v32 = vpack.c.bf16 %v1356_v29, %v1356_v29  ;;  %5630 = vmatprep.mubr.msk.bf16.mxu1 %vm7534_vm5, %v6081_v1 }
 0x5a8   : > { %1583 = vmatprep.mubr.bf16.mxu0 %v1401_v32 }
 0x5a9   : > { %1584 = vmatmul.mubr.bf16.vlgmr.msra.gmra.mrb[12].mxu0 %v1400_v33 }
 0x5aa   : > { %5644 = vmatprep.mubr.msk.bf16.mxu0 %vm7534_vm5, %v6081_v1 }
 0x678   : > { %v1625_v34 = vpop.f32.mrb[12].mxu1 }
 0x679   : > { %v5618_v35 = vpop.f32.mrb[13].mxu1 }
 0x67a   : > { %v1628_v36 = vpop.f32.mrb[14].mxu1 }
 0x67b   : > { %v5619_v37 = vpop.f32.mrb[15].mxu1 }
 0x67c   : > { %v5436_v38 = vpop.f32.mrb[12].mxu0 }
 0x67d   : > { %v5437_v39 = vpop.f32.mrb[13].mxu0 }
 0x67e   : > { %v5438_v40 = vadd.f32 %v5437_v39, %v5436_v38  ;;  %v5439_v42 = vpop.f32.mrb[14].mxu0  ;;  %v1866_v38 = vld [vmem:[%s7467_s2 + $0x30] sm:$0xff]  ;;  %v1865_v39 = vld [vmem:[%s7467_s2 + $0x28] sm:$0xff] }
 0x67f   : > { %v5440_v43 = vpop.f32.mrb[15].mxu0  ;;  %v5915_v42 = vld [vmem:[%s7469_s4] sm:$0xff]  }
 0x680   : > { %v1626_v44 = vadd.f32 %v5438_v40, %v1625_v34  ;;  %v5912_v40 = vld [vmem:[%s7466_s1 + $0x40] ss:$12 sps:$4 sm:$0xff]   ;;  %5635 = vmatpush3.bf16.msra.mxu0 %v5915_v42 }
 0x681   : > { %v5916_v43 = vld [vmem:[%s7469_s4 + $0x8] sm:$0xff]   ;;  %5636 = vmatprep.subr.bf16.mxu0 %v6081_v1 }
 0x682   : > { %v1631_v45 = vpack.c.bf16 %v1626_v44, %v1626_v44  ;;  %v5917_v44 = vld [vmem:[%s7469_s4 + $0x10] sm:$0xff]  }
 0x684   : > { %1633 = vst.msk [vmem:[#allocation7] sm:$0xf] %vm1632_vm8, %v1631_v45  ;;  %vm7553_vm8 = vcmask 588800   ;;  %5637 = vmatpush3.bf16.msra.mxu0 %v5916_v43 }
 0x685   : > { %5638 = vmatprep.subr.bf16.mxu0 %v6081_v1 }
 0x688   : > { %5639 = vmatpush3.bf16.msra.mxu0 %v5917_v44 }
 0x689   : > { %5640 = vmatprep.subr.bf16.mxu0 %v6081_v1 }
 0x68b   : > { %v5903_v47 = vld [vmem:[#allocation7] ss:$0 sps:$4 sm:$0xff]  }
 0x68c   : > { %v5904_v48 = vld [vmem:[#allocation7] ss:$0 sps:$4 sm:$0xff]   ;;  %1650 = vrot.lane.b32.xlu1 %v5903_v47, %s6083_s8 }
 0x68d   : > { %1641 = vrot.lane.b32.xlu0 %v5904_v48, %s6082_s30  ;;  %v5905_v49 = vld [vmem:[#allocation7] ss:$0 sps:$4 sm:$0xff]  }
 0x68e   : > { %v5906_v50 = vld [vmem:[#allocation7] ss:$0 sps:$4 sm:$0xff]  }
 0x68f   : > { %v1634_v51 = vld [vmem:[#allocation7] sm:$0xf] }
 0x690   : > { %1666 = vrot.lane.b32.xlu1 %v5905_v49, %s6093_s20  ;;  %1636 = vst.msk [vmem:[#allocation2] sm:$0xf] %vm1635_vm9, %v1634_v51  ;;  %v5907_v52 = vld [vmem:[#allocation7] ss:$0 sps:$4 sm:$0xff]  }
 0x691   : > { %1658 = vrot.lane.b32.xlu0 %v5906_v50, %s7499_s21  ;;  %v5908_v54 = vld [vmem:[#allocation7] ss:$0 sps:$4 sm:$0xff]  }
 0x692   : > { %v5909_v55 = vld [vmem:[#allocation7] ss:$0 sps:$4 sm:$0xff]  }
 0x693   : > { %v5910_v56 = vld [vmem:[#allocation7] ss:$0 sps:$4 sm:$0xff]  }
 0x694   : > { %1682 = vrot.lane.b32.xlu1 %v5907_v52, %s6086_s11 }
 0x695   : > { %1674 = vrot.lane.b32.xlu0 %v5908_v54, %s6095_s22 }
 0x698   : > { %1698 = vrot.lane.b32.xlu1 %v5909_v55, %s7501_s23 }
 0x699   : > { %1690 = vrot.lane.b32.xlu0 %v5910_v56, %s6097_s27 }
 0x69c   : > { %1718 = vperm.xlu1 %5850, %v1710_v57  }
 0x69d   : > { %1713 = vperm.xlu0 %5849, %v1709_v58  }
 0x6fe   : > { %v1651_v59 = vpop.permute.xlu1 %1650 }
 0x6ff   : > { %1653 = vst.msk [vmem:[#allocation2 + $0x18] sm:$0xf] %vm1635_vm9, %v1651_v59  ;;  %v1642_v61 = vpop.permute.xlu0 %1641 }
 0x700   : > { %1645 = vst.msk [vmem:[#allocation2] sm:$0xf0] %vm1644_vm6, %v1642_v61 }
 0x702   : > { %v1667_v62 = vpop.permute.xlu1 %1666 }
 0x703   : > { %1669 = vst.msk [vmem:[#allocation2 + $0x30] sm:$0xf] %vm1635_vm9, %v1667_v62  ;;  %v1659_v63 = vpop.permute.xlu0 %1658 }
 0x704   : > { %1661 = vst.msk [vmem:[#allocation2 + $0x18] sm:$0xf0] %vm1644_vm6, %v1659_v63 }
 0x706   : > { %v1683_v0 = vpop.permute.xlu1 %1682 }
 0x707   : > { %1685 = vst.msk [vmem:[#allocation2 + $0x48] sm:$0xf] %vm1635_vm9, %v1683_v0  ;;  %v1675_v2 = vpop.permute.xlu0 %1674  ;;  %v1704_v3 = vld [vmem:[#allocation2] sm:$0xff]  ;;  %v5914_v0 = vld [vmem:[%s7466_s1 + $0x3c] ss:$12 sps:$4 sm:$0xff]  }
 0x708   : > { %1677 = vst.msk [vmem:[#allocation2 + $0x30] sm:$0xf0] %vm1644_vm6, %v1675_v2  ;;  %5621 = vmatpush3.bf16.msra.mxu1 %v1704_v3  ;;  %v5918_v2 = vld [vmem:[%s7469_s4 + $0x18] sm:$0xff]   ;;  %v5919_v3 = vld [vmem:[%s7469_s4 + $0x20] sm:$0xff]  }
 0x709   : > { %5622 = vmatprep.subr.bf16.mxu1 %v6081_v1  ;;  %5641 = vmatpush3.bf16.msra.mxu0 %v5918_v2 }
 0x70a   : > { %v1699_v4 = vpop.permute.xlu1 %1698  ;;  %5642 = vmatprep.subr.bf16.mxu0 %v6081_v1 }
 0x70b   : > { %1701 = vst.msk [vmem:[#allocation2 + $0x60] sm:$0xf] %vm1635_vm9, %v1699_v4  ;;  %v1691_v5 = vpop.permute.xlu0 %1690  ;;  %v1705_v6 = vld [vmem:[#allocation2 + $0x18] sm:$0xff]  ;;  %vm292_vm9 = vcmask 89088  }
 0x70c   : > { %1693 = vst.msk [vmem:[#allocation2 + $0x48] sm:$0xf0] %vm1644_vm6, %v1691_v5  ;;  %5623 = vmatpush3.bf16.msra.mxu1 %v1705_v6  ;;  %vm294_vm6 = vcmask 835288  }
 0x70d   : > { %5624 = vmatprep.subr.bf16.mxu1 %v6081_v1  ;;  %293 = vst.msk [vmem:[#allocation8] sm:$0xff] %vm292_vm9, %v6090_v13  ;;  %298 = vst.msk [vmem:[#allocation10] sm:$0xff] %vm292_vm9, %v6090_v13  ;;  %5643 = vmatpush3.bf16.msra.mxu0 %v5919_v3 }
 0x70e   : > { %295 = vst.msk [vmem:[#allocation8] sm:$0xff] %vm294_vm6, %v6090_v13  ;;  %299 = vst.msk [vmem:[#allocation10] sm:$0xff] %vm294_vm6, %v6090_v13  ;;  %vm1804_vm6 = vcmask 654336   ;;  %2131 = vmatprep.subr.bf16.mxu0 %v6090_v13 }
 0x70f   : > { %v1706_v7 = vld [vmem:[#allocation2 + $0x30] sm:$0xff] }
 0x710   : > { %5625 = vmatpush3.bf16.msra.mxu1 %v1706_v7 }
 0x711   : > { %5626 = vmatprep.subr.bf16.mxu1 %v6081_v1 }
 0x712   : > { %v1708_v9 = vld [vmem:[#allocation2 + $0x60] sm:$0xf] }
 0x713   : > { %v1707_v8 = vld [vmem:[#allocation2 + $0x48] sm:$0xff]  ;;  %v1730_v10 = vsel %vm7552_vm15, %v1708_v9, 0  ;;  %vm1786_vm15 = vcmp.ne.s32.totalorder %v1783_v18, 0 }
 0x714   : > { %5627 = vmatpush3.bf16.msra.mxu1 %v1707_v8 }
 0x715   : > { %5628 = vmatprep.subr.bf16.mxu1 %v6081_v1 }
 0x718   : > { %5629 = vmatpush3.bf16.msra.mxu1 %v1730_v10 }
 0x719   : > { %1890 = vmatprep.subr.bf16.mxu1 %v6090_v13 }
 0x71b   : > { %5631 = vmatmul.mubr.msk.bf16.vlgmr.msra.gmra.mrb[16].mxu1 %vm7553_vm8, %v5911_v12  ;;  %vm1787_vm8 = vcmp.lt.s32.totalorder %v1783_v18, 0  ;;  %v1719_v25 = vpop.permute.xlu1 %1718 }
 0x71c   : > { %vm1788_vm14 = vmand %vm1787_vm8, %vm1786_vm15  ;;  %v1714_v20 = vpop.permute.xlu0 %1713  ;;  %vm1886_vm15 = vcmask 130048   ;;  %vm2017_vm8 = vcmask 310272  }
 0x71d   : > { %v1790_v23 = vsel %vm1788_vm14, %v1789_v19, %v1783_v18  ;;  %vm1801_vm14 = vcmask 744536   ;;  %5112 = vmatprep.mubr.msk.bf16.mxu1 %vm1886_vm15, %v5912_v40 }
 0x71e   : > { %vm6572_vm9 = vcmp.lt.s32.totalorder %v1790_v23, 8  ;;  %v2083_v23 = vld [vmem:[%s7467_s2 + $0x38] sm:$0xff] }
 0x7ee   : > { %v1766_v21 = vpop.f32.mrb[16].mxu1 }
 0x7ef   : > { %v1767_v22 = vadd.f32 %v1766_v21, %v1714_v20  ;;  %v5632_v24 = vpop.f32.mrb[17].mxu1 }
 0x7f0   : > { %v1769_v26 = vpop.f32.mrb[18].mxu1  ;;  %v2086_v24 = vld [vmem:[%s7467_s2 + $0x50] sm:$0xff] }
 0x7f1   : > { %v1773_v27 = vmax.f32 %v1767_v22, 0.0  ;;  %v1770_v28 = vadd.f32 %v1769_v26, %v1719_v25  ;;  %v5633_v29 = vpop.f32.mrb[19].mxu1  ;;  %v2084_v22 = vld [vmem:[%s7467_s2 + $0x40] sm:$0xff]  ;;  %v2085_v25 = vld [vmem:[%s7467_s2 + $0x48] sm:$0xff] }
 0x7f2   : > { %v5920_v26 = vld [vmem:[%s7466_s1 + $0x58] ss:$12 sps:$4 sm:$0xff]  }
 0x7f3   : > { %v1774_v31 = vmax.f32 %v1770_v28, 0.0  ;;  %v1794_v32 = vsel %vm6572_vm9, %v1773_v27, 0.0 }
 0x7f5   : > { %v1795_v33 = vsel %vm6572_vm9, %v1774_v31, 0.0 }
 0x7f6   : > { %v1796_v34 = vpack.c.bf16 %v1795_v33, %v1794_v32 }
 0x7f8   : > { %1798 = vrot.lane.b32.xlu0 %v1796_v34, %s7498_s28  ;;  %s6104_s28 = smov 7  }
 0x86a   : > { %v1799_v35 = vpop.permute.xlu0 %1798 }
 0x86b   : > { %1802 = vst.msk [vmem:[#allocation8] sm:$0xff] %vm1801_vm14, %v1799_v35 }
 0x872   : > { %v6582_v36 = vld [vmem:[#allocation8] sm:$0xff] }
 0x873   : > { %1814 = vrot.lane.b32.xlu0 %v6582_v36, %s6083_s8  ;;  %1808 = vrot.lane.b32.xlu1 %v6582_v36, %s6082_s30  ;;  %1805 = vst.msk [vmem:[#allocation2] sm:$0xff] %vm1804_vm6, %v6582_v36 }
 0x877   : > { %1826 = vrot.lane.b32.xlu0 %v6582_v36, %s6093_s20  ;;  %1820 = vrot.lane.b32.xlu1 %v6582_v36, %s7499_s21  ;;  %s7564_s21 = smov 11  }
 0x87a   : > { %v1856_v37 = vld [vmem:[#allocation2] sm:$0xff] }
 0x87b   : > { %1838 = vrot.lane.b32.xlu0 %v6582_v36, %s6086_s11  ;;  %1832 = vrot.lane.b32.xlu1 %v6582_v36, %s6095_s22 }
 0x87c   : > { %1891 = vmatpush1.bf16.msra.mxu1 %v1856_v37 }
 0x87d   : > { %1892 = vmatprep.subr.bf16.mxu1 %v6090_v13 }
 0x87f   : > { %1850 = vrot.lane.b32.xlu0 %v6582_v36, %s7501_s23  ;;  %1844 = vrot.lane.b32.xlu1 %v6582_v36, %s6097_s27 }
 0x883   : > { %1874 = vperm.xlu0 %5849, %v1866_v38   ;;  %1869 = vperm.xlu1 %5850, %v1865_v39  }
 0x8e5   : > { %v1815_v45 = vpop.permute.xlu0 %1814  ;;  %v1809_v47 = vpop.permute.xlu1 %1808 }
 0x8e6   : > { %1817 = vst.msk [vmem:[#allocation2 + $0x30] sm:$0xff] %vm1804_vm6, %v1815_v45  ;;  %1811 = vst.msk [vmem:[#allocation2 + $0x18] sm:$0xff] %vm1804_vm6, %v1809_v47  ;;  %v5922_v47 = vld [vmem:[%s7466_s1 + $0x54] ss:$12 sps:$4 sm:$0xff]  }
 0x8e9   : > { %v1827_v48 = vpop.permute.xlu0 %1826  ;;  %v1821_v49 = vpop.permute.xlu1 %1820 }
 0x8ea   : > { %1829 = vst.msk [vmem:[#allocation2 + $0x60] sm:$0xff] %vm1804_vm6, %v1827_v48  ;;  %1823 = vst.msk [vmem:[#allocation2 + $0x48] sm:$0xff] %vm1804_vm6, %v1821_v49  ;;  %v5923_v48 = vld [vmem:[%s7466_s1 + $0x70] ss:$12 sps:$4 sm:$0xff]   ;;  %v5925_v49 = vld [vmem:[%s7466_s1 + $0x6c] ss:$12 sps:$4 sm:$0xff]  }
 0x8ed   : > { %v1839_v50 = vpop.permute.xlu0 %1838  ;;  %v1833_v51 = vpop.permute.xlu1 %1832  ;;  %v1857_v52 = vld [vmem:[#allocation2 + $0x18] sm:$0xff]  ;;  %v1858_v56 = vld [vmem:[#allocation2 + $0x30] sm:$0xff] }
 0x8ee   : > { %1841 = vst.msk [vmem:[#allocation2 + $0x90] sm:$0xff] %vm1804_vm6, %v1839_v50  ;;  %1835 = vst.msk [vmem:[#allocation2 + $0x78] sm:$0xff] %vm1804_vm6, %v1833_v51  ;;  %1893 = vmatpush1.bf16.msra.mxu1 %v1857_v52  ;;  %v6708_v50 = vmul.u32.u64.low 2863311531, %v6250_v11  ;;  %v6709_v51 = vmul.u32.u64.high 2863311531, %v6250_v11, %v6708_v50 }
 0x8ef   : > { %1894 = vmatprep.subr.bf16.mxu1 %v6090_v13 }
 0x8f0   : > { %v2186_v52 = vshrl.u32 %v6709_v51, 2 }
 0x8f1   : > { %v1851_v54 = vpop.permute.xlu0 %1850  ;;  %v1845_v55 = vpop.permute.xlu1 %1844  ;;  %v1859_v57 = vld [vmem:[#allocation2 + $0x48] sm:$0xff]  ;;  %v1860_v58 = vld [vmem:[#allocation2 + $0x60] sm:$0xff] }
 0x8f2   : > { %1853 = vst.msk [vmem:[#allocation2 + $0xc0] sm:$0xff] %vm1804_vm6, %v1851_v54  ;;  %1847 = vst.msk [vmem:[#allocation2 + $0xa8] sm:$0xff] %vm1804_vm6, %v1845_v55  ;;  %1895 = vmatpush1.bf16.msra.mxu1 %v1858_v56  ;;  %v2187_v54 = vmul.u32 6, %v2186_v52 }
 0x8f3   : > { %1896 = vmatprep.subr.bf16.mxu1 %v6090_v13 }
 0x8f4   : > { %v2188_v55 = vsub.s32 %v6250_v11, %v2187_v54 }
 0x8f5   : > { %v1861_v59 = vld [vmem:[#allocation2 + $0x78] sm:$0xff]  ;;  %v1862_v61 = vld [vmem:[#allocation2 + $0x90] sm:$0xff] }
 0x8f6   : > { %1897 = vmatpush1.bf16.msra.mxu1 %v1859_v57  ;;  %vm2191_vm4 = vcmp.ne.s32.totalorder %v2188_v55, 0  ;;  %vm2192_vm2 = vcmp.lt.s32.totalorder %v2188_v55, 0  ;;  %v2194_v56 = vadd.s32 6, %v2188_v55 }
 0x8f7   : > { %1898 = vmatprep.subr.bf16.mxu1 %v6090_v13  ;;  %vm2193_vm0 = vmand %vm2192_vm2, %vm2191_vm4  ;;  %vm7558_vm2 = vcmask 1043456  }
 0x8f8   : > { %v2195_v57 = vsel %vm2193_vm0, %v2194_v56, %v2188_v55  ;;  %vm2213_vm0 = vcmask 252984   ;;  %vm7559_vm4 = vmmov %vm7558_vm2 }
 0x8f9   : > { %v1863_v62 = vld [vmem:[#allocation2 + $0xa8] sm:$0xff]  ;;  %v1864_v63 = vld [vmem:[#allocation2 + $0xc0] sm:$0xff] }
 0x8fa   : > { %1899 = vmatpush1.bf16.msra.mxu1 %v1860_v58 }
 0x8fb   : > { %1900 = vmatprep.subr.bf16.mxu1 %v6090_v13 }
 0x8fe   : > { %1901 = vmatpush1.bf16.msra.mxu1 %v1861_v59 }
 0x8ff   : > { %1902 = vmatprep.subr.bf16.mxu1 %v6090_v13 }
 0x902   : > { %1903 = vmatpush1.bf16.msra.mxu1 %v1862_v61  ;;  %v1875_v5 = vpop.permute.xlu0 %1874  ;;  %v1870_v7 = vpop.permute.xlu1 %1869 }
 0x903   : > { %1904 = vmatprep.subr.bf16.mxu1 %v6090_v13 }
 0x906   : > { %1905 = vmatpush1.bf16.msra.mxu1 %v1863_v62 }
 0x907   : > { %1906 = vmatprep.subr.bf16.mxu1 %v6090_v13 }
 0x90a   : > { %1907 = vmatpush1.bf16.msra.mxu1 %v1864_v63 }
 0x90d   : > { %1923 = vmatmul.mubr.bf16.vlgmr.msra.gmra.mrb[20].mxu1 %v5914_v0 }
 0x9e0   : > { %v1924_v4 = vpop.f32.mrb[20].mxu1 }
 0x9e1   : > { %v1926_v6 = vpop.f32.mrb[21].mxu1  ;;  %v1925_v9 = vadd.f32 %v1924_v4, %v1870_v7 }
 0x9e2   : > { %v1927_v8 = vpop.f32.mrb[22].mxu1 }
 0x9e3   : > { %v1928_v10 = vadd.f32 %v1927_v8, %v1875_v5  ;;  %v1929_v12 = vpop.f32.mrb[23].mxu1 }
 0x9e5   : > { %v1931_v14 = vpack.c.bf16 %v1928_v10, %v1925_v9 }
 0x9e7   : > { %5645 = vmatmul.mubr.msk.bf16.vlgmr.msra.gmra.mrb[16].mxu0 %vm1804_vm6, %v1931_v14 }
 0x9e8   : > { %5123 = vmatprep.mubr.msk.bf16.mxu0 %vm1886_vm15, %v5920_v26  ;;  %v2352_v26 = vld [vmem:[%s7467_s2 + $0x68] sm:$0xff] }
 0xaba   : > { %v2009_v15 = vpop.f32.mrb[16].mxu0 }
 0xabb   : > { %v5646_v16 = vpop.f32.mrb[17].mxu0 }
 0xabc   : > { %v2012_v17 = vpop.f32.mrb[18].mxu0 }
 0xabd   : > { %v2016_v18 = vpack.c.bf16 %v2012_v17, %v2009_v15  ;;  %v5647_v19 = vpop.f32.mrb[19].mxu0 }
 0xabf   : > { %2018 = vst.msk [vmem:[#allocation11] sm:$0xff] %vm2017_vm8, %v2016_v18  ;;  %vm284_vm8 = vcmask 56320  }
 0xac0   : > { %285 = vst.msk [vmem:[#allocation12] sm:$0xff] %vm284_vm8, %v6090_v13  ;;  %286 = vst.msk [vmem:[#allocation12 + $0x8] sm:$0xff] %vm284_vm8, %v6090_v13 }
 0xac1   : > { %288 = vst.msk [vmem:[#allocation12] sm:$0xff] %vm287_vm3, %v6090_v13  ;;  %289 = vst.msk [vmem:[#allocation12 + $0x8] sm:$0xff] %vm287_vm3, %v6090_v13  ;;  %vm6713_vm3 = vcmp.lt.s32.totalorder %v2195_v57, 4 }
 0xac2   : > { %vm7560_vm8 = vmmov %vm7558_vm2 }
 0xac6   : > { %v2019_v20 = vld [vmem:[#allocation11] sm:$0xff] }
 0xac7   : > { %2030 = vrot.lane.b32.xlu0 %v2019_v20, %s6083_s8  ;;  %2024 = vrot.lane.b32.xlu1 %v2019_v20, %s6082_s30  ;;  %2021 = vst.msk [vmem:[#allocation2] sm:$0xff] %vm2020_vm11, %v2019_v20 }
 0xacb   : > { %2042 = vrot.lane.b32.xlu0 %v2019_v20, %s6099_s16  ;;  %2036 = vrot.lane.b32.xlu1 %v2019_v20, %s6100_s17 }
 0xace   : > { %v2074_v21 = vld [vmem:[#allocation2] sm:$0xff] }
 0xacf   : > { %2054 = vrot.lane.b32.xlu0 %v2019_v20, %s6095_s22  ;;  %2048 = vrot.lane.b32.xlu1 %v2019_v20, %s6101_s26 }
 0xad0   : > { %2132 = vmatpush1.bf16.msra.mxu0 %v2074_v21 }
 0xad1   : > { %2133 = vmatprep.subr.bf16.mxu0 %v6090_v13 }
 0xad3   : > { %2066 = vrot.lane.b32.xlu0 %v2019_v20, %s6102_s14  ;;  %2060 = vrot.lane.b32.xlu1 %v2019_v20, %s6103_s19 }
 0xad7   : > { %2094 = vperm.xlu0 %5849, %v2084_v22   ;;  %2089 = vperm.xlu1 %5850, %v2083_v23  }
 0xadb   : > { %2104 = vperm.xlu0 %5849, %v2086_v24   ;;  %2099 = vperm.xlu1 %5850, %v2085_v25   ;;  %v5928_v25 = vld [vmem:[%s7466_s1 + $0x88] ss:$12 sps:$4 sm:$0xff]  }
 0xadc   : > { %2502 = vmatprep.mubr.bf16.mxu1 %v5928_v25  ;;  %v5938_v25 = vld [vmem:[%s7466_s1 + $0xd0] ss:$12 sps:$4 sm:$0xff]  }
 0xb39   : > { %v2031_v27 = vpop.permute.xlu0 %2030  ;;  %v2025_v28 = vpop.permute.xlu1 %2024 }
 0xb3a   : > { %2033 = vst.msk [vmem:[#allocation2 + $0x30] sm:$0xff] %vm2020_vm11, %v2031_v27  ;;  %2027 = vst.msk [vmem:[#allocation2 + $0x18] sm:$0xff] %vm2020_vm11, %v2025_v28  ;;  %v5929_v27 = vld [vmem:[%s7466_s1 + $0x8c] ss:$12 sps:$4 sm:$0xff]  }
 0xb3b   : > { %v2350_v28 = vld [vmem:[%s7467_s2 + $0x58] sm:$0xff] }
 0xb3d   : > { %v2043_v29 = vpop.permute.xlu0 %2042  ;;  %v2037_v31 = vpop.permute.xlu1 %2036 }
 0xb3e   : > { %2045 = vst.msk [vmem:[#allocation2 + $0x60] sm:$0xff] %vm2020_vm11, %v2043_v29  ;;  %2039 = vst.msk [vmem:[#allocation2 + $0x48] sm:$0xff] %vm2020_vm11, %v2037_v31  ;;  %v2354_v29 = vld [vmem:[%s7467_s2 + $0x78] sm:$0xff]  ;;  %v2353_v31 = vld [vmem:[%s7467_s2 + $0x70] sm:$0xff] }
 0xb41   : > { %v2055_v32 = vpop.permute.xlu0 %2054  ;;  %v2049_v33 = vpop.permute.xlu1 %2048  ;;  %v2075_v34 = vld [vmem:[#allocation2 + $0x18] sm:$0xff]  ;;  %v2076_v38 = vld [vmem:[#allocation2 + $0x30] sm:$0xff] }
 0xb42   : > { %2057 = vst.msk [vmem:[#allocation2 + $0x90] sm:$0xff] %vm2020_vm11, %v2055_v32  ;;  %2051 = vst.msk [vmem:[#allocation2 + $0x78] sm:$0xff] %vm2020_vm11, %v2049_v33  ;;  %2134 = vmatpush1.bf16.msra.mxu0 %v2075_v34  ;;  %v2356_v32 = vld [vmem:[%s7467_s2 + $0x88] sm:$0xff]  ;;  %v2351_v33 = vld [vmem:[%s7467_s2 + $0x60] sm:$0xff] }
 0xb43   : > { %2135 = vmatprep.subr.bf16.mxu0 %v6090_v13  ;;  %v2355_v34 = vld [vmem:[%s7467_s2 + $0x80] sm:$0xff] }
 0xb45   : > { %v2067_v35 = vpop.permute.xlu0 %2066  ;;  %v2061_v37 = vpop.permute.xlu1 %2060  ;;  %v2077_v39 = vld [vmem:[#allocation2 + $0x48] sm:$0xff]  ;;  %v2078_v40 = vld [vmem:[#allocation2 + $0x60] sm:$0xff] }
 0xb46   : > { %2069 = vst.msk [vmem:[#allocation2 + $0xc0] sm:$0xff] %vm2020_vm11, %v2067_v35  ;;  %2063 = vst.msk [vmem:[#allocation2 + $0xa8] sm:$0xff] %vm2020_vm11, %v2061_v37  ;;  %2136 = vmatpush1.bf16.msra.mxu0 %v2076_v38  ;;  %v2357_v35 = vld [vmem:[%s7467_s2 + $0x90] sm:$0xff] }
 0xb47   : > { %2137 = vmatprep.subr.bf16.mxu0 %v6090_v13 }
 0xb49   : > { %v2079_v42 = vld [vmem:[#allocation2 + $0x78] sm:$0xff]  ;;  %v2080_v43 = vld [vmem:[#allocation2 + $0x90] sm:$0xff] }
 0xb4a   : > { %2138 = vmatpush1.bf16.msra.mxu0 %v2077_v39 }
 0xb4b   : > { %2139 = vmatprep.subr.bf16.mxu0 %v6090_v13 }
 0xb4d   : > { %v2081_v44 = vld [vmem:[#allocation2 + $0xa8] sm:$0xff]  ;;  %v2082_v45 = vld [vmem:[#allocation2 + $0xc0] sm:$0xff] }
 0xb4e   : > { %2140 = vmatpush1.bf16.msra.mxu0 %v2078_v40 }
 0xb4f   : > { %2141 = vmatprep.subr.bf16.mxu0 %v6090_v13 }
 0xb52   : > { %2142 = vmatpush1.bf16.msra.mxu0 %v2079_v42 }
 0xb53   : > { %2143 = vmatprep.subr.bf16.mxu0 %v6090_v13 }
 0xb56   : > { %2144 = vmatpush1.bf16.msra.mxu0 %v2080_v43  ;;  %v2090_v58 = vpop.permute.xlu1 %2089  ;;  %v2095_v63 = vpop.permute.xlu0 %2094 }
 0xb57   : > { %2145 = vmatprep.subr.bf16.mxu0 %v6090_v13 }
 0xb5a   : > { %2146 = vmatpush1.bf16.msra.mxu0 %v2081_v44  ;;  %v2100_v7 = vpop.permute.xlu1 %2099  ;;  %v2105_v12 = vpop.permute.xlu0 %2104 }
 0xb5b   : > { %2147 = vmatprep.subr.bf16.mxu0 %v6090_v13 }
 0xb5e   : > { %2148 = vmatpush1.bf16.msra.mxu0 %v2082_v45 }
 0xb61   : > { %2164 = vmatmul.mubr.bf16.vlgmr.msra.gmra.mrb[20].mxu0 %v5922_v47 }
 0xb62   : > { %5124 = vmatprep.mubr.msk.bf16.mxu0 %vm1886_vm15, %v5923_v48 }
 0xb69   : > { %2172 = vmatmul.mubr.bf16.gmra.mrb[24].mxu0 %v5925_v49 }
 0xb6a   : > { %5652 = vmatprep.mubr.msk.bf16.mxu0 %vm1547_vm13, %v5929_v27 }
 0xc34   : > { %v2165_v59 = vpop.f32.mrb[20].mxu0 }
 0xc35   : > { %v2166_v61 = vadd.f32 %v2165_v59, %v2090_v58  ;;  %v2167_v62 = vpop.f32.mrb[21].mxu0 }
 0xc36   : > { %v2168_v2 = vpop.f32.mrb[22].mxu0 }
 0xc37   : > { %v2169_v3 = vadd.f32 %v2168_v2, %v2095_v63  ;;  %v2170_v4 = vpop.f32.mrb[23].mxu0  ;;  %v2199_v11 = vsel %vm6713_vm3, %v2166_v61, 0.0 }
 0xc39   : > { %v2200_v5 = vsel %vm6713_vm3, %v2169_v3, 0.0 }
 0xc3a   : > { %v2203_v6 = vpack.c.bf16 %v2200_v5, %v2199_v11 }
 0xc3c   : > { %v2173_v8 = vpop.f32.mrb[24].mxu0  ;;  %2207 = vrot.lane.b32.xlu1 %v2203_v6, %s6104_s28 }
 0xc3d   : > { %v2174_v9 = vadd.f32 %v2173_v8, %v2100_v7  ;;  %v2175_v10 = vpop.f32.mrb[25].mxu0  ;;  %v5926_v8 = vld [vmem:[%s7466_s1 + $0x84] ss:$12 sps:$4 sm:$0xff]  }
 0xc3e   : > { %v2176_v14 = vpop.f32.mrb[26].mxu0 }
 0xc3f   : > { %v2177_v15 = vadd.f32 %v2176_v14, %v2105_v12  ;;  %v2178_v16 = vpop.f32.mrb[27].mxu0  ;;  %v2201_v17 = vsel %vm6713_vm3, %v2174_v9, 0.0  ;;  %v5931_v9 = vld [vmem:[%s7466_s1 + $0xa0] ss:$12 sps:$4 sm:$0xff]   ;;  %v5930_v14 = vld [vmem:[%s7466_s1 + $0xa4] ss:$12 sps:$4 sm:$0xff]  }
 0xc41   : > { %v2202_v18 = vsel %vm6713_vm3, %v2177_v15, 0.0  ;;  %v5936_v15 = vld [vmem:[%s7466_s1 + $0xbc] ss:$12 sps:$4 sm:$0xff]   ;;  %vm7561_vm3 = vmmov %vm7558_vm2 }
 0xc42   : > { %v2204_v19 = vpack.c.bf16 %v2202_v18, %v2201_v17  ;;  %v5933_v17 = vld [vmem:[%s7466_s1 + $0x9c] ss:$12 sps:$4 sm:$0xff]   ;;  %v5934_v18 = vld [vmem:[%s7466_s1 + $0xb8] ss:$12 sps:$4 sm:$0xff]  }
 0xc44   : > { %2209 = vrot.lane.b32.xlu0 %v2204_v19, %s6104_s28  ;;  %s7562_s28 = smov 106  }
 0xcae   : > { %v2208_v20 = vpop.permute.xlu1 %2207 }
 0xcaf   : > { %2214 = vst.msk [vmem:[#allocation12] sm:$0xff] %vm2213_vm0, %v2208_v20  ;;  %v5937_v20 = vld [vmem:[%s7466_s1 + $0xd4] ss:$12 sps:$4 sm:$0xff]  }
 0xcb6   : > { %v2210_v21 = vpop.permute.xlu0 %2209  ;;  %v2256_v22 = vld [vmem:[#allocation12] sm:$0xff] }
 0xcb7   : > { %2215 = vst.msk [vmem:[#allocation12 + $0x8] sm:$0xff] %vm2213_vm0, %v2210_v21  ;;  %2260 = vrot.lane.b32.xlu1 %v2256_v22, %s6099_s16  ;;  %v2324_v21 = vld [vmem:[%s7466_s1 + $0xb4] sm:$0xff]  ;;  %vm2848_vm0 = vcmask 834560  }
 0xcb8   : > { %2218 = vst.msk [vmem:[#allocation2] sm:$0xff] %vm2020_vm11, %v2256_v22 }
 0xcbb   : > { %2272 = vrot.lane.b32.xlu1 %v2256_v22, %s6101_s26 }
 0xcbe   : > { %v2217_v23 = vld [vmem:[#allocation12 + $0x8] sm:$0xff] }
 0xcbf   : > { %v2332_v24 = vld [vmem:[#allocation2] sm:$0xff]  ;;  %2219 = vst.msk [vmem:[#allocation2 + $0x18] sm:$0xff] %vm2020_vm11, %v2217_v23  ;;  %2262 = vrot.lane.b32.xlu0 %v2217_v23, %s6099_s16  ;;  %2274 = vrot.lane.b32.xlu1 %v2217_v23, %s6101_s26  ;;  %s7563_s16 = smov 118  }
 0xcc0   : > { %2851 = vst.msk [vmem:[#allocation2] sm:$0xff] %vm1804_vm6, %v6582_v36 }
 0xcc3   : > { %2284 = vrot.lane.b32.xlu1 %v2256_v22, %s6095_s22  ;;  %2224 = vrot.lane.b32.xlu0 %v2256_v22, %s6082_s30 }
 0xcc6   : > { %v2333_v48 = vld [vmem:[#allocation2 + $0x18] sm:$0xff] }
 0xcc7   : > { %2286 = vrot.lane.b32.xlu1 %v2217_v23, %s6095_s22  ;;  %2226 = vrot.lane.b32.xlu0 %v2217_v23, %s6082_s30 }
 0xccb   : > { %2296 = vrot.lane.b32.xlu1 %v2256_v22, %s6103_s19  ;;  %2236 = vrot.lane.b32.xlu0 %v2256_v22, %s6083_s8 }
 0xccf   : > { %2298 = vrot.lane.b32.xlu1 %v2217_v23, %s6103_s19  ;;  %2238 = vrot.lane.b32.xlu0 %v2217_v23, %s6083_s8  ;;  %s7567_s19 = smov 92  }
 0xcd3   : > { %2308 = vrot.lane.b32.xlu1 %v2256_v22, %s6102_s14  ;;  %2248 = vrot.lane.b32.xlu0 %v2256_v22, %s6100_s17  ;;  %v2326_v22 = vld [vmem:[%s7466_s1 + $0xc0] sm:$0xff] }
 0xcd7   : > { %2370 = vperm.xlu1 %5850, %v2352_v26   ;;  %2250 = vrot.lane.b32.xlu0 %v2217_v23, %s6100_s17 }
 0xcdb   : > { %2360 = vperm.xlu1 %5850, %v2350_v28   ;;  %2310 = vrot.lane.b32.xlu0 %v2217_v23, %s6102_s14  ;;  %v5940_v28 = vld [vmem:[%s7466_s1 + $0xcc] ss:$12 sps:$4 sm:$0xff]  }
 0xcdf   : > { %2380 = vperm.xlu1 %5850, %v2354_v29   ;;  %2375 = vperm.xlu0 %5849, %v2353_v31   ;;  %v2954_v31 = vld [vmem:[#allocation2] sm:$0xff] }
 0xce3   : > { %2390 = vperm.xlu1 %5850, %v2356_v32   ;;  %2365 = vperm.xlu0 %5849, %v2351_v33   ;;  %v5941_v32 = vld [vmem:[%s7470_s5 + $0xc] sm:$0xff]   ;;  %v5942_v33 = vld [vmem:[%s7470_s5 + $0x14] ss:$0 sps:$4 sm:$0xff]  }
 0xce7   : > { %2892 = vrot.lane.b32.xlu1 %v6582_v36, %s6093_s20  ;;  %2385 = vperm.xlu0 %5849, %v2355_v34   ;;  %v2622_v34 = vsel %vm7558_vm2, %v5942_v33, 0 }
 0xceb   : > { %2904 = vrot.lane.b32.xlu1 %v6582_v36, %s6095_s22  ;;  %2395 = vperm.xlu0 %5849, %v2357_v35  }
 0xd29   : > { %v2261_v37 = vpop.permute.xlu1 %2260 }
 0xd2a   : > { %2266 = vst.msk [vmem:[#allocation2 + $0xc0] sm:$0xff] %vm2020_vm11, %v2261_v37 }
 0xd2d   : > { %v2273_v38 = vpop.permute.xlu1 %2272 }
 0xd2e   : > { %2278 = vst.msk [vmem:[#allocation2 + $0xf0] sm:$0xff] %vm2020_vm11, %v2273_v38 }
 0xd31   : > { %v2263_v39 = vpop.permute.xlu0 %2262  ;;  %v2275_v40 = vpop.permute.xlu1 %2274  ;;  %v2340_v42 = vld [vmem:[#allocation2 + $0xc0] sm:$0xff] }
 0xd32   : > { %2267 = vst.msk [vmem:[#allocation2 + $0xd8] sm:$0xff] %vm2020_vm11, %v2263_v39  ;;  %2279 = vst.msk [vmem:[#allocation2 + $0x108] sm:$0xff] %vm2020_vm11, %v2275_v40  ;;  %5457 = vmatprep.subr.bf16.mxu1 %v2340_v42 }
 0xd33   : > { %5458 = vmatpush3.bf16.msra.mxu1 %v2332_v24  ;;  %v5131_v24 = vcombine.low %v2324_v21, %v2326_v22 }
 0xd35   : > { %v2285_v43 = vpop.permute.xlu1 %2284  ;;  %v2225_v44 = vpop.permute.xlu0 %2224  ;;  %v2342_v49 = vld [vmem:[#allocation2 + $0xf0] sm:$0xff] }
 0xd36   : > { %2290 = vst.msk [vmem:[#allocation2 + $0x120] sm:$0xff] %vm2020_vm11, %v2285_v43  ;;  %2230 = vst.msk [vmem:[#allocation2 + $0x30] sm:$0xff] %vm2020_vm11, %v2225_v44 }
 0xd39   : > { %v2287_v36 = vpop.permute.xlu1 %2286  ;;  %v2227_v45 = vpop.permute.xlu0 %2226  ;;  %v2341_v47 = vld [vmem:[#allocation2 + $0xd8] sm:$0xff]  ;;  %v2343_v54 = vld [vmem:[#allocation2 + $0x108] sm:$0xff] }
 0xd3a   : > { %2291 = vst.msk [vmem:[#allocation2 + $0x138] sm:$0xff] %vm2020_vm11, %v2287_v36  ;;  %2231 = vst.msk [vmem:[#allocation2 + $0x48] sm:$0xff] %vm2020_vm11, %v2227_v45  ;;  %5459 = vmatprep.subr.bf16.mxu1 %v2341_v47 }
 0xd3b   : > { %5460 = vmatpush3.bf16.msra.mxu1 %v2333_v48 }
 0xd3c   : > { %5461 = vmatprep.subr.bf16.mxu1 %v2342_v49 }
 0xd3d   : > { %v2297_v50 = vpop.permute.xlu1 %2296  ;;  %v2237_v51 = vpop.permute.xlu0 %2236  ;;  %v2334_v52 = vld [vmem:[#allocation2 + $0x30] sm:$0xff]  ;;  %v2344_v58 = vld [vmem:[#allocation2 + $0x120] sm:$0xff] }
 0xd3e   : > { %2302 = vst.msk [vmem:[#allocation2 + $0x150] sm:$0xff] %vm2020_vm11, %v2297_v50  ;;  %2242 = vst.msk [vmem:[#allocation2 + $0x60] sm:$0xff] %vm2020_vm11, %v2237_v51 }
 0xd3f   : > { %5462 = vmatpush3.bf16.msra.mxu1 %v2334_v52 }
 0xd40   : > { %5463 = vmatprep.subr.bf16.mxu1 %v2343_v54 }
 0xd41   : > { %v2299_v55 = vpop.permute.xlu1 %2298  ;;  %v2239_v56 = vpop.permute.xlu0 %2238  ;;  %v2335_v57 = vld [vmem:[#allocation2 + $0x48] sm:$0xff]  ;;  %v2345_v63 = vld [vmem:[#allocation2 + $0x138] sm:$0xff] }
 0xd42   : > { %2303 = vst.msk [vmem:[#allocation2 + $0x168] sm:$0xff] %vm2020_vm11, %v2299_v55  ;;  %2243 = vst.msk [vmem:[#allocation2 + $0x78] sm:$0xff] %vm2020_vm11, %v2239_v56 }
 0xd43   : > { %5464 = vmatpush3.bf16.msra.mxu1 %v2335_v57 }
 0xd44   : > { %5465 = vmatprep.subr.bf16.mxu1 %v2344_v58 }
 0xd45   : > { %v2309_v59 = vpop.permute.xlu1 %2308  ;;  %v2249_v61 = vpop.permute.xlu0 %2248  ;;  %v2336_v62 = vld [vmem:[#allocation2 + $0x60] sm:$0xff]  ;;  %v2346_v3 = vld [vmem:[#allocation2 + $0x150] sm:$0xff] }
 0xd46   : > { %2314 = vst.msk [vmem:[#allocation2 + $0x180] sm:$0xff] %vm2020_vm11, %v2309_v59  ;;  %2254 = vst.msk [vmem:[#allocation2 + $0x90] sm:$0xff] %vm2020_vm11, %v2249_v61 }
 0xd47   : > { %5466 = vmatpush3.bf16.msra.mxu1 %v2336_v62 }
 0xd48   : > { %5467 = vmatprep.subr.bf16.mxu1 %v2345_v63 }
 0xd49   : > { %v2251_v0 = vpop.permute.xlu0 %2250  ;;  %v2337_v2 = vld [vmem:[#allocation2 + $0x78] sm:$0xff]  ;;  %v2347_v6 = vld [vmem:[#allocation2 + $0x168] sm:$0xff] }
 0xd4a   : > { %2255 = vst.msk [vmem:[#allocation2 + $0xa8] sm:$0xff] %vm2020_vm11, %v2251_v0 }
 0xd4b   : > { %5468 = vmatpush3.bf16.msra.mxu1 %v2337_v2 }
 0xd4c   : > { %5469 = vmatprep.subr.bf16.mxu1 %v2346_v3 }
 0xd4d   : > { %v2311_v4 = vpop.permute.xlu0 %2310  ;;  %v2348_v11 = vld [vmem:[#allocation2 + $0x180] sm:$0xff]  ;;  %v2338_v5 = vld [vmem:[#allocation2 + $0x90] sm:$0xff] }
 0xd4e   : > { %2315 = vst.msk [vmem:[#allocation2 + $0x198] sm:$0xff] %vm2020_vm11, %v2311_v4  ;;  %5648 = vmatprep.subr.bf16.mxu0 %v2348_v11 }
 0xd4f   : > { %5470 = vmatpush3.bf16.msra.mxu1 %v2338_v5  ;;  %5649 = vmatpush3.bf16.msra.mxu0 %v2348_v11 }
 0xd50   : > { %5471 = vmatprep.subr.bf16.mxu1 %v2347_v6 }
 0xd51   : > { %v2339_v7 = vld [vmem:[#allocation2 + $0xa8] sm:$0xff] }
 0xd53   : > { %5472 = vmatpush3.bf16.msra.mxu1 %v2339_v7 }
 0xd55   : > { %v2349_v10 = vld [vmem:[#allocation2 + $0x198] sm:$0xff] }
 0xd56   : > { %v6802_v12 = vpop.permute.xlu1 %2370  ;;  %2503 = vmatmul.mubr.bf16.vlgmr.msra.gmra.mrb[24].mxu1 %v5926_v8  ;;  %5650 = vmatprep.subr.bf16.mxu0 %v2349_v10  ;;  %v5943_v8 = vld [vmem:[%s7470_s5] sm:$0xff]  }
 0xd57   : > { %5651 = vmatpush3.bf16.msra.mxu0 %v2349_v10  ;;  %2510 = vmatprep.mubr.bf16.mxu1 %v5931_v9 }
 0xd58   : > { %5660 = vmatprep.subr.bf16.mxu0 %v6081_v1 }
 0xd5a   : > { %v2361_v16 = vpop.permute.xlu1 %2360  ;;  %5653 = vmatmul.mubr.msk.bf16.vlgmr.msra.gmra.mrb[28].mxu0 %vm1547_vm13, %v5930_v14 }
 0xd5b   : > { %5656 = vmatprep.mubr.msk.bf16.mxu0 %vm1547_vm13, %v5936_v15  ;;  %5661 = vmatpush3.bf16.msra.mxu0 %v5941_v32 }
 0xd5c   : > { %5662 = vmatprep.subr.bf16.mxu0 %v6081_v1 }
 0xd5e   : > { %v6819_v19 = vpop.permute.xlu1 %2380  ;;  %2511 = vmatmul.mubr.bf16.gmra.mrb[28].mxu1 %v5933_v17  ;;  %v2376_v35 = vpop.permute.xlu0 %2375 }
 0xd5f   : > { %2518 = vmatprep.mubr.bf16.mxu1 %v5934_v18  ;;  %5663 = vmatpush3.bf16.msra.mxu0 %v2622_v34  ;;  %v5945_v34 = vld [vmem:[%s7470_s5 + $0x18] sm:$0xff]  }
 0xd60   : > { %5668 = vmatprep.subr.bf16.mxu0 %v6081_v1 }
 0xd62   : > { %v6830_v23 = vpop.permute.xlu1 %2390  ;;  %5657 = vmatmul.mubr.msk.bf16.gmra.mrb[32].mxu0 %vm1547_vm13, %v5937_v20  ;;  %v2366_v45 = vpop.permute.xlu0 %2365 }
 0xd63   : > { %5664 = vmatprep.mubr.msk.bf16.mxu0 %vm7534_vm5, %v6081_v1 }
 0xd66   : > { %v2893_v26 = vpop.permute.xlu1 %2892  ;;  %2519 = vmatmul.mubr.bf16.gmra.mrb[32].mxu1 %v5131_v24  ;;  %v2386_v18 = vpop.permute.xlu0 %2385 }
 0xd67   : > { %2895 = vst.msk [vmem:[#allocation2 + $0xc0] sm:$0xff] %vm1804_vm6, %v2893_v26  ;;  %2526 = vmatprep.mubr.bf16.mxu1 %v5938_v25 }
 0xd6a   : > { %v2905_v27 = vpop.permute.xlu1 %2904  ;;  %v2396_v33 = vpop.permute.xlu0 %2395 }
 0xd6b   : > { %2907 = vst.msk [vmem:[#allocation2 + $0xf0] sm:$0xff] %vm1804_vm6, %v2905_v27 }
 0xd6e   : > { %2527 = vmatmul.mubr.bf16.gmra.mrb[36].mxu1 %v5940_v28  ;;  %v2962_v29 = vld [vmem:[#allocation2 + $0xc0] sm:$0xff] }
 0xd6f   : > { %5515 = vmatprep.subr.bf16.mxu1 %v2962_v29 }
 0xd70   : > { %5516 = vmatpush3.bf16.msra.mxu1 %v2954_v31 }
 0xe29   : > { %v5473_v37 = vpop.f32.mrb[24].mxu1 }
 0xe2a   : > { %v5474_v38 = vpop.f32.mrb[25].mxu1 }
 0xe2b   : > { %v5475_v39 = vadd.f32 %v5474_v38, %v5473_v37  ;;  %v5476_v40 = vpop.f32.mrb[26].mxu1  ;;  %v5946_v38 = vld [vmem:[%s7470_s5 + $0x20] ss:$0 sps:$4 sm:$0xff]  }
 0xe2c   : > { %v5477_v42 = vpop.f32.mrb[27].mxu1 }
 0xe2d   : > { %v5478_v43 = vadd.f32 %v5477_v42, %v5476_v40  ;;  %v5654_v44 = vpop.f32.mrb[28].mxu0  ;;  %v2505_v36 = vadd.f32 %v5475_v39, %v2361_v16  ;;  %v2739_v40 = vsel %vm7560_vm8, %v5946_v38, 0  ;;  %v5947_v42 = vld [vmem:[%s7470_s5 + $0x24] sm:$0xff]  }
 0xe2e   : > { %v2569_v47 = vpop.f32.mrb[29].mxu0 }
 0xe2f   : > { %v2570_v48 = vadd.f32 %v2569_v47, %v2505_v36  ;;  %v5655_v49 = vpop.f32.mrb[30].mxu0  ;;  %v2508_v50 = vadd.f32 %v5478_v43, %v2366_v45  ;;  %v5948_v43 = vld [vmem:[%s7470_s5 + $0x2c] ss:$0 sps:$4 sm:$0xff]  }
 0xe30   : > { %v2572_v51 = vpop.f32.mrb[31].mxu0 }
 0xe31   : > { %v2573_v52 = vadd.f32 %v2572_v51, %v2508_v50  ;;  %v5479_v54 = vpop.f32.mrb[28].mxu1  ;;  %v2914_v51 = vld [vmem:[#allocation8] sm:$0xff] }
 0xe32   : > { %v5480_v55 = vpop.f32.mrb[29].mxu1 }
 0xe33   : > { %v2600_v56 = vpack.c.bf16 %v2573_v52, %v2570_v48  ;;  %v5481_v57 = vadd.f32 %v5480_v55, %v5479_v54  ;;  %v5482_v58 = vpop.f32.mrb[30].mxu1  ;;  %v5951_v52 = vld [vmem:[%s7466_s1 + $0xe8] ss:$12 sps:$4 sm:$0xff]   ;;  %v2972_v54 = vld [vmem:[%s7467_s2 + $0x98] sm:$0xff]  ;;  %v2973_v55 = vld [vmem:[%s7467_s2 + $0xa0] sm:$0xff] }
 0xe34   : > { %v5483_v59 = vpop.f32.mrb[31].mxu1  ;;  %3034 = vmatprep.mubr.bf16.mxu1 %v5951_v52 }
 0xe35   : > { %v2513_v61 = vadd.f32 %v5481_v57, %v6802_v12  ;;  %v5484_v62 = vadd.f32 %v5483_v59, %v5482_v58  ;;  %v5658_v63 = vpop.f32.mrb[32].mxu0  ;;  %v5944_v12 = vld [vmem:[%s7470_s5 + $0x8] ss:$0 sps:$4 sm:$0xff]  }
 0xe36   : > { %v2585_v0 = vpop.f32.mrb[33].mxu0  ;;  %v2678_v22 = vsel %vm7559_vm4, %v5944_v12, 0  ;;  %vm7575_vm4 = vcmask 1031168  }
 0xe37   : > { %v2578_v2 = vadd.f32 %v5654_v44, %v2513_v61  ;;  %v2516_v3 = vadd.f32 %v5484_v62, %v2376_v35  ;;  %v5659_v4 = vpop.f32.mrb[34].mxu0  ;;  %v2802_v44 = vsel %vm7561_vm3, %v5948_v43, 0  ;;  %vm7577_vm3 = vmmov %vm7575_vm4 }
 0xe38   : > { %v2588_v11 = vpop.f32.mrb[35].mxu0 }
 0xe39   : > { %v2581_v5 = vadd.f32 %v5655_v49, %v2516_v3  ;;  %v5485_v6 = vpop.f32.mrb[32].mxu1 }
 0xe3a   : > { %v5486_v7 = vpop.f32.mrb[33].mxu1 }
 0xe3b   : > { %v2604_v9 = vpack.c.bf16 %v2581_v5, %v2578_v2  ;;  %v5487_v10 = vadd.f32 %v5486_v7, %v5485_v6  ;;  %v5488_v14 = vpop.f32.mrb[34].mxu1  ;;  %v2964_v2 = vld [vmem:[#allocation2 + $0xf0] sm:$0xff] }
 0xe3c   : > { %v5489_v15 = vpop.f32.mrb[35].mxu1 }
 0xe3d   : > { %v5490_v16 = vadd.f32 %v5489_v15, %v5488_v14  ;;  %5665 = vmatmul.mubr.msk.bf16.vlgmr.msra.gmra.mrb[36].mxu0 %vm2020_vm11, %v2604_v9  ;;  %v2521_v17 = vadd.f32 %v5487_v10, %v6819_v19 }
 0xe3e   : > { %5669 = vmatpush3.bf16.msra.mxu0 %v5943_v8  ;;  %5672 = vmatprep.mubr.msk.bf16.mxu0 %vm7534_vm5, %v6081_v1 }
 0xe3f   : > { %v2586_v20 = vadd.f32 %v2585_v0, %v2521_v17  ;;  %v2524_v21 = vadd.f32 %v5490_v16, %v2386_v18  ;;  %5670 = vmatprep.subr.bf16.mxu0 %v6081_v1 }
 0xe41   : > { %v2589_v24 = vadd.f32 %v2588_v11, %v2524_v21  ;;  %v5491_v25 = vpop.f32.mrb[36].mxu1 }
 0xe42   : > { %v5492_v26 = vpop.f32.mrb[37].mxu1  ;;  %5671 = vmatpush3.bf16.msra.mxu0 %v2678_v22 }
 0xe43   : > { %v2721_v27 = vpack.c.bf16 %v2589_v24, %v2586_v20  ;;  %v5493_v28 = vadd.f32 %v5492_v26, %v5491_v25  ;;  %v5494_v29 = vpop.f32.mrb[38].mxu1  ;;  %5676 = vmatprep.subr.bf16.mxu0 %v6081_v1  ;;  %v5949_v25 = vld [vmem:[%s7466_s1 + $0xe4] ss:$12 sps:$4 sm:$0xff]  }
 0xe44   : > { %v5495_v19 = vpop.f32.mrb[39].mxu1 }
 0xe45   : > { %v2529_v31 = vadd.f32 %v5493_v28, %v6830_v23  ;;  %v5496_v32 = vadd.f32 %v5495_v19, %v5494_v29  ;;  %v5952_v28 = vld [vmem:[%s7466_s1 + $0xec] ss:$12 sps:$4 sm:$0xff]  }
 0xe47   : > { %v2594_v35 = vadd.f32 %v5658_v63, %v2529_v31  ;;  %v2532_v37 = vadd.f32 %v5496_v32, %v2396_v33 }
 0xe49   : > { %v2597_v39 = vadd.f32 %v5659_v4, %v2532_v37  ;;  %5673 = vmatmul.mubr.msk.bf16.vlgmr.msra.gmra.mrb[36].mxu0 %vm2020_vm11, %v2600_v56 }
 0xe4a   : > { %5677 = vmatpush3.bf16.msra.mxu0 %v5945_v34  ;;  %5680 = vmatprep.mubr.msk.bf16.mxu0 %vm7534_vm5, %v6081_v1 }
 0xe4b   : > { %v2784_v23 = vpack.c.bf16 %v2597_v39, %v2594_v35  ;;  %5678 = vmatprep.subr.bf16.mxu0 %v6081_v1 }
 0xe4e   : > { %5679 = vmatpush3.bf16.msra.mxu0 %v2739_v40 }
 0xe4f   : > { %5684 = vmatprep.subr.bf16.mxu0 %v6081_v1 }
 0xe55   : > { %5681 = vmatmul.mubr.msk.bf16.vlgmr.msra.gmra.mrb[36].mxu0 %vm2020_vm11, %v2721_v27 }
 0xe56   : > { %5685 = vmatpush3.bf16.msra.mxu0 %v5947_v42  ;;  %5688 = vmatprep.mubr.msk.bf16.mxu0 %vm7534_vm5, %v6081_v1 }
 0xe57   : > { %5686 = vmatprep.subr.bf16.mxu0 %v6081_v1 }
 0xe5a   : > { %5687 = vmatpush3.bf16.msra.mxu0 %v2802_v44 }
 0xe61   : > { %5689 = vmatmul.mubr.msk.bf16.vlgmr.msra.gmra.mrb[36].mxu0 %vm2020_vm11, %v2784_v23  ;;  %vm7570_vm11 = vcmask 257024  }
 0xe62   : > { %3412 = vmatprep.mubr.bf16.mxu0 %v6090_v13 }
 0xf34   : > { %v2838_v36 = vpop.f32.mrb[36].mxu0 }
 0xf35   : > { %v5690_v45 = vpop.f32.mrb[37].mxu0 }
 0xf36   : > { %v2841_v47 = vpop.f32.mrb[38].mxu0 }
 0xf37   : > { %v2847_v48 = vpack.c.bf16 %v2841_v47, %v2838_v36  ;;  %v5691_v49 = vpop.f32.mrb[39].mxu0 }
 0xf39   : > { %2849 = vst.msk [vmem:[#allocation9] sm:$0xff] %vm2848_vm0, %v2847_v48 }
 0xf40   : > { %v2852_v50 = vld [vmem:[#allocation9] sm:$0xff] }
 0xf41   : > { %2853 = vst.msk [vmem:[#allocation2 + $0x18] sm:$0xff] %vm1804_vm6, %v2852_v50  ;;  %2910 = vrot.lane.b32.xlu1 %v2852_v50, %s6095_s22  ;;  %2898 = vrot.lane.b32.xlu0 %v2852_v50, %s6093_s20 }
 0xf45   : > { %2916 = vrot.lane.b32.xlu1 %v2914_v51, %s6086_s11  ;;  %2856 = vrot.lane.b32.xlu0 %v2914_v51, %s6082_s30 }
 0xf48   : > { %v2955_v0 = vld [vmem:[#allocation2 + $0x18] sm:$0xff] }
 0xf49   : > { %2922 = vrot.lane.b32.xlu1 %v2852_v50, %s6086_s11  ;;  %2862 = vrot.lane.b32.xlu0 %v2852_v50, %s6082_s30 }
 0xf4d   : > { %2928 = vrot.lane.b32.xlu1 %v2914_v51, %s6097_s27  ;;  %2868 = vrot.lane.b32.xlu0 %v2914_v51, %s6083_s8 }
 0xf51   : > { %2934 = vrot.lane.b32.xlu1 %v2852_v50, %s6097_s27  ;;  %2874 = vrot.lane.b32.xlu0 %v2852_v50, %s6083_s8 }
 0xf55   : > { %2940 = vrot.lane.b32.xlu1 %v2914_v51, %s7562_s28  ;;  %2880 = vrot.lane.b32.xlu0 %v2914_v51, %s7563_s16 }
 0xf59   : > { %2976 = vperm.xlu1 %5850, %v2972_v54   ;;  %2886 = vrot.lane.b32.xlu0 %v2852_v50, %s7563_s16  ;;  %v6069_v54 = vld [vmem:[#allocation4] sm:$0xff] }
 0xf5a   : > { %v5302_v30 = vcombine.low %v6069_v54, %v6069_v54 }
 0xf5d   : > { %2946 = vrot.lane.b32.xlu0 %v2852_v50, %s7562_s28 }
 0xf61   : > { %2981 = vperm.xlu0 %5849, %v2973_v55  }
 0xfb3   : > { %v2911_v56 = vpop.permute.xlu1 %2910  ;;  %v2899_v57 = vpop.permute.xlu0 %2898 }
 0xfb4   : > { %2913 = vst.msk [vmem:[#allocation2 + $0x108] sm:$0xff] %vm1804_vm6, %v2911_v56  ;;  %2901 = vst.msk [vmem:[#allocation2 + $0xd8] sm:$0xff] %vm1804_vm6, %v2899_v57  ;;  %v3157_v56 = vld [vmem:[%s7467_s2 + $0xa8] sm:$0xff]  ;;  %v3158_v57 = vld [vmem:[%s7467_s2 + $0xb0] sm:$0xff] }
 0xfb7   : > { %v2917_v58 = vpop.permute.xlu1 %2916  ;;  %v2857_v59 = vpop.permute.xlu0 %2856 }
 0xfb8   : > { %2919 = vst.msk [vmem:[#allocation2 + $0x120] sm:$0xff] %vm1804_vm6, %v2917_v58  ;;  %2859 = vst.msk [vmem:[#allocation2 + $0x30] sm:$0xff] %vm1804_vm6, %v2857_v59  ;;  %v3160_v58 = vld [vmem:[%s7467_s2 + $0xc0] sm:$0xff]  ;;  %v3159_v59 = vld [vmem:[%s7467_s2 + $0xb8] sm:$0xff] }
 0xfbb   : > { %v2923_v61 = vpop.permute.xlu1 %2922  ;;  %v2863_v62 = vpop.permute.xlu0 %2862  ;;  %v2963_v63 = vld [vmem:[#allocation2 + $0xd8] sm:$0xff]  ;;  %v2965_v5 = vld [vmem:[#allocation2 + $0x108] sm:$0xff] }
 0xfbc   : > { %2925 = vst.msk [vmem:[#allocation2 + $0x138] sm:$0xff] %vm1804_vm6, %v2923_v61  ;;  %2865 = vst.msk [vmem:[#allocation2 + $0x48] sm:$0xff] %vm1804_vm6, %v2863_v62  ;;  %5517 = vmatprep.subr.bf16.mxu1 %v2963_v63  ;;  %v4051_v61 = vld [vmem:[#allocation4] sm:$0xff]  ;;  %v5953_v62 = vld [vmem:[#allocation4 + $0x8] ss:$0 sps:$4 sm:$0xff]  }
 0xfbd   : > { %5518 = vmatpush3.bf16.msra.mxu1 %v2955_v0  ;;  %v5309_v63 = vcombine.high %v4051_v61, %v4051_v61  ;;  %v5963_v0 = vld [vmem:[%s7466_s1 + $0x100] ss:$12 sps:$4 sm:$0xff]  }
 0xfbe   : > { %5519 = vmatprep.subr.bf16.mxu1 %v2964_v2  ;;  %v5955_v2 = vld [vmem:[#allocation4 + $0x8] ss:$0 sps:$4 sm:$0xff]  }
 0xfbf   : > { %v2929_v3 = vpop.permute.xlu1 %2928  ;;  %v2869_v4 = vpop.permute.xlu0 %2868  ;;  %v2956_v11 = vld [vmem:[#allocation2 + $0x30] sm:$0xff]  ;;  %v2966_v9 = vld [vmem:[#allocation2 + $0x120] sm:$0xff] }
 0xfc0   : > { %2931 = vst.msk [vmem:[#allocation2 + $0x150] sm:$0xff] %vm1804_vm6, %v2929_v3  ;;  %2871 = vst.msk [vmem:[#allocation2 + $0x60] sm:$0xff] %vm1804_vm6, %v2869_v4  ;;  %v6975_v3 = vcombine.low %v4051_v61, %v4051_v61  ;;  %v5957_v4 = vld [vmem:[#allocation4 + $0x8] ss:$0 sps:$4 sm:$0xff]  }
 0xfc1   : > { %5520 = vmatpush3.bf16.msra.mxu1 %v2956_v11  ;;  %v5958_v11 = vld [vmem:[#allocation4 + $0x8] ss:$0 sps:$4 sm:$0xff]  }
 0xfc2   : > { %5521 = vmatprep.subr.bf16.mxu1 %v2965_v5  ;;  %v5959_v5 = vld [vmem:[#allocation4 + $0x8] ss:$0 sps:$4 sm:$0xff]  }
 0xfc3   : > { %v2935_v6 = vpop.permute.xlu1 %2934  ;;  %v2875_v7 = vpop.permute.xlu0 %2874  ;;  %v2957_v8 = vld [vmem:[#allocation2 + $0x48] sm:$0xff]  ;;  %v2967_v15 = vld [vmem:[#allocation2 + $0x138] sm:$0xff] }
 0xfc4   : > { %2937 = vst.msk [vmem:[#allocation2 + $0x168] sm:$0xff] %vm1804_vm6, %v2935_v6  ;;  %2877 = vst.msk [vmem:[#allocation2 + $0x78] sm:$0xff] %vm1804_vm6, %v2875_v7  ;;  %v5960_v6 = vld [vmem:[#allocation4 + $0x8] ss:$0 sps:$4 sm:$0xff]  }
 0xfc5   : > { %5522 = vmatpush3.bf16.msra.mxu1 %v2957_v8  ;;  %v5961_v7 = vld [vmem:[#allocation4 + $0x8] ss:$0 sps:$4 sm:$0xff]  }
 0xfc6   : > { %5523 = vmatprep.subr.bf16.mxu1 %v2966_v9  ;;  %v5962_v8 = vld [vmem:[#allocation4 + $0x8] ss:$0 sps:$4 sm:$0xff]  }
 0xfc7   : > { %v2941_v10 = vpop.permute.xlu1 %2940  ;;  %v2881_v14 = vpop.permute.xlu0 %2880  ;;  %v2958_v12 = vld [vmem:[#allocation2 + $0x60] sm:$0xff]  ;;  %v2968_v18 = vld [vmem:[#allocation2 + $0x150] sm:$0xff] }
 0xfc8   : > { %2943 = vst.msk [vmem:[#allocation2 + $0x180] sm:$0xff] %vm1804_vm6, %v2941_v10  ;;  %2883 = vst.msk [vmem:[#allocation2 + $0x90] sm:$0xff] %vm1804_vm6, %v2881_v14  ;;  %v5969_v9 = vld [vmem:[%s7471_s6 + $0x78] ss:$12 sps:$4 sm:$0xff]   ;;  %v5971_v10 = vld [vmem:[%s7471_s6 + $0x7c] ss:$12 sps:$4 sm:$0xff]  }
 0xfc9   : > { %5524 = vmatpush3.bf16.msra.mxu1 %v2958_v12  ;;  %v5974_v14 = vld [vmem:[%s7471_s6 + $0x94] ss:$12 sps:$4 sm:$0xff]   ;;  %3380 = vmatprep.subr.bf16.mxu0 %v5971_v10  ;;  %v5972_v12 = vld [vmem:[%s7471_s6 + $0x90] ss:$12 sps:$4 sm:$0xff]  }
 0xfca   : > { %5525 = vmatprep.subr.bf16.mxu1 %v2967_v15  ;;  %3381 = vmatpush1.bf16.msra.mxu0 %v5969_v9  ;;  %v5977_v15 = vld [vmem:[%s7471_s6 + $0xac] ss:$12 sps:$4 sm:$0xff]  }
 0xfcb   : > { %v2887_v16 = vpop.permute.xlu0 %2886  ;;  %v2959_v17 = vld [vmem:[#allocation2 + $0x78] sm:$0xff]  ;;  %v2969_v22 = vld [vmem:[#allocation2 + $0x168] sm:$0xff]  ;;  %3382 = vmatprep.subr.bf16.mxu0 %v5974_v14 }
 0xfcc   : > { %2889 = vst.msk [vmem:[#allocation2 + $0xa8] sm:$0xff] %vm1804_vm6, %v2887_v16  ;;  %v5975_v16 = vld [vmem:[%s7471_s6 + $0xa8] ss:$12 sps:$4 sm:$0xff]  }
 0xfcd   : > { %5526 = vmatpush3.bf16.msra.mxu1 %v2959_v17  ;;  %v5980_v17 = vld [vmem:[%s7471_s6 + $0xc4] ss:$12 sps:$4 sm:$0xff]  }
 0xfce   : > { %5527 = vmatprep.subr.bf16.mxu1 %v2968_v18  ;;  %3383 = vmatpush1.bf16.msra.mxu0 %v5972_v12  ;;  %v5978_v18 = vld [vmem:[%s7471_s6 + $0xc0] ss:$12 sps:$4 sm:$0xff]  }
 0xfcf   : > { %v2947_v20 = vpop.permute.xlu0 %2946  ;;  %v2960_v21 = vld [vmem:[#allocation2 + $0x90] sm:$0xff]  ;;  %v2970_v26 = vld [vmem:[#allocation2 + $0x180] sm:$0xff]  ;;  %3384 = vmatprep.subr.bf16.mxu0 %v5977_v15 }
 0xfd0   : > { %2949 = vst.msk [vmem:[#allocation2 + $0x198] sm:$0xff] %vm1804_vm6, %v2947_v20 }
 0xfd1   : > { %5528 = vmatpush3.bf16.msra.mxu1 %v2960_v21 }
 0xfd2   : > { %5529 = vmatprep.subr.bf16.mxu1 %v2969_v22  ;;  %3385 = vmatpush1.bf16.msra.mxu0 %v5975_v16 }
 0xfd3   : > { %v2961_v24 = vld [vmem:[#allocation2 + $0xa8] sm:$0xff]  ;;  %3386 = vmatprep.subr.bf16.mxu0 %v5980_v17 }
 0xfd5   : > { %5530 = vmatpush3.bf16.msra.mxu1 %v2961_v24 }
 0xfd6   : > { %5692 = vmatprep.subr.bf16.mxu1 %v6081_v1  ;;  %3387 = vmatpush1.bf16.msra.mxu0 %v5978_v18 }
 0xfd7   : > { %v2971_v27 = vld [vmem:[#allocation2 + $0x198] sm:$0xff] }
 0xfd8   : > { %3035 = vmatmul.mubr.bf16.vlgmr.msra.gmra.mrb[40].mxu1 %v5949_v25  ;;  %v2977_v35 = vpop.permute.xlu1 %2976 }
 0xfd9   : > { %5693 = vmatpush3.bf16.msra.mxu1 %v2970_v26  ;;  %5696 = vmatprep.mubr.msk.bf16.mxu1 %vm7534_vm5, %v6081_v1 }
 0xfda   : > { %5694 = vmatprep.subr.bf16.mxu1 %v6081_v1 }
 0xfdd   : > { %5695 = vmatpush3.bf16.msra.mxu1 %v2971_v27 }
 0xfde   : > { %3205 = vmatprep.subr.bf16.mxu1 %v6090_v13 }
 0xfe0   : > { %5697 = vmatmul.mubr.msk.bf16.vlgmr.msra.gmra.mrb[44].mxu1 %vm1547_vm13, %v5952_v28  ;;  %v2982_v38 = vpop.permute.xlu0 %2981  ;;  %vm7571_vm13 = vcmask 1039360  }
 0xfe1   : > { %5170 = vmatprep.mubr.msk.bf16.mxu1 %vm1886_vm15, %v5963_v0 }
0x10ab   : > { %v5531_v29 = vpop.f32.mrb[40].mxu1 }
0x10ac   : > { %v5532_v19 = vpop.f32.mrb[41].mxu1 }
0x10ad   : > { %v5533_v31 = vadd.f32 %v5532_v19, %v5531_v29  ;;  %v5534_v32 = vpop.f32.mrb[42].mxu1 }
0x10ae   : > { %v5535_v33 = vpop.f32.mrb[43].mxu1 }
0x10af   : > { %v5536_v34 = vadd.f32 %v5535_v33, %v5534_v32  ;;  %v3037_v37 = vadd.f32 %v5533_v31, %v2977_v35 }
0x10b1   : > { %v3040_v42 = vadd.f32 %v5536_v34, %v2982_v38 }
0x10b3   : > { %v3077_v39 = vpop.f32.mrb[44].mxu1 }
0x10b4   : > { %v3078_v23 = vadd.f32 %v3077_v39, %v3037_v37  ;;  %v5698_v40 = vpop.f32.mrb[45].mxu1 }
0x10b5   : > { %v3080_v43 = vpop.f32.mrb[46].mxu1 }
0x10b6   : > { %v3084_v44 = vmax.f32 %v3078_v23, 0.0  ;;  %v3081_v36 = vadd.f32 %v3080_v43, %v3040_v42  ;;  %v5699_v45 = vpop.f32.mrb[47].mxu1  ;;  %v5965_v42 = vld [vmem:[%s7466_s1 + $0xfc] ss:$12 sps:$4 sm:$0xff]  }
0x10b8   : > { %v3085_v47 = vmax.f32 %v3081_v36, 0.0  ;;  %v3086_v48 = vsel %vm6572_vm9, %v3084_v44, 0.0  ;;  %v5966_v36 = vld [vmem:[%s7466_s1 + $0x118] ss:$12 sps:$4 sm:$0xff]  }
0x10ba   : > { %v3087_v49 = vsel %vm6572_vm9, %v3085_v47, 0.0  ;;  %vm7572_vm9 = vmmov %vm7570_vm11 }
0x10bb   : > { %v3088_v50 = vpack.c.bf16 %v3087_v49, %v3086_v48  ;;  %vm7574_vm2 = vmmov %vm7572_vm9 }
0x10bc   : > { %vm7576_vm8 = vmmov %vm7574_vm2 }
0x10bd   : > { %3090 = vrot.lane.b32.xlu1 %v3088_v50, %s7564_s21  ;;  %v5968_v50 = vld [vmem:[%s7466_s1 + $0x114] ss:$12 sps:$4 sm:$0xff]   ;;  %vm7578_vm0 = vmmov %vm7574_vm2 }
0x112f   : > { %v3091_v51 = vpop.permute.xlu1 %3090 }
0x1130   : > { %3093 = vst.msk [vmem:[#allocation10] sm:$0xff] %vm1801_vm14, %v3091_v51  ;;  %vm7573_vm14 = vmmov %vm7571_vm13 }
0x1137   : > { %v3102_v52 = vld [vmem:[#allocation10] sm:$0xff] }
0x1138   : > { %3104 = vrot.lane.b32.xlu1 %v3102_v52, %s6083_s8  ;;  %3098 = vrot.lane.b32.xlu0 %v3102_v52, %s6082_s30  ;;  %3095 = vst.msk [vmem:[#allocation2] sm:$0xff] %vm1804_vm6, %v3102_v52 }
0x113c   : > { %3116 = vrot.lane.b32.xlu1 %v3102_v52, %s6093_s20  ;;  %3110 = vrot.lane.b32.xlu0 %v3102_v52, %s7563_s16 }
0x113f   : > { %v3148_v55 = vld [vmem:[#allocation2] sm:$0xff] }
0x1140   : > { %3128 = vrot.lane.b32.xlu1 %v3102_v52, %s6086_s11  ;;  %3122 = vrot.lane.b32.xlu0 %v3102_v52, %s6095_s22  ;;  %4032 = vst [vmem:[#allocation2] sm:$0xf] %v5302_v30 }
0x1141   : > { %3206 = vmatpush1.bf16.msra.mxu1 %v3148_v55 }
0x1142   : > { %3207 = vmatprep.subr.bf16.mxu1 %v6090_v13 }
0x1144   : > { %3140 = vrot.lane.b32.xlu1 %v3102_v52, %s7562_s28  ;;  %3134 = vrot.lane.b32.xlu0 %v3102_v52, %s6097_s27 }
0x1148   : > { %3163 = vperm.xlu1 %5850, %v3157_v56   ;;  %3168 = vperm.xlu0 %5849, %v3158_v57  }
0x114c   : > { %3178 = vperm.xlu1 %5850, %v3160_v58   ;;  %3173 = vperm.xlu0 %5849, %v3159_v59  }
0x1150   : > { %4065 = vrot.lane.b32.xlu1 %v5953_v62, %s6082_s30  ;;  %4063 = vrot.lane.b32.xlu0 %v5309_v63, %s6082_s30 }
0x1154   : > { %4113 = vrot.lane.b32.xlu1 %v5955_v2, %s6083_s8  ;;  %4061 = vrot.lane.b32.xlu0 %v6975_v3, %s6082_s30 }
0x1158   : > { %4161 = vrot.lane.b32.xlu1 %v5957_v4, %s7565_s29  ;;  %4111 = vrot.lane.b32.xlu0 %v5309_v63, %s6083_s8 }
0x115c   : > { %4209 = vrot.lane.b32.xlu1 %v5958_v11, %s7566_s15  ;;  %4109 = vrot.lane.b32.xlu0 %v6975_v3, %s6083_s8 }
0x1160   : > { %4257 = vrot.lane.b32.xlu1 %v5959_v5, %s6086_s11  ;;  %4159 = vrot.lane.b32.xlu0 %v5309_v63, %s7565_s29 }
0x1164   : > { %4305 = vrot.lane.b32.xlu1 %v5960_v6, %s7567_s19  ;;  %4157 = vrot.lane.b32.xlu0 %v6975_v3, %s7565_s29 }
0x1168   : > { %4353 = vrot.lane.b32.xlu1 %v5961_v7, %s7568_s9  ;;  %4207 = vrot.lane.b32.xlu0 %v5309_v63, %s7566_s15 }
0x116c   : > { %4401 = vrot.lane.b32.xlu1 %v5962_v8, %s7569_s10  ;;  %4205 = vrot.lane.b32.xlu0 %v6975_v3, %s7566_s15 }
0x1170   : > { %4255 = vrot.lane.b32.xlu0 %v5309_v63, %s6086_s11 }
0x1174   : > { %4253 = vrot.lane.b32.xlu0 %v6975_v3, %s6086_s11 }
0x1178   : > { %4303 = vrot.lane.b32.xlu0 %v5309_v63, %s7567_s19 }
0x117c   : > { %4301 = vrot.lane.b32.xlu0 %v6975_v3, %s7567_s19 }
0x1180   : > { %4351 = vrot.lane.b32.xlu0 %v5309_v63, %s7568_s9 }
0x1184   : > { %4349 = vrot.lane.b32.xlu0 %v6975_v3, %s7568_s9 }
0x1188   : > { %4399 = vrot.lane.b32.xlu0 %v5309_v63, %s7569_s10 }
0x11aa   : > { %v3105_v20 = vpop.permute.xlu1 %3104  ;;  %v3099_v21 = vpop.permute.xlu0 %3098 }
0x11ab   : > { %3107 = vst.msk [vmem:[#allocation2 + $0x30] sm:$0xff] %vm1804_vm6, %v3105_v20  ;;  %3101 = vst.msk [vmem:[#allocation2 + $0x18] sm:$0xff] %vm1804_vm6, %v3099_v21 }
0x11ae   : > { %v3117_v22 = vpop.permute.xlu1 %3116  ;;  %v3111_v24 = vpop.permute.xlu0 %3110 }
0x11af   : > { %3119 = vst.msk [vmem:[#allocation2 + $0x60] sm:$0xff] %vm1804_vm6, %v3117_v22  ;;  %3113 = vst.msk [vmem:[#allocation2 + $0x48] sm:$0xff] %vm1804_vm6, %v3111_v24 }
0x11b2   : > { %v3129_v25 = vpop.permute.xlu1 %3128  ;;  %v3123_v26 = vpop.permute.xlu0 %3122  ;;  %v3149_v27 = vld [vmem:[#allocation2 + $0x18] sm:$0xff]  ;;  %v3150_v19 = vld [vmem:[#allocation2 + $0x30] sm:$0xff] }
0x11b3   : > { %3131 = vst.msk [vmem:[#allocation2 + $0x90] sm:$0xff] %vm1804_vm6, %v3129_v25  ;;  %3125 = vst.msk [vmem:[#allocation2 + $0x78] sm:$0xff] %vm1804_vm6, %v3123_v26  ;;  %3208 = vmatpush1.bf16.msra.mxu1 %v3149_v27  ;;  %v5981_v25 = vld [vmem:[%s7471_s6 + $0xd8] ss:$12 sps:$4 sm:$0xff]   ;;  %v5983_v26 = vld [vmem:[%s7471_s6 + $0xdc] ss:$12 sps:$4 sm:$0xff]  }
0x11b4   : > { %3209 = vmatprep.subr.bf16.mxu1 %v6090_v13  ;;  %3388 = vmatprep.subr.bf16.mxu0 %v5983_v26  ;;  %v6035_v26 = vld [vmem:[%s7471_s6 + $0x198] ss:$12 sps:$4 sm:$0xff]  }
0x11b5   : > { %3389 = vmatpush1.bf16.msra.mxu0 %v5981_v25  ;;  %v6037_v25 = vld [vmem:[%s7471_s6 + $0x19c] ss:$12 sps:$4 sm:$0xff]  }
0x11b6   : > { %v3141_v28 = vpop.permute.xlu1 %3140  ;;  %v3135_v29 = vpop.permute.xlu0 %3134  ;;  %v3151_v31 = vld [vmem:[#allocation2 + $0x48] sm:$0xff]  ;;  %v3152_v32 = vld [vmem:[#allocation2 + $0x60] sm:$0xff]  ;;  %5700 = vmatprep.subr.bf16.mxu0 %v6081_v1 }
0x11b7   : > { %3143 = vst.msk [vmem:[#allocation2 + $0xc0] sm:$0xff] %vm1804_vm6, %v3141_v28  ;;  %3137 = vst.msk [vmem:[#allocation2 + $0xa8] sm:$0xff] %vm1804_vm6, %v3135_v29  ;;  %3210 = vmatpush1.bf16.msra.mxu1 %v3150_v19 }
0x11b8   : > { %3211 = vmatprep.subr.bf16.mxu1 %v6090_v13 }
0x11ba   : > { %v3153_v33 = vld [vmem:[#allocation2 + $0x78] sm:$0xff]  ;;  %v3154_v34 = vld [vmem:[#allocation2 + $0x90] sm:$0xff] }
0x11bb   : > { %3212 = vmatpush1.bf16.msra.mxu1 %v3151_v31 }
0x11bc   : > { %3213 = vmatprep.subr.bf16.mxu1 %v6090_v13 }
0x11be   : > { %v3155_v38 = vld [vmem:[#allocation2 + $0xa8] sm:$0xff]  ;;  %v3156_v40 = vld [vmem:[#allocation2 + $0xc0] sm:$0xff] }
0x11bf   : > { %3214 = vmatpush1.bf16.msra.mxu1 %v3152_v32  ;;  %v5984_v32 = vld [vmem:[%s7471_s6 + $0x80] ss:$12 sps:$4 sm:$0xff]  }
0x11c0   : > { %3215 = vmatprep.subr.bf16.mxu1 %v6090_v13 }
0x11c3   : > { %3216 = vmatpush1.bf16.msra.mxu1 %v3153_v33 }
0x11c4   : > { %3217 = vmatprep.subr.bf16.mxu1 %v6090_v13 }
0x11c7   : > { %v7043_v35 = vpop.permute.xlu1 %3163  ;;  %v7045_v37 = vpop.permute.xlu0 %3168  ;;  %3218 = vmatpush1.bf16.msra.mxu1 %v3154_v34 }
0x11c8   : > { %3219 = vmatprep.subr.bf16.mxu1 %v6090_v13 }
0x11cb   : > { %v7048_v39 = vpop.permute.xlu1 %3178  ;;  %v7050_v23 = vpop.permute.xlu0 %3173  ;;  %3220 = vmatpush1.bf16.msra.mxu1 %v3155_v38  ;;  %v5985_v38 = vld [vmem:[%s7471_s6 + $0x98] ss:$12 sps:$4 sm:$0xff]  }
0x11cc   : > { %3221 = vmatprep.subr.bf16.mxu1 %v6090_v13 }
0x11cf   : > { %v4066_v43 = vpop.permute.xlu1 %4065  ;;  %v4064_v44 = vpop.permute.xlu0 %4063  ;;  %3222 = vmatpush1.bf16.msra.mxu1 %v3156_v40 }
0x11d0   : > { %4074 = vst.msk [vmem:[#allocation2 + $0x28] sm:$0xf] %vm7570_vm11, %v4066_v43  ;;  %v4068_v45 = vsel %vm7571_vm13, %v4064_v44, %v4066_v43  ;;  %vm7579_vm11 = vcmask 900096   ;;  %vm7580_vm13 = vmmov %vm7578_vm0  ;;  %v5986_v43 = vld [vmem:[%s7471_s6 + $0xb0] ss:$12 sps:$4 sm:$0xff]  }
0x11d1   : > { %4073 = vst [vmem:[#allocation2 + $0x20] sm:$0xf] %v4068_v45  ;;  %v5991_v45 = vld [vmem:[%s7471_s6 + $0x4] ss:$12 sps:$4 sm:$0xff]  }
0x11d2   : > { %3238 = vmatmul.mubr.bf16.vlgmr.msra.gmra.mrb[48].mxu1 %v5965_v42 }
0x11d3   : > { %v4114_v47 = vpop.permute.xlu1 %4113  ;;  %v4062_v48 = vpop.permute.xlu0 %4061  ;;  %5171 = vmatprep.mubr.msk.bf16.mxu1 %vm1886_vm15, %v5966_v36  ;;  %v5988_v36 = vld [vmem:[%s7471_s6 + $0xe0] ss:$12 sps:$4 sm:$0xff]  }
0x11d4   : > { %4122 = vst.msk [vmem:[#allocation2 + $0x40] sm:$0xf] %vm7572_vm9, %v4114_v47  ;;  %v4067_v49 = vsel %vm7573_vm14, %v4062_v48, %v4064_v44  ;;  %vm7581_vm9 = vmmov %vm7579_vm11  ;;  %v5987_v44 = vld [vmem:[%s7471_s6 + $0xc8] ss:$12 sps:$4 sm:$0xff]  }
0x11d5   : > { %4072 = vst [vmem:[#allocation2 + $0x18] sm:$0xf] %v4067_v49  ;;  %vm7582_vm14 = vmmov %vm7578_vm0  ;;  %v5994_v48 = vld [vmem:[%s7471_s6 + $0x1c] ss:$12 sps:$4 sm:$0xff]   ;;  %v5992_v49 = vld [vmem:[%s7471_s6 + $0x18] ss:$12 sps:$4 sm:$0xff]  }
0x11d7   : > { %v4162_v51 = vpop.permute.xlu1 %4161  ;;  %v4112_v52 = vpop.permute.xlu0 %4111 }
0x11d8   : > { %4170 = vst.msk [vmem:[#allocation2 + $0x58] sm:$0xf] %vm7574_vm2, %v4162_v51  ;;  %v4116_v54 = vsel %vm7575_vm4, %v4112_v52, %v4114_v47  ;;  %vm7583_vm2 = vcmask 891904   ;;  %vm7584_vm4 = vmmov %vm7578_vm0  ;;  %v5989_v47 = vld [vmem:[%s7471_s6] ss:$12 sps:$4 sm:$0xff]  }
0x11d9   : > { %4121 = vst [vmem:[#allocation2 + $0x38] sm:$0xf] %v4116_v54  ;;  %v5998_v54 = vld [vmem:[%s7471_s6 + $0x48] ss:$12 sps:$4 sm:$0xff]  }
0x11da   : > { %3246 = vmatmul.mubr.bf16.gmra.mrb[52].mxu1 %v5968_v50  ;;  %v5997_v50 = vld [vmem:[%s7471_s6 + $0x34] ss:$12 sps:$4 sm:$0xff]  }
0x11db   : > { %v4210_v30 = vpop.permute.xlu1 %4209  ;;  %v4110_v55 = vpop.permute.xlu0 %4109 }
0x11dc   : > { %4218 = vst.msk [vmem:[#allocation2 + $0x70] sm:$0xf] %vm7576_vm8, %v4210_v30  ;;  %v4115_v56 = vsel %vm7577_vm3, %v4110_v55, %v4112_v52  ;;  %vm7585_vm8 = vmmov %vm7583_vm2  ;;  %vm7586_vm3 = vcmask 883712   ;;  %v6000_v52 = vld [vmem:[%s7471_s6 + $0x4c] ss:$12 sps:$4 sm:$0xff]  }
0x11dd   : > { %4120 = vst [vmem:[#allocation2 + $0x30] sm:$0xf] %v4115_v56  ;;  %v6001_v55 = vld [vmem:[%s7471_s6 + $0x60] ss:$12 sps:$4 sm:$0xff]  }
0x11df   : > { %v4258_v57 = vpop.permute.xlu1 %4257  ;;  %v4160_v58 = vpop.permute.xlu0 %4159 }
0x11e0   : > { %4266 = vst.msk [vmem:[#allocation2 + $0x88] sm:$0xf] %vm7578_vm0, %v4258_v57  ;;  %v4164_v59 = vsel %vm7579_vm11, %v4160_v58, %v4162_v51  ;;  %vm7587_vm0 = vmmov %vm7586_vm3  ;;  %vm7588_vm11 = vcmask 752640   ;;  %v5995_v51 = vld [vmem:[%s7471_s6 + $0x30] ss:$12 sps:$4 sm:$0xff]  }
0x11e1   : > { %4169 = vst [vmem:[#allocation2 + $0x50] sm:$0xf] %v4164_v59  ;;  %v6005_v59 = vld [vmem:[%s7471_s6 + $0x20] ss:$12 sps:$4 sm:$0xff]  }
0x11e3   : > { %v4306_v61 = vpop.permute.xlu1 %4305  ;;  %v4158_v62 = vpop.permute.xlu0 %4157 }
0x11e4   : > { %4314 = vst.msk [vmem:[#allocation2 + $0xa0] sm:$0xf] %vm7580_vm13, %v4306_v61  ;;  %v4163_v63 = vsel %vm7581_vm9, %v4158_v62, %v4160_v58  ;;  %vm7589_vm13 = vmmov %vm7588_vm11  ;;  %vm7590_vm9 = vcmask 744448   ;;  %v6008_v62 = vld [vmem:[%s7471_s6 + $0x68] ss:$12 sps:$4 sm:$0xff]  }
0x11e5   : > { %4168 = vst [vmem:[#allocation2 + $0x48] sm:$0xf] %v4163_v63  ;;  %v6011_v63 = vld [vmem:[%s7471_s6 + $0xf4] ss:$12 sps:$4 sm:$0xff]  }
0x11e7   : > { %v4354_v0 = vpop.permute.xlu1 %4353  ;;  %v4208_v2 = vpop.permute.xlu0 %4207 }
0x11e8   : > { %4362 = vst.msk [vmem:[#allocation2 + $0xb8] sm:$0xf] %vm7582_vm14, %v4354_v0  ;;  %v4212_v4 = vsel %vm7583_vm2, %v4208_v2, %v4210_v30  ;;  %vm7591_vm14 = vmmov %vm7590_vm9  ;;  %vm7592_vm2 = vcmask 736256   ;;  %v6003_v30 = vld [vmem:[%s7471_s6 + $0x64] ss:$12 sps:$4 sm:$0xff]  }
0x11e9   : > { %4217 = vst [vmem:[#allocation2 + $0x68] sm:$0xf] %v4212_v4  ;;  %v6012_v4 = vld [vmem:[%s7471_s6 + $0x108] ss:$12 sps:$4 sm:$0xff]  }
0x11eb   : > { %v4402_v11 = vpop.permute.xlu1 %4401  ;;  %v4206_v5 = vpop.permute.xlu0 %4205 }
0x11ec   : > { %4410 = vst.msk [vmem:[#allocation2 + $0xd0] sm:$0xf] %vm7584_vm4, %v4402_v11  ;;  %v4211_v6 = vsel %vm7585_vm8, %v4206_v5, %v4208_v2  ;;  %v6014_v2 = vld [vmem:[%s7471_s6 + $0x10c] ss:$12 sps:$4 sm:$0xff]   ;;  %vm7593_vm4 = vcmask 261124   ;;  %vm7594_vm8 = vcmask 1039360  }
0x11ed   : > { %4216 = vst [vmem:[#allocation2 + $0x60] sm:$0xf] %v4211_v6  ;;  %v6015_v5 = vld [vmem:[%s7471_s6 + $0x120] ss:$12 sps:$4 sm:$0xff]   ;;  %v6020_v6 = vld [vmem:[%s7471_s6 + $0x13c] ss:$12 sps:$4 sm:$0xff]  }
0x11ef   : > { %v4256_v7 = vpop.permute.xlu0 %4255 }
0x11f0   : > { %v4260_v8 = vsel %vm7586_vm3, %v4256_v7, %v4258_v57  ;;  %v6004_v57 = vld [vmem:[%s7471_s6 + $0x8] ss:$12 sps:$4 sm:$0xff]   ;;  %vm7595_vm3 = vcmask 1031168  }
0x11f1   : > { %4265 = vst [vmem:[#allocation2 + $0x80] sm:$0xf] %v4260_v8  ;;  %v6023_v8 = vld [vmem:[%s7471_s6 + $0x154] ss:$12 sps:$4 sm:$0xff]  }
0x11f3   : > { %v4254_v9 = vpop.permute.xlu0 %4253 }
0x11f4   : > { %v4259_v10 = vsel %vm7587_vm0, %v4254_v9, %v4256_v7  ;;  %v6018_v7 = vld [vmem:[%s7471_s6 + $0x138] ss:$12 sps:$4 sm:$0xff]   ;;  %v6021_v9 = vld [vmem:[%s7471_s6 + $0x150] ss:$12 sps:$4 sm:$0xff]   ;;  %vm7596_vm0 = vcmask 900096  }
0x11f5   : > { %4264 = vst [vmem:[#allocation2 + $0x78] sm:$0xf] %v4259_v10 }
0x11f7   : > { %v4304_v14 = vpop.permute.xlu0 %4303 }
0x11f8   : > { %v4308_v12 = vsel %vm7588_vm11, %v4304_v14, %v4306_v61  ;;  %v6007_v61 = vld [vmem:[%s7471_s6 + $0x50] ss:$12 sps:$4 sm:$0xff]   ;;  %vm7597_vm11 = vcmask 891904  }
0x11f9   : > { %4313 = vst [vmem:[#allocation2 + $0x98] sm:$0xf] %v4308_v12 }
0x11fb   : > { %v4302_v15 = vpop.permute.xlu0 %4301 }
0x11fc   : > { %v4307_v16 = vsel %vm7589_vm13, %v4302_v15, %v4304_v14  ;;  %v6024_v14 = vld [vmem:[%s7471_s6 + $0xf8] ss:$12 sps:$4 sm:$0xff]   ;;  %v6025_v15 = vld [vmem:[%s7471_s6 + $0x110] ss:$12 sps:$4 sm:$0xff]   ;;  %vm7598_vm13 = vcmask 883712  }
0x11fd   : > { %4312 = vst [vmem:[#allocation2 + $0x90] sm:$0xf] %v4307_v16  ;;  %v6027_v16 = vld [vmem:[%s7471_s6 + $0x140] ss:$12 sps:$4 sm:$0xff]  }
0x11ff   : > { %v4352_v17 = vpop.permute.xlu0 %4351 }
0x1200   : > { %v4356_v18 = vsel %vm7590_vm9, %v4352_v17, %v4354_v0  ;;  %v6009_v0 = vld [vmem:[%s7471_s6 + $0xf0] ss:$12 sps:$4 sm:$0xff]   ;;  %vm7599_vm9 = vcmask 752640  }
0x1201   : > { %4361 = vst [vmem:[#allocation2 + $0xb0] sm:$0xf] %v4356_v18  ;;  %v6031_v18 = vld [vmem:[%s7471_s6 + $0x16c] ss:$12 sps:$4 sm:$0xff]  }
0x1203   : > { %v4350_v20 = vpop.permute.xlu0 %4349 }
0x1204   : > { %v4355_v21 = vsel %vm7591_vm14, %v4350_v20, %v4352_v17  ;;  %v6028_v17 = vld [vmem:[%s7471_s6 + $0x158] ss:$12 sps:$4 sm:$0xff]   ;;  %v6029_v20 = vld [vmem:[%s7471_s6 + $0x168] ss:$12 sps:$4 sm:$0xff]  }
0x1205   : > { %4360 = vst [vmem:[#allocation2 + $0xa8] sm:$0xf] %v4355_v21  ;;  %v6034_v21 = vld [vmem:[%s7471_s6 + $0x184] ss:$12 sps:$4 sm:$0xff]  }
0x1207   : > { %v7085_v22 = vpop.permute.xlu0 %4399 }
0x1208   : > { %v4404_v24 = vsel %vm7592_vm2, %v7085_v22, %v4402_v11  ;;  %v6017_v11 = vld [vmem:[%s7471_s6 + $0x124] ss:$12 sps:$4 sm:$0xff]   ;;  %vm7600_vm2 = vmmov %vm7594_vm8 }
0x1209   : > { %4409 = vst [vmem:[#allocation2 + $0xc8] sm:$0xf] %v4404_v24  ;;  %v6032_v24 = vld [vmem:[%s7471_s6 + $0x180] ss:$12 sps:$4 sm:$0xff]  }
0x12a5   : > { %v3239_v27 = vpop.f32.mrb[48].mxu1 }
0x12a6   : > { %v3241_v28 = vpop.f32.mrb[49].mxu1  ;;  %v3240_v56 = vadd.f32 %v3239_v27, %v7043_v35  ;;  %v6006_v35 = vld [vmem:[%s7471_s6 + $0x38] ss:$12 sps:$4 sm:$0xff]   ;;  %v6040_v27 = vld [vmem:[%s7471_s6 + $0x1b4] ss:$12 sps:$4 sm:$0xff]  }
0x12a7   : > { %v3242_v29 = vpop.f32.mrb[50].mxu1  ;;  %v6038_v28 = vld [vmem:[%s7471_s6 + $0x1b0] ss:$12 sps:$4 sm:$0xff]  }
0x12a8   : > { %v3243_v19 = vadd.f32 %v3242_v29, %v7045_v37  ;;  %v3244_v31 = vpop.f32.mrb[51].mxu1  ;;  %v3254_v58 = vpack.c.bf16 %v3240_v56, %v3240_v56  ;;  %v6043_v29 = vld [vmem:[%s7471_s6 + $0x1cc] ss:$12 sps:$4 sm:$0xff]  }
0x12aa   : > { %v3275_v33 = vpack.c.bf16 %v3243_v19, %v3243_v19  ;;  %v6041_v19 = vld [vmem:[%s7471_s6 + $0x1c8] ss:$12 sps:$4 sm:$0xff]  }
0x12ac   : > { %5207 = vmatmul.mubr.msk.bf16.vlgmr.msra.gmra.mrb[40].mxu0 %vm1804_vm6, %v3275_v33 }
0x12ad   : > { %5701 = vmatpush3.bf16.msra.mxu0 %v5984_v32  ;;  %v7101_v34 = vpop.f32.mrb[52].mxu1  ;;  %5710 = vmatprep.mubr.msk.bf16.mxu0 %vm7534_vm5, %v6081_v1  ;;  %v6044_v32 = vld [vmem:[%s7471_s6 + $0x170] ss:$12 sps:$4 sm:$0xff]  }
0x12ae   : > { %v3249_v40 = vpop.f32.mrb[53].mxu1  ;;  %5702 = vmatprep.subr.bf16.mxu0 %v6081_v1  ;;  %v3248_v10 = vadd.f32 %v7101_v34, %v7050_v23  ;;  %v6026_v23 = vld [vmem:[%s7471_s6 + $0x128] ss:$12 sps:$4 sm:$0xff]  }
0x12af   : > { %v7109_v37 = vpop.f32.mrb[54].mxu1  ;;  %v6045_v34 = vld [vmem:[%s7471_s6 + $0x188] ss:$12 sps:$4 sm:$0xff]   ;;  %v6048_v40 = vld [vmem:[%s7471_s6 + $0x1d0] ss:$12 sps:$4 sm:$0xff]  }
0x12b0   : > { %v3252_v42 = vpop.f32.mrb[55].mxu1  ;;  %v3625_v12 = vpack.c.bf16 %v3248_v10, %v3248_v10  ;;  %v3251_v31 = vadd.f32 %v7109_v37, %v7048_v39  ;;  %v6046_v39 = vld [vmem:[%s7471_s6 + $0x1a0] ss:$12 sps:$4 sm:$0xff]  }
0x12b1   : > { %5703 = vmatpush3.bf16.msra.mxu0 %v5985_v38  ;;  %v6047_v38 = vld [vmem:[%s7471_s6 + $0x1b8] ss:$12 sps:$4 sm:$0xff]  }
0x12b2   : > { %5704 = vmatprep.subr.bf16.mxu0 %v6081_v1 }
0x12b5   : > { %5705 = vmatpush3.bf16.msra.mxu0 %v5986_v43 }
0x12b6   : > { %5706 = vmatprep.subr.bf16.mxu0 %v6081_v1 }
0x12b9   : > { %5707 = vmatpush3.bf16.msra.mxu0 %v5987_v44 }
0x12ba   : > { %5708 = vmatprep.subr.bf16.mxu0 %v6081_v1 }
0x12bd   : > { %5709 = vmatpush3.bf16.msra.mxu0 %v5988_v36 }
0x12be   : > { %3544 = vmatprep.subr.bf16.mxu0 %v5991_v45 }
0x12c0   : > { %5711 = vmatmul.mubr.msk.bf16.vlgmr.msra.gmra.mrb[44].mxu0 %vm1804_vm6, %v3275_v33  ;;  %v3814_v33 = vpack.c.bf16 %v3251_v31, %v3251_v31 }
0x12c1   : > { %3545 = vmatpush1.bf16.msra.mxu0 %v5989_v47  ;;  %3576 = vmatprep.mubr.bf16.mxu0 %v6090_v13 }
0x12c2   : > { %3546 = vmatprep.subr.bf16.mxu0 %v5994_v48 }
0x12c5   : > { %3547 = vmatpush1.bf16.msra.mxu0 %v5992_v49 }
0x12c6   : > { %3548 = vmatprep.subr.bf16.mxu0 %v5997_v50 }
0x12c9   : > { %3549 = vmatpush1.bf16.msra.mxu0 %v5995_v51 }
0x12ca   : > { %3550 = vmatprep.subr.bf16.mxu0 %v6000_v52 }
0x12cd   : > { %3551 = vmatpush1.bf16.msra.mxu0 %v5998_v54 }
0x12ce   : > { %3552 = vmatprep.subr.bf16.mxu0 %v6003_v30 }
0x12d1   : > { %3553 = vmatpush1.bf16.msra.mxu0 %v6001_v55 }
0x12d2   : > { %5714 = vmatprep.subr.bf16.mxu0 %v6081_v1 }
0x12d4   : > { %5224 = vmatmul.mubr.msk.bf16.vlgmr.msra.gmra.mrb[40].mxu0 %vm1804_vm6, %v3254_v58 }
0x12d5   : > { %5715 = vmatpush3.bf16.msra.mxu0 %v6004_v57  ;;  %5724 = vmatprep.mubr.msk.bf16.mxu0 %vm7534_vm5, %v6081_v1  ;;  %v4463_v57 = vld [vmem:[%s7467_s2 + $0xc8] sm:$0xff] }
0x12d6   : > { %5716 = vmatprep.subr.bf16.mxu0 %v6081_v1 }
0x12d9   : > { %5717 = vmatpush3.bf16.msra.mxu0 %v6005_v59 }
0x12da   : > { %5718 = vmatprep.subr.bf16.mxu0 %v6081_v1 }
0x12dd   : > { %5719 = vmatpush3.bf16.msra.mxu0 %v6006_v35 }
0x12de   : > { %5720 = vmatprep.subr.bf16.mxu0 %v6081_v1 }
0x12e1   : > { %5721 = vmatpush3.bf16.msra.mxu0 %v6007_v61 }
0x12e2   : > { %5722 = vmatprep.subr.bf16.mxu0 %v6081_v1 }
0x12e5   : > { %5723 = vmatpush3.bf16.msra.mxu0 %v6008_v62 }
0x12e6   : > { %3730 = vmatprep.subr.bf16.mxu0 %v6011_v63  ;;  %v7327_v63 = vld [vmem:[%s7466_s1 + $0x12c] sm:$0xff] }
0x12e8   : > { %5725 = vmatmul.mubr.msk.bf16.vlgmr.msra.gmra.mrb[44].mxu0 %vm1804_vm6, %v3254_v58 }
0x12e9   : > { %3731 = vmatpush1.bf16.msra.mxu0 %v6009_v0  ;;  %3762 = vmatprep.mubr.bf16.mxu0 %v6090_v13  ;;  %v7331_v0 = vcombine.high %v7327_v63, %v7327_v63 }
0x12ea   : > { %3732 = vmatprep.subr.bf16.mxu0 %v6014_v2 }
0x12eb   : > { %5358 = vmatprep.mubr.msk.bf16.mxu1 %vm1886_vm15, %v7331_v0 }
0x12ed   : > { %3733 = vmatpush1.bf16.msra.mxu0 %v6012_v4 }
0x12ee   : > { %3734 = vmatprep.subr.bf16.mxu0 %v6017_v11 }
0x12f1   : > { %3735 = vmatpush1.bf16.msra.mxu0 %v6015_v5 }
0x12f2   : > { %3736 = vmatprep.subr.bf16.mxu0 %v6020_v6 }
0x12f5   : > { %3737 = vmatpush1.bf16.msra.mxu0 %v6018_v7 }
0x12f6   : > { %3738 = vmatprep.subr.bf16.mxu0 %v6023_v8 }
0x12f9   : > { %3739 = vmatpush1.bf16.msra.mxu0 %v6021_v9 }
0x12fa   : > { %5728 = vmatprep.subr.bf16.mxu0 %v6081_v1 }
0x12fc   : > { %5261 = vmatmul.mubr.msk.bf16.vlgmr.msra.gmra.mrb[40].mxu0 %vm1804_vm6, %v3625_v12 }
0x12fd   : > { %5729 = vmatpush3.bf16.msra.mxu0 %v6024_v14  ;;  %5738 = vmatprep.mubr.msk.bf16.mxu0 %vm7534_vm5, %v6081_v1 }
0x12fe   : > { %5730 = vmatprep.subr.bf16.mxu0 %v6081_v1 }
0x1301   : > { %5731 = vmatpush3.bf16.msra.mxu0 %v6025_v15 }
0x1302   : > { %5732 = vmatprep.subr.bf16.mxu0 %v6081_v1 }
0x1305   : > { %5733 = vmatpush3.bf16.msra.mxu0 %v6026_v23 }
0x1306   : > { %5734 = vmatprep.subr.bf16.mxu0 %v6081_v1 }
0x1309   : > { %5735 = vmatpush3.bf16.msra.mxu0 %v6027_v16 }
0x130a   : > { %5736 = vmatprep.subr.bf16.mxu0 %v6081_v1 }
0x130d   : > { %5737 = vmatpush3.bf16.msra.mxu0 %v6028_v17 }
0x130e   : > { %3919 = vmatprep.subr.bf16.mxu0 %v6031_v18 }
0x1310   : > { %5739 = vmatmul.mubr.msk.bf16.vlgmr.msra.gmra.mrb[44].mxu0 %vm1804_vm6, %v3625_v12 }
0x1311   : > { %3920 = vmatpush1.bf16.msra.mxu0 %v6029_v20  ;;  %3951 = vmatprep.mubr.bf16.mxu0 %v6090_v13 }
0x1312   : > { %3921 = vmatprep.subr.bf16.mxu0 %v6034_v21 }
0x1315   : > { %3922 = vmatpush1.bf16.msra.mxu0 %v6032_v24 }
0x1316   : > { %3923 = vmatprep.subr.bf16.mxu0 %v6037_v25 }
0x1319   : > { %3924 = vmatpush1.bf16.msra.mxu0 %v6035_v26 }
0x131a   : > { %3925 = vmatprep.subr.bf16.mxu0 %v6040_v27 }
0x131d   : > { %3926 = vmatpush1.bf16.msra.mxu0 %v6038_v28 }
0x131e   : > { %3927 = vmatprep.subr.bf16.mxu0 %v6043_v29 }
0x1321   : > { %3928 = vmatpush1.bf16.msra.mxu0 %v6041_v19 }
0x1322   : > { %5742 = vmatprep.subr.bf16.mxu0 %v6081_v1 }
0x1324   : > { %5298 = vmatmul.mubr.msk.bf16.vlgmr.msra.gmra.mrb[40].mxu0 %vm1804_vm6, %v3814_v33 }
0x1325   : > { %5743 = vmatpush3.bf16.msra.mxu0 %v6044_v32  ;;  %5752 = vmatprep.mubr.msk.bf16.mxu0 %vm7534_vm5, %v6081_v1 }
0x1326   : > { %5744 = vmatprep.subr.bf16.mxu0 %v6081_v1 }
0x1329   : > { %5745 = vmatpush3.bf16.msra.mxu0 %v6045_v34 }
0x132a   : > { %5746 = vmatprep.subr.bf16.mxu0 %v6081_v1 }
0x132d   : > { %5747 = vmatpush3.bf16.msra.mxu0 %v6046_v39 }
0x132e   : > { %5748 = vmatprep.subr.bf16.mxu0 %v6081_v1 }
0x1331   : > { %5749 = vmatpush3.bf16.msra.mxu0 %v6047_v38 }
0x1332   : > { %5750 = vmatprep.subr.bf16.mxu0 %v6081_v1 }
0x1335   : > { %5751 = vmatpush3.bf16.msra.mxu0 %v6048_v40 }
0x1338   : > { %5753 = vmatmul.mubr.msk.bf16.vlgmr.msra.gmra.mrb[44].mxu0 %vm1804_vm6, %v3814_v33  ;;  %vm4017_vm6 = vcmask 568320  }
0x13f7   : > { %v3953_v37 = vpop.f32.mrb[40].mxu0 }
0x13f8   : > { %v3955_v42 = vpop.f32.mrb[41].mxu0  ;;  %v6071_v36 = vpack.c.bf16 %v3953_v37, %v3953_v37 }
0x13f9   : > { %v3957_v43 = vpop.f32.mrb[42].mxu0  ;;  %v6072_v45 = vpack.c.bf16 %v3955_v42, %v3955_v42 }
0x13fa   : > { %v3958_v44 = vpop.f32.mrb[43].mxu0  ;;  %4048 = vst [vmem:[#allocation2] sm:$0xf0] %v6071_v36  ;;  %4085 = vrot.lane.b32.xlu1 %v6071_v36, %s6082_s30 }
0x13fb   : > { %4049 = vst [vmem:[#allocation2 + $0x8] sm:$0xf0] %v6072_v45  ;;  %4087 = vrot.lane.b32.xlu0 %v6072_v45, %s6082_s30 }
0x13fe   : > { %4133 = vrot.lane.b32.xlu1 %v6071_v36, %s6083_s8 }
0x13ff   : > { %4135 = vrot.lane.b32.xlu0 %v6072_v45, %s6083_s8 }
0x1401   : > { %v4436_v48 = vld [vmem:[#allocation2] sm:$0xff] }
0x1402   : > { %v4437_v47 = vld [vmem:[#allocation2 + $0x8] sm:$0xff]  ;;  %4181 = vrot.lane.b32.xlu1 %v6071_v36, %s7565_s29 }
0x1403   : > { %4183 = vrot.lane.b32.xlu0 %v6072_v45, %s7565_s29  ;;  %4478 = vmatprep.subr.bf16.mxu1 %v4437_v47 }
0x1404   : > { %4479 = vmatpush1.bf16.msra.mxu1 %v4436_v48 }
0x1406   : > { %4229 = vrot.lane.b32.xlu1 %v6071_v36, %s7566_s15 }
0x1407   : > { %4231 = vrot.lane.b32.xlu0 %v6072_v45, %s7566_s15 }
0x140a   : > { %4277 = vrot.lane.b32.xlu1 %v6071_v36, %s6086_s11 }
0x140b   : > { %v3994_v49 = vpop.f32.mrb[44].mxu0  ;;  %4279 = vrot.lane.b32.xlu0 %v6072_v45, %s6086_s11 }
0x140c   : > { %v5399_v50 = vpack.c.bf16 %v3994_v49, %v3994_v49  ;;  %v5754_v51 = vpop.f32.mrb[45].mxu0 }
0x140d   : > { %v3997_v52 = vpop.f32.mrb[46].mxu0 }
0x140e   : > { %4018 = vst.msk [vmem:[#allocation5 + $0x8] sm:$0xf] %vm4017_vm6, %v5399_v50  ;;  %v5755_v54 = vpop.f32.mrb[47].mxu0  ;;  %4325 = vrot.lane.b32.xlu1 %v6071_v36, %s7567_s19 }
0x140f   : > { %4327 = vrot.lane.b32.xlu0 %v6072_v45, %s7567_s19 }
0x1412   : > { %4373 = vrot.lane.b32.xlu1 %v6071_v36, %s7568_s9 }
0x1413   : > { %4375 = vrot.lane.b32.xlu0 %v6072_v45, %s7568_s9 }
0x1415   : > { %v6049_v30 = vld [vmem:[#allocation5 + $0x8] ss:$0 sps:$4 sm:$0xff]  }
0x1416   : > { %4050 = vst.msk [vmem:[#allocation2 + $0x10] sm:$0xf0] %vm7593_vm4, %v6049_v30  ;;  %v6050_v55 = vld [vmem:[#allocation5 + $0x8] ss:$0 sps:$4 sm:$0xff]  }
0x1417   : > { %4423 = vrot.lane.b32.xlu0 %v6072_v45, %s7569_s10  ;;  %4089 = vrot.lane.b32.xlu1 %v6050_v55, %s6082_s30  ;;  %v6051_v56 = vld [vmem:[#allocation5 + $0x8] ss:$0 sps:$4 sm:$0xff]  }
0x1418   : > { %v6052_v58 = vld [vmem:[#allocation5 + $0x8] ss:$0 sps:$4 sm:$0xff]  }
0x1419   : > { %v6053_v59 = vld [vmem:[#allocation5 + $0x8] ss:$0 sps:$4 sm:$0xff]  }
0x141a   : > { %v6054_v35 = vld [vmem:[#allocation5 + $0x8] ss:$0 sps:$4 sm:$0xff]  }
0x141b   : > { %4397 = vrot.lane.b32.xlu0 %v6975_v3, %s7569_s10  ;;  %4137 = vrot.lane.b32.xlu1 %v6051_v56, %s6083_s8  ;;  %v6055_v61 = vld [vmem:[#allocation5 + $0x8] ss:$0 sps:$4 sm:$0xff]  }
0x141c   : > { %v6056_v3 = vld [vmem:[#allocation5 + $0x8] ss:$0 sps:$4 sm:$0xff]  }
0x141d   : > { %v6057_v62 = vld [vmem:[#allocation5 + $0x8] ss:$0 sps:$4 sm:$0xff]  }
0x141f   : > { %4466 = vperm.xlu0 %5849, %v4463_v57   ;;  %4185 = vrot.lane.b32.xlu1 %v6052_v58, %s7565_s29 }
0x1423   : > { %4233 = vrot.lane.b32.xlu1 %v6053_v59, %s7566_s15 }
0x1427   : > { %4281 = vrot.lane.b32.xlu1 %v6054_v35, %s6086_s11 }
0x142b   : > { %4329 = vrot.lane.b32.xlu1 %v6055_v61, %s7567_s19 }
0x142f   : > { %4377 = vrot.lane.b32.xlu1 %v6056_v3, %s7568_s9 }
0x1433   : > { %4425 = vrot.lane.b32.xlu1 %v6057_v62, %s7569_s10 }
0x1437   : > { %4421 = vrot.lane.b32.xlu1 %v6071_v36, %s7569_s10 }
0x146c   : > { %v4086_v4 = vpop.permute.xlu1 %4085 }
0x146d   : > { %v4088_v2 = vpop.permute.xlu0 %4087 }
0x146e   : > { %v4091_v11 = vsel %vm7594_vm8, %v4086_v4, %v4088_v2  ;;  %vm7601_vm8 = vcmask 736256  }
0x146f   : > { %4096 = vst [vmem:[#allocation2 + $0x18] sm:$0xf0] %v4091_v11  ;;  %v5356_v11 = vcombine.low %v7327_v63, %v7327_v63 }
0x1470   : > { %v4134_v6 = vpop.permute.xlu1 %4133 }
0x1471   : > { %v4136_v5 = vpop.permute.xlu0 %4135 }
0x1472   : > { %v4139_v7 = vsel %vm7595_vm3, %v4134_v6, %v4136_v5 }
0x1473   : > { %4144 = vst [vmem:[#allocation2 + $0x30] sm:$0xf0] %v4139_v7 }
0x1474   : > { %v4182_v9 = vpop.permute.xlu1 %4181 }
0x1475   : > { %v4184_v8 = vpop.permute.xlu0 %4183 }
0x1476   : > { %v4187_v10 = vsel %vm7596_vm0, %v4182_v9, %v4184_v8  ;;  %vm7602_vm0 = vmmov %vm7593_vm4  ;;  %v4439_v40 = vld [vmem:[#allocation2 + $0x18] sm:$0xff] }
0x1477   : > { %4192 = vst [vmem:[#allocation2 + $0x48] sm:$0xf0] %v4187_v10 }
0x1478   : > { %v4230_v12 = vpop.permute.xlu1 %4229 }
0x1479   : > { %v4232_v14 = vpop.permute.xlu0 %4231 }
0x147a   : > { %v4235_v15 = vsel %vm7597_vm11, %v4230_v12, %v4232_v14  ;;  %vm7603_vm11 = vcmask 900096   ;;  %v4442_v43 = vld [vmem:[#allocation2 + $0x30] sm:$0xff] }
0x147b   : > { %4240 = vst [vmem:[#allocation2 + $0x60] sm:$0xf0] %v4235_v15 }
0x147c   : > { %v4278_v16 = vpop.permute.xlu1 %4277 }
0x147d   : > { %v4280_v23 = vpop.permute.xlu0 %4279 }
0x147e   : > { %v4283_v17 = vsel %vm7598_vm13, %v4278_v16, %v4280_v23  ;;  %vm7604_vm13 = vmmov %vm7602_vm0  ;;  %v4445_v47 = vld [vmem:[#allocation2 + $0x48] sm:$0xff] }
0x147f   : > { %4288 = vst [vmem:[#allocation2 + $0x78] sm:$0xf0] %v4283_v17 }
0x1480   : > { %v4326_v20 = vpop.permute.xlu1 %4325 }
0x1481   : > { %v4328_v18 = vpop.permute.xlu0 %4327 }
0x1482   : > { %v4331_v21 = vsel %vm7599_vm9, %v4326_v20, %v4328_v18  ;;  %vm7605_vm9 = vcmask 891904   ;;  %v4448_v51 = vld [vmem:[#allocation2 + $0x60] sm:$0xff] }
0x1483   : > { %4336 = vst [vmem:[#allocation2 + $0x90] sm:$0xf0] %v4331_v21 }
0x1484   : > { %v4374_v25 = vpop.permute.xlu1 %4373 }
0x1485   : > { %v4376_v24 = vpop.permute.xlu0 %4375 }
0x1486   : > { %v4379_v26 = vsel %vm7591_vm14, %v4374_v25, %v4376_v24  ;;  %vm7606_vm14 = vmmov %vm7602_vm0  ;;  %v4451_v55 = vld [vmem:[#allocation2 + $0x78] sm:$0xff] }
0x1487   : > { %4384 = vst [vmem:[#allocation2 + $0xa8] sm:$0xf0] %v4379_v26 }
0x1489   : > { %v4424_v27 = vpop.permute.xlu0 %4423  ;;  %v4090_v28 = vpop.permute.xlu1 %4089 }
0x148a   : > { %v4092_v29 = vsel %vm7600_vm2, %v4088_v2, %v4090_v28  ;;  %4098 = vst.msk [vmem:[#allocation2 + $0x28] sm:$0xf0] %vm7593_vm4, %v4090_v28  ;;  %vm7607_vm2 = vcmask 883712   ;;  %vm7608_vm4 = vmmov %vm7602_vm0  ;;  %v4454_v59 = vld [vmem:[#allocation2 + $0x90] sm:$0xff] }
0x148b   : > { %4097 = vst [vmem:[#allocation2 + $0x20] sm:$0xf0] %v4092_v29 }
0x148d   : > { %v4398_v19 = vpop.permute.xlu0 %4397  ;;  %v4138_v31 = vpop.permute.xlu1 %4137 }
0x148e   : > { %v4403_v32 = vsel %vm7601_vm8, %v4398_v19, %v7085_v22  ;;  %v4140_v33 = vsel %vm7595_vm3, %v4136_v5, %v4138_v31  ;;  %4146 = vst.msk [vmem:[#allocation2 + $0x40] sm:$0xf0] %vm7602_vm0, %v4138_v31  ;;  %vm7609_vm8 = vcmask 752640   ;;  %vm7610_vm3 = vmmov %vm7602_vm0  ;;  %vm7611_vm0 = vcmask 744448   ;;  %v4457_v62 = vld [vmem:[#allocation2 + $0xa8] sm:$0xff]  ;;  %v4438_v5 = vld [vmem:[#allocation2 + $0x10] sm:$0xff] }
0x148f   : > { %4408 = vst [vmem:[#allocation2 + $0xc0] sm:$0xf] %v4403_v32  ;;  %4145 = vst [vmem:[#allocation2 + $0x38] sm:$0xf0] %v4140_v33 }
0x1491   : > { %v4186_v34 = vpop.permute.xlu1 %4185  ;;  %v4441_v6 = vld [vmem:[#allocation2 + $0x28] sm:$0xff] }
0x1492   : > { %v4188_v39 = vsel %vm7603_vm11, %v4184_v8, %v4186_v34  ;;  %4194 = vst.msk [vmem:[#allocation2 + $0x58] sm:$0xf0] %vm7604_vm13, %v4186_v34  ;;  %v4440_v38 = vld [vmem:[#allocation2 + $0x20] sm:$0xff]  ;;  %vm7612_vm11 = vmmov %vm7610_vm3  ;;  %vm7613_vm13 = vcmask 736256  }
0x1493   : > { %4193 = vst [vmem:[#allocation2 + $0x50] sm:$0xf0] %v4188_v39  ;;  %4480 = vmatprep.subr.bf16.mxu1 %v4440_v38 }
0x1494   : > { %4481 = vmatpush1.bf16.msra.mxu1 %v4439_v40  ;;  %v6070_v40 = vld [vmem:[#allocation3] sm:$0xff] }
0x1495   : > { %v4234_v37 = vpop.permute.xlu1 %4233  ;;  %v4444_v7 = vld [vmem:[#allocation2 + $0x40] sm:$0xff] }
0x1496   : > { %v4236_v42 = vsel %vm7605_vm9, %v4232_v14, %v4234_v37  ;;  %4242 = vst.msk [vmem:[#allocation2 + $0x70] sm:$0xf0] %vm7606_vm14, %v4234_v37  ;;  %v4443_v22 = vld [vmem:[#allocation2 + $0x38] sm:$0xff]  ;;  %vm7614_vm9 = vmmov %vm7610_vm3 }
0x1497   : > { %4241 = vst [vmem:[#allocation2 + $0x68] sm:$0xf0] %v4236_v42  ;;  %4482 = vmatprep.subr.bf16.mxu1 %v4443_v22  ;;  %vm7615_vm14 = vmmov %vm7613_vm13 }
0x1498   : > { %4483 = vmatpush1.bf16.msra.mxu1 %v4442_v43  ;;  %v4590_v43 = vld [vmem:[#allocation3 + $0x8] sm:$0xf] }
0x1499   : > { %v4282_v44 = vpop.permute.xlu1 %4281  ;;  %v4447_v63 = vld [vmem:[#allocation2 + $0x58] sm:$0xff] }
0x149a   : > { %v4284_v36 = vsel %vm7607_vm2, %v4280_v23, %v4282_v44  ;;  %4290 = vst.msk [vmem:[#allocation2 + $0x88] sm:$0xf0] %vm7608_vm4, %v4282_v44  ;;  %v4446_v45 = vld [vmem:[#allocation2 + $0x50] sm:$0xff]  ;;  %vm7623_vm2 = vcmask 1031168   ;;  %vm7624_vm4 = vcmask 883712  }
0x149b   : > { %4289 = vst [vmem:[#allocation2 + $0x80] sm:$0xf0] %v4284_v36  ;;  %4484 = vmatprep.subr.bf16.mxu1 %v4446_v45 }
0x149c   : > { %4485 = vmatpush1.bf16.msra.mxu1 %v4445_v47 }
0x149d   : > { %v4330_v48 = vpop.permute.xlu1 %4329  ;;  %v4450_v8 = vld [vmem:[#allocation2 + $0x70] sm:$0xff] }
0x149e   : > { %v4332_v49 = vsel %vm7609_vm8, %v4328_v18, %v4330_v48  ;;  %4338 = vst.msk [vmem:[#allocation2 + $0xa0] sm:$0xf0] %vm7610_vm3, %v4330_v48  ;;  %v4449_v50 = vld [vmem:[#allocation2 + $0x68] sm:$0xff]  ;;  %v4467_v12 = vpop.permute.xlu0 %4466  ;;  %vm7625_vm8 = vcmask 891904   ;;  %vm7626_vm3 = vmmov %vm7623_vm2 }
0x149f   : > { %4337 = vst [vmem:[#allocation2 + $0x98] sm:$0xf0] %v4332_v49  ;;  %4486 = vmatprep.subr.bf16.mxu1 %v4449_v50 }
0x14a0   : > { %4487 = vmatpush1.bf16.msra.mxu1 %v4448_v51 }
0x14a1   : > { %v4378_v52 = vpop.permute.xlu1 %4377  ;;  %v4453_v9 = vld [vmem:[#allocation2 + $0x88] sm:$0xff] }
0x14a2   : > { %v4380_v54 = vsel %vm7611_vm0, %v4376_v24, %v4378_v52  ;;  %4386 = vst.msk [vmem:[#allocation2 + $0xb8] sm:$0xf0] %vm7612_vm11, %v4378_v52  ;;  %v4452_v30 = vld [vmem:[#allocation2 + $0x80] sm:$0xff] }
0x14a3   : > { %4385 = vst [vmem:[#allocation2 + $0xb0] sm:$0xf0] %v4380_v54  ;;  %4488 = vmatprep.subr.bf16.mxu1 %v4452_v30 }
0x14a4   : > { %4489 = vmatpush1.bf16.msra.mxu1 %v4451_v55  ;;  %v4819_v55 = vld [vmem:[%s7467_s2 + $0xd0] sm:$0x7] }
0x14a5   : > { %v4426_v56 = vpop.permute.xlu1 %4425 }
0x14a6   : > { %v4428_v57 = vsel %vm7613_vm13, %v4424_v27, %v4426_v56  ;;  %4434 = vst.msk [vmem:[#allocation2 + $0xd0] sm:$0xf0] %vm7614_vm9, %v4426_v56  ;;  %v4455_v58 = vld [vmem:[#allocation2 + $0x98] sm:$0xff]  ;;  %vm7629_vm13 = vmmov %vm7614_vm9 }
0x14a7   : > { %4433 = vst [vmem:[#allocation2 + $0xc8] sm:$0xf0] %v4428_v57  ;;  %4490 = vmatprep.subr.bf16.mxu1 %v4455_v58 }
0x14a8   : > { %4491 = vmatpush1.bf16.msra.mxu1 %v4454_v59 }
0x14a9   : > { %v4422_v35 = vpop.permute.xlu1 %4421  ;;  %v4459_v10 = vld [vmem:[#allocation2 + $0xb8] sm:$0xff] }
0x14aa   : > { %v4427_v61 = vsel %vm7615_vm14, %v4422_v35, %v4424_v27  ;;  %v4458_v3 = vld [vmem:[#allocation2 + $0xb0] sm:$0xff]  ;;  %vm7631_vm14 = vmmov %vm7629_vm13 }
0x14ab   : > { %4432 = vst [vmem:[#allocation2 + $0xc0] sm:$0xf0] %v4427_v61  ;;  %4492 = vmatprep.subr.bf16.mxu1 %v4458_v3 }
0x14ac   : > { %4493 = vmatpush1.bf16.msra.mxu1 %v4457_v62 }
0x14ad   : > { %v4462_v14 = vld [vmem:[#allocation2 + $0xd0] sm:$0xff] }
0x14ae   : > { %v4461_v2 = vld [vmem:[#allocation2 + $0xc8] sm:$0xff] }
0x14af   : > { %4494 = vmatprep.subr.bf16.mxu1 %v4461_v2 }
0x14b2   : > { %v4460_v4 = vld [vmem:[#allocation2 + $0xc0] sm:$0xff] }
0x14b3   : > { %4495 = vmatpush1.bf16.msra.mxu1 %v4460_v4 }
0x14b4   : > { %4519 = vmatprep.subr.bf16.mxu1 %v6090_v13 }
0x14b6   : > { %4511 = vmatmul.mubr.bf16.vlgmr.msra.gmra.mrb[56].mxu1 %v5356_v11 }
0x14b7   : > { %4520 = vmatpush1.bf16.msra.mxu1 %v4438_v5  ;;  %5359 = vmatprep.mubr.msk.bf16.mxu1 %vm1886_vm15, %v7331_v0  ;;  %v4456_v0 = vld [vmem:[#allocation2 + $0xa0] sm:$0xff]  ;;  %vm7621_vm15 = vcmask 1039360  }
0x14b8   : > { %4521 = vmatprep.subr.bf16.mxu1 %v6090_v13  ;;  %vm7628_vm11 = vmmov %vm7621_vm15 }
0x14bb   : > { %4522 = vmatpush1.bf16.msra.mxu1 %v4441_v6 }
0x14bc   : > { %4523 = vmatprep.subr.bf16.mxu1 %v6090_v13 }
0x14bf   : > { %4524 = vmatpush1.bf16.msra.mxu1 %v4444_v7 }
0x14c0   : > { %4525 = vmatprep.subr.bf16.mxu1 %v6090_v13 }
0x14c3   : > { %4526 = vmatpush1.bf16.msra.mxu1 %v4447_v63 }
0x14c4   : > { %4527 = vmatprep.subr.bf16.mxu1 %v6090_v13 }
0x14c7   : > { %4528 = vmatpush1.bf16.msra.mxu1 %v4450_v8 }
0x14c8   : > { %4529 = vmatprep.subr.bf16.mxu1 %v6090_v13 }
0x14cb   : > { %4530 = vmatpush1.bf16.msra.mxu1 %v4453_v9 }
0x14cc   : > { %4531 = vmatprep.subr.bf16.mxu1 %v6090_v13 }
0x14cf   : > { %4532 = vmatpush1.bf16.msra.mxu1 %v4456_v0 }
0x14d0   : > { %4533 = vmatprep.subr.bf16.mxu1 %v6090_v13 }
0x14d3   : > { %4534 = vmatpush1.bf16.msra.mxu1 %v4459_v10 }
0x14d4   : > { %4535 = vmatprep.subr.bf16.mxu1 %v6090_v13 }
0x14d7   : > { %4536 = vmatpush1.bf16.msra.mxu1 %v4462_v14 }
0x14da   : > { %4552 = vmatmul.mubr.bf16.vlgmr.msra.gmra.mrb[60].mxu1 %v5356_v11 }
0x14db   : > { %4869 = vmatprep.mubr.bf16.mxu1 %v6090_v13 }
0x1589   : > { %v4512_v15 = vpop.f32.mrb[56].mxu1 }
0x158a   : > { %v4513_v23 = vadd.f32 %v4512_v15, %v4467_v12  ;;  %v4514_v16 = vpop.f32.mrb[57].mxu1 }
0x158b   : > { %v4515_v17 = vadd.f32 %v4514_v16, %v4467_v12  ;;  %v4516_v18 = vpop.f32.mrb[58].mxu1 }
0x158c   : > { %v4559_v20 = vmax.f32 %v4513_v23, 0.0  ;;  %v4517_v21 = vpop.f32.mrb[59].mxu1 }
0x158d   : > { %v4560_v24 = vmax.f32 %v4515_v17, 0.0 }
0x158e   : > { %v4562_v25 = vsel %vm6287_vm1, %v4559_v20, 0.0  ;;  %vm7617_vm1 = vcmask 154624  }
0x158f   : > { %v4563_v26 = vsel %vm6293_vm10, %v4560_v24, 0.0  ;;  %vm7618_vm10 = vmmov %vm7617_vm1 }
0x1590   : > { %v5400_v27 = vpack.c.bf16 %v4563_v26, %v4562_v25 }
0x1592   : > { %4576 = vrot.lane.b32.xlu1 %v5400_v27, %s7616_s12 }
0x15ad   : > { %v4553_v28 = vpop.f32.mrb[60].mxu1 }
0x15ae   : > { %v4554_v13 = vadd.f32 %v4553_v28, %v4467_v12  ;;  %v4555_v29 = vpop.f32.mrb[61].mxu1 }
0x15af   : > { %v4556_v19 = vpop.f32.mrb[62].mxu1 }
0x15b0   : > { %v4561_v31 = vmax.f32 %v4554_v13, 0.0  ;;  %v4557_v32 = vpop.f32.mrb[63].mxu1 }
0x15b2   : > { %v4564_v33 = vsel %vm6299_vm7, %v4561_v31, 0.0  ;;  %vm7619_vm7 = vcmask 412672  }
0x15b3   : > { %v5401_v34 = vpack.c.bf16 %v4564_v33, %v4564_v33 }
0x15b5   : > { %4578 = vrot.lane.b32.xlu0 %v5401_v34, %s7616_s12 }
0x1604   : > { %v4577_v41 = vpop.permute.xlu1 %4576 }
0x1605   : > { %v4580_v39 = vrot.slane %v4577_v41, 4 }
0x1607   : > { %v4581_v46 = vsel %vm7617_vm1, %v4580_v39, %v4577_v41  ;;  %vm7632_vm1 = vcmask 744448  }
0x1608   : > { %4585 = vst.msk [vmem:[#allocation6] sm:$0xff] %vm6309_vm12, %v4581_v46  ;;  %vm7620_vm12 = vcmask 257024  }
0x1609   : > { %vm7627_vm0 = vmmov %vm7620_vm12 }
0x160f   : > { %v4587_v38 = vld [vmem:[#allocation6] sm:$0xff] }
0x1610   : > { %v4591_v37 = vadd.bf16 %v6070_v40, %v4587_v38 }
0x1612   : > { %v5366_v42 = vcombine.high %v4591_v37, %v4591_v37  ;;  %v5365_v22 = vcombine.low %v4591_v37, %v4591_v37 }
0x1614   : > { %4623 = vrot.lane.b32.xlu1 %v5366_v42, %s6082_s30  ;;  %4647 = vrot.lane.b32.xlu0 %v5366_v42, %s6083_s8  ;;  %4609 = vst [vmem:[#allocation2 + $0x8] sm:$0xf] %v5366_v42  ;;  %4608 = vst [vmem:[#allocation2] sm:$0xf] %v5365_v22 }
0x1618   : > { %4621 = vrot.lane.b32.xlu1 %v5365_v22, %s6082_s30  ;;  %4671 = vrot.lane.b32.xlu0 %v5366_v42, %s7565_s29 }
0x161c   : > { %4669 = vrot.lane.b32.xlu1 %v5365_v22, %s7565_s29  ;;  %4645 = vrot.lane.b32.xlu0 %v5365_v22, %s6083_s8 }
0x1620   : > { %4717 = vrot.lane.b32.xlu1 %v5365_v22, %s6086_s11  ;;  %4695 = vrot.lane.b32.xlu0 %v5366_v42, %s7566_s15 }
0x1624   : > { %4765 = vrot.lane.b32.xlu1 %v5365_v22, %s7568_s9  ;;  %4719 = vrot.lane.b32.xlu0 %v5366_v42, %s6086_s11 }
0x1627   : > { %v4579_v53 = vpop.permute.xlu0 %4578 }
0x1628   : > { %v4582_v60 = vsel %vm7618_vm10, %v4580_v39, %v4579_v53  ;;  %4693 = vrot.lane.b32.xlu0 %v5365_v22, %s7566_s15  ;;  %vm7633_vm10 = vmmov %vm7625_vm8 }
0x1629   : > { %4586 = vst.msk [vmem:[#allocation6 + $0x8] sm:$0xf] %vm7619_vm7, %v4582_v60  ;;  %vm7634_vm7 = vmmov %vm7627_vm0 }
0x162c   : > { %4743 = vrot.lane.b32.xlu0 %v5366_v42, %s7567_s19 }
0x1630   : > { %v4588_v44 = vld [vmem:[#allocation6 + $0x8] sm:$0xf] }
0x1631   : > { %v4592_v36 = vadd.bf16 %v4590_v43, %v4588_v44  ;;  %v4803_v44 = vld [vmem:[%s7466_s1 + $0x138] sm:$0x3] }
0x1633   : > { %4594 = vst.msk [vmem:[#allocation5 + $0x8] sm:$0xf] %vm4017_vm6, %v4592_v36  ;;  %vm7622_vm6 = vcmask 900096  }
0x1634   : > { %vm7630_vm9 = vmmov %vm7622_vm6 }
0x163a   : > { %v6060_v45 = vld [vmem:[#allocation5 + $0x8] ss:$0 sps:$4 sm:$0xff]  }
0x163b   : > { %v6061_v47 = vld [vmem:[#allocation5 + $0x8] ss:$0 sps:$4 sm:$0xff]   ;;  %4649 = vrot.lane.b32.xlu1 %v6060_v45, %s6083_s8 }
0x163c   : > { %4625 = vrot.lane.b32.xlu0 %v6061_v47, %s6082_s30  ;;  %v6062_v48 = vld [vmem:[#allocation5 + $0x8] ss:$0 sps:$4 sm:$0xff]  }
0x163d   : > { %v6068_v49 = vld [vmem:[#allocation5 + $0x8] ss:$0 sps:$4 sm:$0xff]  }
0x163e   : > { %4610 = vst.msk [vmem:[#allocation2 + $0x10] sm:$0xf] %vm7620_vm12, %v6068_v49  ;;  %v6063_v50 = vld [vmem:[#allocation5 + $0x8] ss:$0 sps:$4 sm:$0xff]   ;;  %vm7635_vm12 = vcmask 752640  }
0x163f   : > { %4673 = vrot.lane.b32.xlu1 %v6062_v48, %s7565_s29  ;;  %v6064_v51 = vld [vmem:[#allocation5 + $0x8] ss:$0 sps:$4 sm:$0xff]  }
0x1640   : > { %4767 = vrot.lane.b32.xlu0 %v5366_v42, %s7568_s9  ;;  %v6065_v52 = vld [vmem:[#allocation5 + $0x8] ss:$0 sps:$4 sm:$0xff]  }
0x1641   : > { %v6066_v54 = vld [vmem:[#allocation5 + $0x8] ss:$0 sps:$4 sm:$0xff]  }
0x1642   : > { %v6067_v30 = vld [vmem:[#allocation5 + $0x8] ss:$0 sps:$4 sm:$0xff]  }
0x1643   : > { %4697 = vrot.lane.b32.xlu1 %v6063_v50, %s7566_s15  ;;  %s7650_s15 = smul.u32 12, %s7652_s25 }
0x1644   : > { %4741 = vrot.lane.b32.xlu0 %v5365_v22, %s7567_s19 }
0x1647   : > { %4721 = vrot.lane.b32.xlu1 %v6064_v51, %s6086_s11 }
0x1648   : > { %4789 = vrot.lane.b32.xlu0 %v5365_v22, %s7569_s10 }
0x164b   : > { %4745 = vrot.lane.b32.xlu1 %v6065_v52, %s7567_s19 }
0x164c   : > { %4793 = vrot.lane.b32.xlu0 %v6066_v54, %s7569_s10 }
0x164f   : > { %4769 = vrot.lane.b32.xlu1 %v6067_v30, %s7568_s9 }
0x1653   : > { %4791 = vrot.lane.b32.xlu1 %v5366_v42, %s7569_s10  ;;  %s278_s10 = scalar_lea.vmem %s7472_s7, %s7650_s15 }
0x1657   : > { %4822 = vperm.xlu1 %5850, %v4819_v55  }
0x1686   : > { %v4624_v56 = vpop.permute.xlu1 %4623  ;;  %v4648_v57 = vpop.permute.xlu0 %4647 }
0x168a   : > { %v4622_v58 = vpop.permute.xlu1 %4621  ;;  %v4672_v59 = vpop.permute.xlu0 %4671 }
0x168b   : > { %v4627_v35 = vsel %vm7621_vm15, %v4622_v58, %v4624_v56  ;;  %vm7636_vm15 = vmmov %vm7624_vm4 }
0x168c   : > { %4632 = vst [vmem:[#allocation2] sm:$0xf0] %v4627_v35 }
0x168e   : > { %v4670_v61 = vpop.permute.xlu1 %4669  ;;  %v4646_v3 = vpop.permute.xlu0 %4645 }
0x168f   : > { %v4675_v62 = vsel %vm7622_vm6, %v4670_v61, %v4672_v59  ;;  %v4651_v2 = vsel %vm7623_vm2, %v4646_v3, %v4648_v57  ;;  %vm7637_vm6 = vmmov %vm7629_vm13 }
0x1690   : > { %4680 = vst [vmem:[#allocation2 + $0x18] sm:$0xf0] %v4675_v62  ;;  %4656 = vst [vmem:[#allocation2 + $0x18] sm:$0xf] %v4651_v2 }
0x1691   : > { %vm7638_vm2 = vmmov %vm7635_vm12 }
0x1692   : > { %v4696_v4 = vpop.permute.xlu0 %4695  ;;  %v4718_v11 = vpop.permute.xlu1 %4717 }
0x1693   : > { %v4804_v26 = vld [vmem:[#allocation2] sm:$0xff] }
0x1696   : > { %v4720_v5 = vpop.permute.xlu0 %4719  ;;  %v4766_v8 = vpop.permute.xlu1 %4765 }
0x1697   : > { %v4723_v6 = vsel %vm7624_vm4, %v4718_v11, %v4720_v5  ;;  %v4807_v19 = vld [vmem:[#allocation2 + $0x18] sm:$0xff]  ;;  %vm7639_vm4 = vmmov %vm7627_vm0 }
0x1698   : > { %4728 = vst [vmem:[#allocation2 + $0x30] sm:$0xf0] %v4723_v6 }
0x169a   : > { %v4694_v7 = vpop.permute.xlu0 %4693 }
0x169b   : > { %v4699_v63 = vsel %vm7625_vm8, %v4694_v7, %v4696_v4  ;;  %vm7640_vm8 = vmmov %vm7627_vm0 }
0x169c   : > { %4704 = vst [vmem:[#allocation2 + $0x30] sm:$0xf] %v4699_v63 }
0x169e   : > { %v4744_v9 = vpop.permute.xlu0 %4743 }
0x16a3   : > { %v4810_v46 = vld [vmem:[#allocation2 + $0x30] sm:$0xff] }
0x16ad   : > { %v4650_v0 = vpop.permute.xlu1 %4649 }
0x16ae   : > { %v4652_v10 = vsel %vm7626_vm3, %v4648_v57, %v4650_v0  ;;  %4658 = vst.msk [vmem:[#allocation2 + $0x28] sm:$0xf] %vm7627_vm0, %v4650_v0  ;;  %v4626_v14 = vpop.permute.xlu0 %4625  ;;  %vm7641_vm3 = vmmov %vm7632_vm1 }
0x16af   : > { %4657 = vst [vmem:[#allocation2 + $0x20] sm:$0xf] %v4652_v10  ;;  %v4628_v12 = vsel %vm7628_vm11, %v4624_v56, %v4626_v14  ;;  %4634 = vst.msk [vmem:[#allocation2 + $0x10] sm:$0xf0] %vm7629_vm13, %v4626_v14  ;;  %vm7643_vm11 = vcmask 736256  }
0x16b0   : > { %4633 = vst [vmem:[#allocation2 + $0x8] sm:$0xf0] %v4628_v12  ;;  %vm7642_vm0 = vmmov %vm7637_vm6 }
0x16b1   : > { %v4674_v15 = vpop.permute.xlu1 %4673  ;;  %vm7644_vm13 = vmmov %vm7643_vm11 }
0x16b2   : > { %v4676_v23 = vsel %vm7630_vm9, %v4672_v59, %v4674_v15  ;;  %4682 = vst.msk [vmem:[#allocation2 + $0x28] sm:$0xf0] %vm7631_vm14, %v4674_v15  ;;  %v4768_v16 = vpop.permute.xlu0 %4767  ;;  %vm7645_vm9 = vcmask 1043456  }
0x16b3   : > { %4681 = vst [vmem:[#allocation2 + $0x20] sm:$0xf0] %v4676_v23  ;;  %v4771_v17 = vsel %vm7632_vm1, %v4766_v8, %v4768_v16  ;;  %vm7646_vm14 = vmmov %vm7645_vm9  ;;  %vm7647_vm1 = vcmask 588800  }
0x16b4   : > { %4776 = vst [vmem:[#allocation2 + $0x48] sm:$0xf0] %v4771_v17 }
0x16b5   : > { %v4698_v18 = vpop.permute.xlu1 %4697 }
0x16b6   : > { %v4700_v20 = vsel %vm7633_vm10, %v4696_v4, %v4698_v18  ;;  %4706 = vst.msk [vmem:[#allocation2 + $0x40] sm:$0xf] %vm7634_vm7, %v4698_v18  ;;  %v4742_v21 = vpop.permute.xlu0 %4741  ;;  %v4806_v36 = vld [vmem:[#allocation2 + $0x10] sm:$0xff]  ;;  %vm7648_vm10 = vmmov %vm7645_vm9  ;;  %vm4923_vm7 = vcmask 256000  }
0x16b7   : > { %4705 = vst [vmem:[#allocation2 + $0x38] sm:$0xf] %v4700_v20  ;;  %v4747_v24 = vsel %vm7635_vm12, %v4742_v21, %v4744_v9  ;;  %v4805_v25 = vld [vmem:[#allocation2 + $0x8] sm:$0xff] }
0x16b8   : > { %4752 = vst [vmem:[#allocation2 + $0x48] sm:$0xf] %v4747_v24  ;;  %4837 = vmatprep.subr.bf16.mxu1 %v4805_v25 }
0x16b9   : > { %4838 = vmatpush1.bf16.msra.mxu1 %v4804_v26  ;;  %v4722_v27 = vpop.permute.xlu1 %4721  ;;  %v4809_v45 = vld [vmem:[#allocation2 + $0x28] sm:$0xff] }
0x16ba   : > { %v4724_v28 = vsel %vm7636_vm15, %v4720_v5, %v4722_v27  ;;  %4730 = vst.msk [vmem:[#allocation2 + $0x40] sm:$0xf0] %vm7637_vm6, %v4722_v27  ;;  %v4790_v13 = vpop.permute.xlu0 %4789  ;;  %v4808_v29 = vld [vmem:[#allocation2 + $0x20] sm:$0xff] }
0x16bb   : > { %4729 = vst [vmem:[#allocation2 + $0x38] sm:$0xf0] %v4724_v28  ;;  %4839 = vmatprep.subr.bf16.mxu1 %v4808_v29 }
0x16bd   : > { %4840 = vmatpush1.bf16.msra.mxu1 %v4807_v19  ;;  %v4746_v31 = vpop.permute.xlu1 %4745 }
0x16be   : > { %v4748_v32 = vsel %vm7638_vm2, %v4744_v9, %v4746_v31  ;;  %4754 = vst.msk [vmem:[#allocation2 + $0x58] sm:$0xf] %vm7639_vm4, %v4746_v31  ;;  %v4794_v33 = vpop.permute.xlu0 %4793 }
0x16bf   : > { %4753 = vst [vmem:[#allocation2 + $0x50] sm:$0xf] %v4748_v32  ;;  %4802 = vst.msk [vmem:[#allocation2 + $0x70] sm:$0xf] %vm7640_vm8, %v4794_v33  ;;  %v4813_v22 = vld [vmem:[#allocation2 + $0x48] sm:$0xff] }
0x16c1   : > { %v4770_v34 = vpop.permute.xlu1 %4769  ;;  %v4812_v47 = vld [vmem:[#allocation2 + $0x40] sm:$0xff] }
0x16c2   : > { %v4772_v41 = vsel %vm7641_vm3, %v4768_v16, %v4770_v34  ;;  %4778 = vst.msk [vmem:[#allocation2 + $0x58] sm:$0xf0] %vm7642_vm0, %v4770_v34  ;;  %v4811_v39 = vld [vmem:[#allocation2 + $0x38] sm:$0xff] }
0x16c3   : > { %4777 = vst [vmem:[#allocation2 + $0x50] sm:$0xf0] %v4772_v41  ;;  %4841 = vmatprep.subr.bf16.mxu1 %v4811_v39 }
0x16c4   : > { %4842 = vmatpush1.bf16.msra.mxu1 %v4810_v46 }
0x16c5   : > { %v4792_v38 = vpop.permute.xlu1 %4791 }
0x16c6   : > { %v4795_v40 = vsel %vm7643_vm11, %v4790_v13, %v4792_v38  ;;  %v4796_v37 = vsel %vm7644_vm13, %v4792_v38, %v4794_v33  ;;  %v4818_v49 = vld [vmem:[#allocation2 + $0x70] sm:$0xf] }
0x16c7   : > { %4800 = vst [vmem:[#allocation2 + $0x60] sm:$0xf] %v4795_v40  ;;  %4801 = vst [vmem:[#allocation2 + $0x68] sm:$0xf] %v4796_v37  ;;  %v4835_v50 = vsel %vm7648_vm10, %v4818_v49, 0 }
0x16c9   : > { %v4815_v48 = vld [vmem:[#allocation2 + $0x58] sm:$0xff] }
0x16ca   : > { %v4814_v42 = vld [vmem:[#allocation2 + $0x50] sm:$0xff] }
0x16cb   : > { %4843 = vmatprep.subr.bf16.mxu1 %v4814_v42 }
0x16cc   : > { %4844 = vmatpush1.bf16.msra.mxu1 %v4813_v22 }
0x16ce   : > { %v4817_v53 = vld [vmem:[#allocation2 + $0x68] sm:$0xf]  ;;  %v4816_v60 = vld [vmem:[#allocation2 + $0x60] sm:$0xf] }
0x16cf   : > { %5389 = vmatprep.subr.msk.bf16.mxu1 %vm7645_vm9, %v4817_v53  ;;  %v4829_v43 = vsel %vm7646_vm14, %v4816_v60, 0 }
0x16d0   : > { %4846 = vmatpush1.bf16.msra.mxu1 %v4829_v43 }
0x16d1   : > { %5756 = vmatprep.subr.bf16.mxu1 %v6081_v1 }
0x16d3   : > { %5390 = vmatmul.mubr.msk.bf16.vlgmr.msra.gmra.mrb[64].mxu1 %vm7647_vm1, %v4803_v44 }
0x16d4   : > { %5757 = vmatpush3.bf16.msra.mxu1 %v4806_v36  ;;  %5766 = vmatprep.mubr.msk.bf16.mxu1 %vm7534_vm5, %v6081_v1  ;;  %vm7649_vm5 = vmmov %vm7647_vm1 }
0x16d5   : > { %5758 = vmatprep.subr.bf16.mxu1 %v6081_v1 }
0x16d6   : > { %v4823_v51 = vpop.permute.xlu1 %4822 }
0x16d8   : > { %5759 = vmatpush3.bf16.msra.mxu1 %v4809_v45 }
0x16d9   : > { %5760 = vmatprep.subr.bf16.mxu1 %v6081_v1 }
0x16dc   : > { %5761 = vmatpush3.bf16.msra.mxu1 %v4812_v47 }
0x16dd   : > { %5762 = vmatprep.subr.bf16.mxu1 %v6081_v1 }
0x16e0   : > { %5763 = vmatpush3.bf16.msra.mxu1 %v4815_v48 }
0x16e1   : > { %5764 = vmatprep.subr.bf16.mxu1 %v6081_v1 }
0x16e4   : > { %5765 = vmatpush3.bf16.msra.mxu1 %v4835_v50 }
0x16e7   : > { %5767 = vmatmul.mubr.msk.bf16.vlgmr.msra.gmra.mrb[68].mxu1 %vm7649_vm5, %v4803_v44 }
0x17a6   : > { %v4871_v52 = vpop.f32.mrb[64].mxu1 }
0x17a7   : > { %v4872_v54 = vadd.f32 %v4871_v52, %v4823_v51  ;;  %v4873_v30 = vpop.f32.mrb[65].mxu1 }
0x17a8   : > { %v4874_v55 = vadd.f32 %v4873_v30, %v4823_v51  ;;  %v4875_v56 = vpop.f32.mrb[66].mxu1 }
0x17a9   : > { %v4876_v57 = vpop.f32.mrb[67].mxu1 }
0x17aa   : > { %v4920_v58 = vcombine.low %v4872_v54, %v4874_v55 }
0x17ac   : > { %4922 = vst [vmem:[%s278_s10] sm:$0x77] %v4920_v58 }
0x17ba   : > { %v4912_v1 = vpop.f32.mrb[68].mxu1 }
0x17bb   : > { %v4913_v59 = vadd.f32 %v4912_v1, %v4823_v51  ;;  %v5768_v35 = vpop.f32.mrb[69].mxu1 }
0x17bc   : > { %v4915_v61 = vpop.f32.mrb[70].mxu1 }
0x17bd   : > { %4924 = vst.msk [vmem:[%s278_s10 + $0x8] sm:$0x7] %vm4923_vm7, %v4913_v59  ;;  %v5769_v3 = vpop.f32.mrb[71].mxu1 }
0x17be PF: > { %s17_s24 = sadd.s32 1, %s6079_s24  }
0x17bf   : > { %p14_p4 = scmp.ge.s32.totalorder %s17_s24, 4  }
0x17c1   :  { %16 = sbr.rel (!%p14_p4) target bundleno = 1 (0x1), region = 84 }

</bundles_post_ra>
